<compile_context>
chip_gen: v5e
topology: v5e:2x2
jax: 0.10.0
libtpu: 0.0.40
codegen_flags: <defaults>
</compile_context>

<pallas_src>
import numpy as np

import jax
import jax.numpy as jnp
from jax.experimental import pallas as pl
from jax.experimental.pallas import tpu as pltpu


# ----------------------------------------------------------------------------
# Host-side parameter preparation (done once, outside the kernels)
# ----------------------------------------------------------------------------
def _conv_block_matrices(k_hwio, width):
    """Expand a (3,3,Cin,Cout) kernel into 9 block-diagonal (width*Cin, 256)
    matrices.  Column layout folds the width max-pool selection:
      even output w=2w' -> lanes [w'*Cout : w'*Cout+Cout)
      odd  output w=2w'+1 -> lanes [128 + w'*Cout : 128 + w'*Cout + Cout)
    """
    k = np.asarray(k_hwio, np.float32)
    _, _, cin, cout = k.shape
    a = np.zeros((9, width * cin, 256), np.float32)
    for dh in range(3):
        for dw in range(3):
            for w in range(width):
                col = (w // 2) * cout + (0 if w % 2 == 0 else 128)
                a[dh * 3 + dw, w * cin:(w + 1) * cin, col:col + cout] = k[dh, dw]
    return jnp.asarray(a)


def _conv_bias_lanes(b, width):
    """Bias broadcast over width, laid out to match _conv_block_matrices cols."""
    b = np.asarray(b, np.float32).reshape(-1)
    cout = b.shape[0]
    half = (width // 2) * cout
    bl = np.zeros((1, 256), np.float32)
    tiled = np.tile(b, width // 2)
    bl[0, :half] = tiled
    bl[0, 128:128 + half] = tiled
    return jnp.asarray(bl)


def _row_selectors(h_in):
    """0/1 matrices selecting even / odd rows (height part of the 2x2 pool)."""
    h_out = h_in // 2
    se = np.zeros((h_out, h_in), np.float32)
    so = np.zeros((h_out, h_in), np.float32)
    se[np.arange(h_out), 2 * np.arange(h_out)] = 1.0
    so[np.arange(h_out), 2 * np.arange(h_out) + 1] = 1.0
    return jnp.asarray(se), jnp.asarray(so)


def prepare_params(p):
    """Build kernel-friendly parameters from 'PyTorch-layout' parameters."""
    # fc1 row permutation: kernel flatten order is h*80 + w*10 + c (NHWC-ish),
    # PyTorch x.view(-1, 640) order is c*64 + h*8 + w (NCHW).  Permute rows of
    # w1 once so the kernel-side flatten needs no runtime transpose.
    idx = np.empty(640, np.int32)
    for h in range(8):
        for w in range(8):
            for c in range(10):
                idx[h * 80 + w * 10 + c] = c * 64 + h * 8 + w
    w1p = jnp.asarray(np.asarray(p["w1"], np.float32)[idx, :])

    se1, so1 = _row_selectors(32)
    se2, so2 = _row_selectors(16)
    return dict(
        a1=_conv_block_matrices(p["k1"], width=32),   # (9, 96, 256)
        bl1=_conv_bias_lanes(p["bc1"], width=32),     # (1, 256)
        a2=_conv_block_matrices(p["k2"], width=16),   # (9, 80, 256)
        bl2=_conv_bias_lanes(p["bc2"], width=16),     # (1, 256)
        se1=se1, so1=so1,                             # (16, 32)
        se2=se2, so2=so2,                             # (8, 16)
        w1p=w1p, b1=p["b1"], w2=p["w2"], b2=p["b2"], w3=p["w3"], b3=p["b3"],
    )


# ----------------------------------------------------------------------------
# Kernel 1: fused conv1+ReLU+pool1+conv2+ReLU+pool2  (MXU matmuls only)
# ----------------------------------------------------------------------------
def fused_conv_kernel(x_ref, a1_ref, b1_ref, se1_ref, so1_ref,
                      a2_ref, b2_ref, se2_ref, so2_ref, o_ref, pad_ref):
    # x_ref : (BT, 34, 102)  zero-padded image, lane = w*3 + c
    # a1_ref: (9, 96, 256)   conv1 block-diag weights (pool cols folded)
    # a2_ref: (9, 80, 256)   conv2 block-diag weights
    # se/so : height-pool even/odd row selectors
    # o_ref : (BT, 8, 80)    pooled conv2 output, lane = w*10 + c
    # pad_ref: VMEM scratch (18, 90) for conv2 'same' padding
    bt = x_ref.shape[0]
    for b in range(bt):
        x = x_ref[b]                                          # (34, 102)

        # ---- conv1 (+bias, ReLU): 9 MXU matmuls on shifted patches ----
        acc = jnp.zeros((32, 256), jnp.float32)
        for dh in range(3):
            for dw in range(3):
                patch = x[dh:dh + 32, dw * 3:dw * 3 + 96]     # (32, 96)
                acc += jnp.dot(patch, a1_ref[dh * 3 + dw],
                               preferred_element_type=jnp.float32)
        y1 = jnp.maximum(acc + b1_ref[...], 0.0)              # (32, 256)

        # ---- pool1: width = slice+max, height = selector matmuls ----
        yw = jnp.maximum(y1[:, 0:80], y1[:, 128:208])         # (32, 80)
        p1 = jnp.maximum(
            jnp.dot(se1_ref[...], yw, preferred_element_type=jnp.float32),
            jnp.dot(so1_ref[...], yw, preferred_element_type=jnp.float32))  # (16, 80)

        # ---- zero-pad for conv2 'same' via VMEM scratch ----
        pad_ref[...] = jnp.zeros(pad_ref.shape, jnp.float32)
        pad_ref[1:17, 5:85] = p1

        # ---- conv2 (+bias, ReLU) ----
        acc2 = jnp.zeros((16, 256), jnp.float32)
        for dh in range(3):
            for dw in range(3):
                patch = pad_ref[dh:dh + 16, dw * 5:dw * 5 + 80]  # (16, 80)
                acc2 += jnp.dot(patch, a2_ref[dh * 3 + dw],
                                preferred_element_type=jnp.float32)
        y2 = jnp.maximum(acc2 + b2_ref[...], 0.0)             # (16, 256)

        # ---- pool2 ----
        yw2 = jnp.maximum(y2[:, 0:80], y2[:, 128:208])        # (16, 80)
        p2 = jnp.maximum(
            jnp.dot(se2_ref[...], yw2, preferred_element_type=jnp.float32),
            jnp.dot(so2_ref[...], yw2, preferred_element_type=jnp.float32))  # (8, 80)

        o_ref[b] = p2


def _pick_divisor_tile(n, cap):
    for bt in range(min(n, cap), 0, -1):
        if n % bt == 0:
            return bt
    return 1


def fused_conv(x2d, prep):
    n = x2d.shape[0]
    bt = _pick_divisor_tile(n, 8)
    return pl.pallas_call(
        fused_conv_kernel,
        out_shape=jax.ShapeDtypeStruct((n, 8, 80), jnp.float32),
        grid=(n // bt,),
        in_specs=[
            pl.BlockSpec((bt, 34, 102), lambda i: (i, 0, 0)),
            pl.BlockSpec((9, 96, 256), lambda i: (0, 0, 0)),
            pl.BlockSpec((1, 256), lambda i: (0, 0)),
            pl.BlockSpec((16, 32), lambda i: (0, 0)),
            pl.BlockSpec((16, 32), lambda i: (0, 0)),
            pl.BlockSpec((9, 80, 256), lambda i: (0, 0, 0)),
            pl.BlockSpec((1, 256), lambda i: (0, 0)),
            pl.BlockSpec((8, 16), lambda i: (0, 0)),
            pl.BlockSpec((8, 16), lambda i: (0, 0)),
        ],
        out_specs=pl.BlockSpec((bt, 8, 80), lambda i: (i, 0, 0)),
        scratch_shapes=[pltpu.VMEM((18, 90), jnp.float32)],
        compiler_params=pltpu.CompilerParams(dimension_semantics=("parallel",)),
    )(x2d, prep["a1"], prep["bl1"], prep["se1"], prep["so1"],
      prep["a2"], prep["bl2"], prep["se2"], prep["so2"])


# ----------------------------------------------------------------------------
# Kernel 2: fused MLP head  fc1+ReLU -> fc2+ReLU -> fc3 -> softmax(dim=1)
# ----------------------------------------------------------------------------
def mlp_softmax_kernel(x_ref, w1_ref, b1_ref, w2_ref, b2_ref, w3_ref, b3_ref, o_ref):
    h = jnp.dot(x_ref[...], w1_ref[...], preferred_element_type=jnp.float32) + b1_ref[...]
    h = jnp.maximum(h, 0.0)
    h = jnp.dot(h, w2_ref[...], preferred_element_type=jnp.float32) + b2_ref[...]
    h = jnp.maximum(h, 0.0)
    z = jnp.dot(h, w3_ref[...], preferred_element_type=jnp.float32) + b3_ref[...]
    z = z - jnp.max(z, axis=-1, keepdims=True)
    e = jnp.exp(z)
    inv = pl.reciprocal(jnp.sum(e, axis=-1, keepdims=True), approx=True)
    o_ref[...] = e * inv


def _mlp_batch_tile(n):
    if n <= 512:
        return n
    for bt in (512, 256, 128, 64, 32, 16, 8):
        if n % bt == 0:
            return bt
    return n


def mlp_softmax(x, w1, b1, w2, b2, w3, b3):
    n = x.shape[0]
    bm = _mlp_batch_tile(n)
    return pl.pallas_call(
        mlp_softmax_kernel,
        out_shape=jax.ShapeDtypeStruct((n, 10), jnp.float32),
        grid=(n // bm,),
        in_specs=[
            pl.BlockSpec((bm, 640), lambda i: (i, 0)),
            pl.BlockSpec((640, 160), lambda i: (0, 0)),
            pl.BlockSpec((1, 160), lambda i: (0, 0)),
            pl.BlockSpec((160, 80), lambda i: (0, 0)),
            pl.BlockSpec((1, 80), lambda i: (0, 0)),
            pl.BlockSpec((80, 10), lambda i: (0, 0)),
            pl.BlockSpec((1, 10), lambda i: (0, 0)),
        ],
        out_specs=pl.BlockSpec((bm, 10), lambda i: (i, 0)),
        compiler_params=pltpu.CompilerParams(dimension_semantics=("parallel",)),
    )(x, w1, b1, w2, b2, w3, b3)


# ----------------------------------------------------------------------------
# Full forward
# ----------------------------------------------------------------------------
def convnn_forward(x_nchw, prep):
    n = x_nchw.shape[0]
    # One-time input prep in XLA: NCHW -> NHWC, 'same' zero pad, collapse W*C
    # into the lane dim (row-major, so this reshape is a bitcast).
    x = jnp.transpose(x_nchw, (0, 2, 3, 1))            # (N, 32, 32, 3)
    x = jnp.pad(x, ((0, 0), (1, 1), (1, 1), (0, 0)))   # (N, 34, 34, 3)
    x = x.reshape(n, 34, 34 * 3)                       # (N, 34, 102)

    feats = fused_conv(x, prep)                        # (N, 8, 80)
    feats = feats.reshape(n, 640)                      # free bitcast; order h*80+w*10+c
    return mlp_softmax(feats, prep["w1p"], prep["b1"], prep["w2"], prep["b2"],
                       prep["w3"], prep["b3"])


if __name__ == "__main__":
    key = jax.random.PRNGKey(0)
    ks = jax.random.split(key, 11)

    # Deterministic synthetic parameters (shapes from ConvNN.__init__).
    # Conv kernels in HWIO layout; w1 rows in PyTorch flatten order (c*64+h*8+w).
    params = {
        "k1": jax.random.normal(ks[0], (3, 3, 3, 5), jnp.float32) * 0.1,
        "bc1": jax.random.normal(ks[1], (5,), jnp.float32) * 0.1,
        "k2": jax.random.normal(ks[2], (3, 3, 5, 10), jnp.float32) * 0.1,
        "bc2": jax.random.normal(ks[3], (10,), jnp.float32) * 0.1,
        "w1": jax.random.normal(ks[4], (640, 160), jnp.float32) * 0.05,
        "b1": jax.random.normal(ks[5], (1, 160), jnp.float32) * 0.05,
        "w2": jax.random.normal(ks[6], (160, 80), jnp.float32) * 0.05,
        "b2": jax.random.normal(ks[7], (1, 80), jnp.float32) * 0.05,
        "w3": jax.random.normal(ks[8], (80, 10), jnp.float32) * 0.05,
        "b3": jax.random.normal(ks[9], (1, 10), jnp.float32) * 0.05,
    }
    prep = prepare_params(params)

    # Input: NCHW, 32x32 implied by the 640-unit flatten (10 * 8 * 8).
    x = jax.random.normal(ks[10], (2, 3, 32, 32), jnp.float32)

    out = jax.jit(convnn_forward)(x, prep)
    out = jax.block_until_ready(out)

    assert out.shape == (2, 10)
    assert bool(jnp.isfinite(out).all())
    # Softmax rows should sum to ~1 (loose tolerance: approx reciprocal).
    assert bool(jnp.allclose(jnp.sum(out, axis=-1), 1.0, atol=5e-2))
    print("KERNEL_OK")
</pallas_src>

<mosaic_0001>
module attributes {stable_mosaic.version = 11 : i64} {
  func.func @fused_conv_kernel(%arg0: i32, %arg1: memref<2x34x102xf32, #tpu.memory_space<vmem>>, %arg2: memref<9x96x256xf32, #tpu.memory_space<vmem>>, %arg3: memref<1x256xf32, #tpu.memory_space<vmem>>, %arg4: memref<16x32xf32, #tpu.memory_space<vmem>>, %arg5: memref<16x32xf32, #tpu.memory_space<vmem>>, %arg6: memref<9x80x256xf32, #tpu.memory_space<vmem>>, %arg7: memref<1x256xf32, #tpu.memory_space<vmem>>, %arg8: memref<8x16xf32, #tpu.memory_space<vmem>>, %arg9: memref<8x16xf32, #tpu.memory_space<vmem>>, %arg10: memref<2x8x80xf32, #tpu.memory_space<vmem>>, %arg11: memref<18x90xf32, #tpu.memory_space<vmem>>) attributes {dimension_semantics = [#tpu.dimension_semantics<parallel>], iteration_bounds = array<i64: 1>, scalar_prefetch = 0 : i64, scratch_operands = 1 : i64, tpu.core_type = #tpu.core_type<tc>, window_params = [{transform_indices = @transform_0, window_bounds = array<i64: 2, 34, 102>}, {pipeline_mode = #tpu.pipeline_mode<synchronous>, transform_indices = @transform_1, window_bounds = array<i64: 9, 96, 256>}, {pipeline_mode = #tpu.pipeline_mode<synchronous>, transform_indices = @transform_2, window_bounds = array<i64: 1, 256>}, {pipeline_mode = #tpu.pipeline_mode<synchronous>, transform_indices = @transform_3, window_bounds = array<i64: 16, 32>}, {pipeline_mode = #tpu.pipeline_mode<synchronous>, transform_indices = @transform_4, window_bounds = array<i64: 16, 32>}, {pipeline_mode = #tpu.pipeline_mode<synchronous>, transform_indices = @transform_5, window_bounds = array<i64: 9, 80, 256>}, {pipeline_mode = #tpu.pipeline_mode<synchronous>, transform_indices = @transform_6, window_bounds = array<i64: 1, 256>}, {pipeline_mode = #tpu.pipeline_mode<synchronous>, transform_indices = @transform_7, window_bounds = array<i64: 8, 16>}, {pipeline_mode = #tpu.pipeline_mode<synchronous>, transform_indices = @transform_8, window_bounds = array<i64: 8, 16>}, {transform_indices = @transform_9, window_bounds = array<i64: 2, 8, 80>}]} {
    %c0 = arith.constant 0 : index
    %c0_0 = arith.constant 0 : index
    %c0_1 = arith.constant 0 : index
    %0 = vector.load %arg1[%c0, %c0_0, %c0_1] : memref<2x34x102xf32, #tpu.memory_space<vmem>>, vector<1x34x102xf32>
    %1 = vector.shape_cast %0 : vector<1x34x102xf32> to vector<34x102xf32>
    %cst = arith.constant 0.000000e+00 : f32
    %2 = vector.broadcast %cst : f32 to vector<32x256xf32>
    %3 = vector.extract_strided_slice %1 {offsets = [0, 0], sizes = [32, 96], strides = [1, 1]} : vector<34x102xf32> to vector<32x96xf32>
    %c0_2 = arith.constant 0 : index
    %c0_3 = arith.constant 0 : index
    %c0_4 = arith.constant 0 : index
    %4 = vector.load %arg2[%c0_2, %c0_3, %c0_4] : memref<9x96x256xf32, #tpu.memory_space<vmem>>, vector<1x96x256xf32>
    %5 = vector.shape_cast %4 : vector<1x96x256xf32> to vector<96x256xf32>
    %cst_5 = arith.constant dense<0.000000e+00> : vector<32x256xf32>
    %6 = tpu.matmul %3, %5, %cst_5 {dimension_numbers = #tpu.dot_dimension_numbers<[1], [0], [0], [1], [0, 0, 1, 1], [], []>} : vector<32x96xf32>, vector<96x256xf32>, vector<32x256xf32> -> vector<32x256xf32>
    %7 = arith.addf %2, %6 : vector<32x256xf32>
    %8 = vector.extract_strided_slice %1 {offsets = [0, 3], sizes = [32, 96], strides = [1, 1]} : vector<34x102xf32> to vector<32x96xf32>
    %c1 = arith.constant 1 : index
    %c0_6 = arith.constant 0 : index
    %c0_7 = arith.constant 0 : index
    %9 = vector.load %arg2[%c1, %c0_6, %c0_7] : memref<9x96x256xf32, #tpu.memory_space<vmem>>, vector<1x96x256xf32>
    %10 = vector.shape_cast %9 : vector<1x96x256xf32> to vector<96x256xf32>
    %cst_8 = arith.constant dense<0.000000e+00> : vector<32x256xf32>
    %11 = tpu.matmul %8, %10, %cst_8 {dimension_numbers = #tpu.dot_dimension_numbers<[1], [0], [0], [1], [0, 0, 1, 1], [], []>} : vector<32x96xf32>, vector<96x256xf32>, vector<32x256xf32> -> vector<32x256xf32>
    %12 = arith.addf %7, %11 : vector<32x256xf32>
    %13 = vector.extract_strided_slice %1 {offsets = [0, 6], sizes = [32, 96], strides = [1, 1]} : vector<34x102xf32> to vector<32x96xf32>
    %c2 = arith.constant 2 : index
    %c0_9 = arith.constant 0 : index
    %c0_10 = arith.constant 0 : index
    %14 = vector.load %arg2[%c2, %c0_9, %c0_10] : memref<9x96x256xf32, #tpu.memory_space<vmem>>, vector<1x96x256xf32>
    %15 = vector.shape_cast %14 : vector<1x96x256xf32> to vector<96x256xf32>
    %cst_11 = arith.constant dense<0.000000e+00> : vector<32x256xf32>
    %16 = tpu.matmul %13, %15, %cst_11 {dimension_numbers = #tpu.dot_dimension_numbers<[1], [0], [0], [1], [0, 0, 1, 1], [], []>} : vector<32x96xf32>, vector<96x256xf32>, vector<32x256xf32> -> vector<32x256xf32>
    %17 = arith.addf %12, %16 : vector<32x256xf32>
    %18 = vector.extract_strided_slice %1 {offsets = [1, 0], sizes = [32, 96], strides = [1, 1]} : vector<34x102xf32> to vector<32x96xf32>
    %c3 = arith.constant 3 : index
    %c0_12 = arith.constant 0 : index
    %c0_13 = arith.constant 0 : index
    %19 = vector.load %arg2[%c3, %c0_12, %c0_13] : memref<9x96x256xf32, #tpu.memory_space<vmem>>, vector<1x96x256xf32>
    %20 = vector.shape_cast %19 : vector<1x96x256xf32> to vector<96x256xf32>
    %cst_14 = arith.constant dense<0.000000e+00> : vector<32x256xf32>
    %21 = tpu.matmul %18, %20, %cst_14 {dimension_numbers = #tpu.dot_dimension_numbers<[1], [0], [0], [1], [0, 0, 1, 1], [], []>} : vector<32x96xf32>, vector<96x256xf32>, vector<32x256xf32> -> vector<32x256xf32>
    %22 = arith.addf %17, %21 : vector<32x256xf32>
    %23 = vector.extract_strided_slice %1 {offsets = [1, 3], sizes = [32, 96], strides = [1, 1]} : vector<34x102xf32> to vector<32x96xf32>
    %c4 = arith.constant 4 : index
    %c0_15 = arith.constant 0 : index
    %c0_16 = arith.constant 0 : index
    %24 = vector.load %arg2[%c4, %c0_15, %c0_16] : memref<9x96x256xf32, #tpu.memory_space<vmem>>, vector<1x96x256xf32>
    %25 = vector.shape_cast %24 : vector<1x96x256xf32> to vector<96x256xf32>
    %cst_17 = arith.constant dense<0.000000e+00> : vector<32x256xf32>
    %26 = tpu.matmul %23, %25, %cst_17 {dimension_numbers = #tpu.dot_dimension_numbers<[1], [0], [0], [1], [0, 0, 1, 1], [], []>} : vector<32x96xf32>, vector<96x256xf32>, vector<32x256xf32> -> vector<32x256xf32>
    %27 = arith.addf %22, %26 : vector<32x256xf32>
    %28 = vector.extract_strided_slice %1 {offsets = [1, 6], sizes = [32, 96], strides = [1, 1]} : vector<34x102xf32> to vector<32x96xf32>
    %c5 = arith.constant 5 : index
    %c0_18 = arith.constant 0 : index
    %c0_19 = arith.constant 0 : index
    %29 = vector.load %arg2[%c5, %c0_18, %c0_19] : memref<9x96x256xf32, #tpu.memory_space<vmem>>, vector<1x96x256xf32>
    %30 = vector.shape_cast %29 : vector<1x96x256xf32> to vector<96x256xf32>
    %cst_20 = arith.constant dense<0.000000e+00> : vector<32x256xf32>
    %31 = tpu.matmul %28, %30, %cst_20 {dimension_numbers = #tpu.dot_dimension_numbers<[1], [0], [0], [1], [0, 0, 1, 1], [], []>} : vector<32x96xf32>, vector<96x256xf32>, vector<32x256xf32> -> vector<32x256xf32>
    %32 = arith.addf %27, %31 : vector<32x256xf32>
    %33 = vector.extract_strided_slice %1 {offsets = [2, 0], sizes = [32, 96], strides = [1, 1]} : vector<34x102xf32> to vector<32x96xf32>
    %c6 = arith.constant 6 : index
    %c0_21 = arith.constant 0 : index
    %c0_22 = arith.constant 0 : index
    %34 = vector.load %arg2[%c6, %c0_21, %c0_22] : memref<9x96x256xf32, #tpu.memory_space<vmem>>, vector<1x96x256xf32>
    %35 = vector.shape_cast %34 : vector<1x96x256xf32> to vector<96x256xf32>
    %cst_23 = arith.constant dense<0.000000e+00> : vector<32x256xf32>
    %36 = tpu.matmul %33, %35, %cst_23 {dimension_numbers = #tpu.dot_dimension_numbers<[1], [0], [0], [1], [0, 0, 1, 1], [], []>} : vector<32x96xf32>, vector<96x256xf32>, vector<32x256xf32> -> vector<32x256xf32>
    %37 = arith.addf %32, %36 : vector<32x256xf32>
    %38 = vector.extract_strided_slice %1 {offsets = [2, 3], sizes = [32, 96], strides = [1, 1]} : vector<34x102xf32> to vector<32x96xf32>
    %c7 = arith.constant 7 : index
    %c0_24 = arith.constant 0 : index
    %c0_25 = arith.constant 0 : index
    %39 = vector.load %arg2[%c7, %c0_24, %c0_25] : memref<9x96x256xf32, #tpu.memory_space<vmem>>, vector<1x96x256xf32>
    %40 = vector.shape_cast %39 : vector<1x96x256xf32> to vector<96x256xf32>
    %cst_26 = arith.constant dense<0.000000e+00> : vector<32x256xf32>
    %41 = tpu.matmul %38, %40, %cst_26 {dimension_numbers = #tpu.dot_dimension_numbers<[1], [0], [0], [1], [0, 0, 1, 1], [], []>} : vector<32x96xf32>, vector<96x256xf32>, vector<32x256xf32> -> vector<32x256xf32>
    %42 = arith.addf %37, %41 : vector<32x256xf32>
    %43 = vector.extract_strided_slice %1 {offsets = [2, 6], sizes = [32, 96], strides = [1, 1]} : vector<34x102xf32> to vector<32x96xf32>
    %c8 = arith.constant 8 : index
    %c0_27 = arith.constant 0 : index
    %c0_28 = arith.constant 0 : index
    %44 = vector.load %arg2[%c8, %c0_27, %c0_28] : memref<9x96x256xf32, #tpu.memory_space<vmem>>, vector<1x96x256xf32>
    %45 = vector.shape_cast %44 : vector<1x96x256xf32> to vector<96x256xf32>
    %cst_29 = arith.constant dense<0.000000e+00> : vector<32x256xf32>
    %46 = tpu.matmul %43, %45, %cst_29 {dimension_numbers = #tpu.dot_dimension_numbers<[1], [0], [0], [1], [0, 0, 1, 1], [], []>} : vector<32x96xf32>, vector<96x256xf32>, vector<32x256xf32> -> vector<32x256xf32>
    %47 = arith.addf %42, %46 : vector<32x256xf32>
    %c0_30 = arith.constant 0 : index
    %c0_31 = arith.constant 0 : index
    %48 = vector.load %arg3[%c0_30, %c0_31] : memref<1x256xf32, #tpu.memory_space<vmem>>, vector<1x256xf32>
    %49 = vector.broadcast %48 : vector<1x256xf32> to vector<32x256xf32>
    %50 = arith.addf %47, %49 : vector<32x256xf32>
    %cst_32 = arith.constant 0.000000e+00 : f32
    %51 = vector.broadcast %cst_32 : f32 to vector<32x256xf32>
    %52 = arith.maximumf %50, %51 : vector<32x256xf32>
    %53 = vector.extract_strided_slice %52 {offsets = [0, 0], sizes = [32, 80], strides = [1, 1]} : vector<32x256xf32> to vector<32x80xf32>
    %54 = vector.extract_strided_slice %52 {offsets = [0, 128], sizes = [32, 80], strides = [1, 1]} : vector<32x256xf32> to vector<32x80xf32>
    %55 = arith.maximumf %53, %54 : vector<32x80xf32>
    %c0_33 = arith.constant 0 : index
    %c0_34 = arith.constant 0 : index
    %56 = vector.load %arg4[%c0_33, %c0_34] : memref<16x32xf32, #tpu.memory_space<vmem>>, vector<16x32xf32>
    %cst_35 = arith.constant dense<0.000000e+00> : vector<16x80xf32>
    %57 = tpu.matmul %56, %55, %cst_35 {dimension_numbers = #tpu.dot_dimension_numbers<[1], [0], [0], [1], [0, 0, 1, 1], [], []>} : vector<16x32xf32>, vector<32x80xf32>, vector<16x80xf32> -> vector<16x80xf32>
    %c0_36 = arith.constant 0 : index
    %c0_37 = arith.constant 0 : index
    %58 = vector.load %arg5[%c0_36, %c0_37] : memref<16x32xf32, #tpu.memory_space<vmem>>, vector<16x32xf32>
    %cst_38 = arith.constant dense<0.000000e+00> : vector<16x80xf32>
    %59 = tpu.matmul %58, %55, %cst_38 {dimension_numbers = #tpu.dot_dimension_numbers<[1], [0], [0], [1], [0, 0, 1, 1], [], []>} : vector<16x32xf32>, vector<32x80xf32>, vector<16x80xf32> -> vector<16x80xf32>
    %60 = arith.maximumf %57, %59 : vector<16x80xf32>
    %cst_39 = arith.constant 0.000000e+00 : f32
    %61 = vector.broadcast %cst_39 : f32 to vector<18x90xf32>
    %c0_40 = arith.constant 0 : index
    %c0_41 = arith.constant 0 : index
    %62 = vector.load %arg11[%c0_40, %c0_41] : memref<18x90xf32, #tpu.memory_space<vmem>>, vector<18x90xf32>
    tpu.vector_store %arg11[%c0_40, %c0_41], %61 {strides = array<i32>} : memref<18x90xf32, #tpu.memory_space<vmem>>, vector<18x90xf32>,
    %c1_42 = arith.constant 1 : index
    %c5_43 = arith.constant 5 : index
    %63 = vector.load %arg11[%c1_42, %c5_43] : memref<18x90xf32, #tpu.memory_space<vmem>>, vector<16x80xf32>
    tpu.vector_store %arg11[%c1_42, %c5_43], %60 {strides = array<i32>} : memref<18x90xf32, #tpu.memory_space<vmem>>, vector<16x80xf32>,
    %cst_44 = arith.constant 0.000000e+00 : f32
    %64 = vector.broadcast %cst_44 : f32 to vector<16x256xf32>
    %c0_45 = arith.constant 0 : index
    %c0_46 = arith.constant 0 : index
    %65 = vector.load %arg11[%c0_45, %c0_46] : memref<18x90xf32, #tpu.memory_space<vmem>>, vector<16x80xf32>
    %c0_47 = arith.constant 0 : index
    %c0_48 = arith.constant 0 : index
    %c0_49 = arith.constant 0 : index
    %66 = vector.load %arg6[%c0_47, %c0_48, %c0_49] : memref<9x80x256xf32, #tpu.memory_space<vmem>>, vector<1x80x256xf32>
    %67 = vector.shape_cast %66 : vector<1x80x256xf32> to vector<80x256xf32>
    %cst_50 = arith.constant dense<0.000000e+00> : vector<16x256xf32>
    %68 = tpu.matmul %65, %67, %cst_50 {dimension_numbers = #tpu.dot_dimension_numbers<[1], [0], [0], [1], [0, 0, 1, 1], [], []>} : vector<16x80xf32>, vector<80x256xf32>, vector<16x256xf32> -> vector<16x256xf32>
    %69 = arith.addf %64, %68 : vector<16x256xf32>
    %c0_51 = arith.constant 0 : index
    %c5_52 = arith.constant 5 : index
    %70 = vector.load %arg11[%c0_51, %c5_52] : memref<18x90xf32, #tpu.memory_space<vmem>>, vector<16x80xf32>
    %c1_53 = arith.constant 1 : index
    %c0_54 = arith.constant 0 : index
    %c0_55 = arith.constant 0 : index
    %71 = vector.load %arg6[%c1_53, %c0_54, %c0_55] : memref<9x80x256xf32, #tpu.memory_space<vmem>>, vector<1x80x256xf32>
    %72 = vector.shape_cast %71 : vector<1x80x256xf32> to vector<80x256xf32>
    %cst_56 = arith.constant dense<0.000000e+00> : vector<16x256xf32>
    %73 = tpu.matmul %70, %72, %cst_56 {dimension_numbers = #tpu.dot_dimension_numbers<[1], [0], [0], [1], [0, 0, 1, 1], [], []>} : vector<16x80xf32>, vector<80x256xf32>, vector<16x256xf32> -> vector<16x256xf32>
    %74 = arith.addf %69, %73 : vector<16x256xf32>
    %c0_57 = arith.constant 0 : index
    %c10 = arith.constant 10 : index
    %75 = vector.load %arg11[%c0_57, %c10] : memref<18x90xf32, #tpu.memory_space<vmem>>, vector<16x80xf32>
    %c2_58 = arith.constant 2 : index
    %c0_59 = arith.constant 0 : index
    %c0_60 = arith.constant 0 : index
    %76 = vector.load %arg6[%c2_58, %c0_59, %c0_60] : memref<9x80x256xf32, #tpu.memory_space<vmem>>, vector<1x80x256xf32>
    %77 = vector.shape_cast %76 : vector<1x80x256xf32> to vector<80x256xf32>
    %cst_61 = arith.constant dense<0.000000e+00> : vector<16x256xf32>
    %78 = tpu.matmul %75, %77, %cst_61 {dimension_numbers = #tpu.dot_dimension_numbers<[1], [0], [0], [1], [0, 0, 1, 1], [], []>} : vector<16x80xf32>, vector<80x256xf32>, vector<16x256xf32> -> vector<16x256xf32>
    %79 = arith.addf %74, %78 : vector<16x256xf32>
    %c1_62 = arith.constant 1 : index
    %c0_63 = arith.constant 0 : index
    %80 = vector.load %arg11[%c1_62, %c0_63] : memref<18x90xf32, #tpu.memory_space<vmem>>, vector<16x80xf32>
    %c3_64 = arith.constant 3 : index
    %c0_65 = arith.constant 0 : index
    %c0_66 = arith.constant 0 : index
    %81 = vector.load %arg6[%c3_64, %c0_65, %c0_66] : memref<9x80x256xf32, #tpu.memory_space<vmem>>, vector<1x80x256xf32>
    %82 = vector.shape_cast %81 : vector<1x80x256xf32> to vector<80x256xf32>
    %cst_67 = arith.constant dense<0.000000e+00> : vector<16x256xf32>
    %83 = tpu.matmul %80, %82, %cst_67 {dimension_numbers = #tpu.dot_dimension_numbers<[1], [0], [0], [1], [0, 0, 1, 1], [], []>} : vector<16x80xf32>, vector<80x256xf32>, vector<16x256xf32> -> vector<16x256xf32>
    %84 = arith.addf %79, %83 : vector<16x256xf32>
    %c1_68 = arith.constant 1 : index
    %c5_69 = arith.constant 5 : index
    %85 = vector.load %arg11[%c1_68, %c5_69] : memref<18x90xf32, #tpu.memory_space<vmem>>, vector<16x80xf32>
    %c4_70 = arith.constant 4 : index
    %c0_71 = arith.constant 0 : index
    %c0_72 = arith.constant 0 : index
    %86 = vector.load %arg6[%c4_70, %c0_71, %c0_72] : memref<9x80x256xf32, #tpu.memory_space<vmem>>, vector<1x80x256xf32>
    %87 = vector.shape_cast %86 : vector<1x80x256xf32> to vector<80x256xf32>
    %cst_73 = arith.constant dense<0.000000e+00> : vector<16x256xf32>
    %88 = tpu.matmul %85, %87, %cst_73 {dimension_numbers = #tpu.dot_dimension_numbers<[1], [0], [0], [1], [0, 0, 1, 1], [], []>} : vector<16x80xf32>, vector<80x256xf32>, vector<16x256xf32> -> vector<16x256xf32>
    %89 = arith.addf %84, %88 : vector<16x256xf32>
    %c1_74 = arith.constant 1 : index
    %c10_75 = arith.constant 10 : index
    %90 = vector.load %arg11[%c1_74, %c10_75] : memref<18x90xf32, #tpu.memory_space<vmem>>, vector<16x80xf32>
    %c5_76 = arith.constant 5 : index
    %c0_77 = arith.constant 0 : index
    %c0_78 = arith.constant 0 : index
    %91 = vector.load %arg6[%c5_76, %c0_77, %c0_78] : memref<9x80x256xf32, #tpu.memory_space<vmem>>, vector<1x80x256xf32>
    %92 = vector.shape_cast %91 : vector<1x80x256xf32> to vector<80x256xf32>
    %cst_79 = arith.constant dense<0.000000e+00> : vector<16x256xf32>
    %93 = tpu.matmul %90, %92, %cst_79 {dimension_numbers = #tpu.dot_dimension_numbers<[1], [0], [0], [1], [0, 0, 1, 1], [], []>} : vector<16x80xf32>, vector<80x256xf32>, vector<16x256xf32> -> vector<16x256xf32>
    %94 = arith.addf %89, %93 : vector<16x256xf32>
    %c2_80 = arith.constant 2 : index
    %c0_81 = arith.constant 0 : index
    %95 = vector.load %arg11[%c2_80, %c0_81] : memref<18x90xf32, #tpu.memory_space<vmem>>, vector<16x80xf32>
    %c6_82 = arith.constant 6 : index
    %c0_83 = arith.constant 0 : index
    %c0_84 = arith.constant 0 : index
    %96 = vector.load %arg6[%c6_82, %c0_83, %c0_84] : memref<9x80x256xf32, #tpu.memory_space<vmem>>, vector<1x80x256xf32>
    %97 = vector.shape_cast %96 : vector<1x80x256xf32> to vector<80x256xf32>
    %cst_85 = arith.constant dense<0.000000e+00> : vector<16x256xf32>
    %98 = tpu.matmul %95, %97, %cst_85 {dimension_numbers = #tpu.dot_dimension_numbers<[1], [0], [0], [1], [0, 0, 1, 1], [], []>} : vector<16x80xf32>, vector<80x256xf32>, vector<16x256xf32> -> vector<16x256xf32>
    %99 = arith.addf %94, %98 : vector<16x256xf32>
    %c2_86 = arith.constant 2 : index
    %c5_87 = arith.constant 5 : index
    %100 = vector.load %arg11[%c2_86, %c5_87] : memref<18x90xf32, #tpu.memory_space<vmem>>, vector<16x80xf32>
    %c7_88 = arith.constant 7 : index
    %c0_89 = arith.constant 0 : index
    %c0_90 = arith.constant 0 : index
    %101 = vector.load %arg6[%c7_88, %c0_89, %c0_90] : memref<9x80x256xf32, #tpu.memory_space<vmem>>, vector<1x80x256xf32>
    %102 = vector.shape_cast %101 : vector<1x80x256xf32> to vector<80x256xf32>
    %cst_91 = arith.constant dense<0.000000e+00> : vector<16x256xf32>
    %103 = tpu.matmul %100, %102, %cst_91 {dimension_numbers = #tpu.dot_dimension_numbers<[1], [0], [0], [1], [0, 0, 1, 1], [], []>} : vector<16x80xf32>, vector<80x256xf32>, vector<16x256xf32> -> vector<16x256xf32>
    %104 = arith.addf %99, %103 : vector<16x256xf32>
    %c2_92 = arith.constant 2 : index
    %c10_93 = arith.constant 10 : index
    %105 = vector.load %arg11[%c2_92, %c10_93] : memref<18x90xf32, #tpu.memory_space<vmem>>, vector<16x80xf32>
    %c8_94 = arith.constant 8 : index
    %c0_95 = arith.constant 0 : index
    %c0_96 = arith.constant 0 : index
    %106 = vector.load %arg6[%c8_94, %c0_95, %c0_96] : memref<9x80x256xf32, #tpu.memory_space<vmem>>, vector<1x80x256xf32>
    %107 = vector.shape_cast %106 : vector<1x80x256xf32> to vector<80x256xf32>
    %cst_97 = arith.constant dense<0.000000e+00> : vector<16x256xf32>
    %108 = tpu.matmul %105, %107, %cst_97 {dimension_numbers = #tpu.dot_dimension_numbers<[1], [0], [0], [1], [0, 0, 1, 1], [], []>} : vector<16x80xf32>, vector<80x256xf32>, vector<16x256xf32> -> vector<16x256xf32>
    %109 = arith.addf %104, %108 : vector<16x256xf32>
    %c0_98 = arith.constant 0 : index
    %c0_99 = arith.constant 0 : index
    %110 = vector.load %arg7[%c0_98, %c0_99] : memref<1x256xf32, #tpu.memory_space<vmem>>, vector<1x256xf32>
    %111 = vector.broadcast %110 : vector<1x256xf32> to vector<16x256xf32>
    %112 = arith.addf %109, %111 : vector<16x256xf32>
    %cst_100 = arith.constant 0.000000e+00 : f32
    %113 = vector.broadcast %cst_100 : f32 to vector<16x256xf32>
    %114 = arith.maximumf %112, %113 : vector<16x256xf32>
    %115 = vector.extract_strided_slice %114 {offsets = [0, 0], sizes = [16, 80], strides = [1, 1]} : vector<16x256xf32> to vector<16x80xf32>
    %116 = vector.extract_strided_slice %114 {offsets = [0, 128], sizes = [16, 80], strides = [1, 1]} : vector<16x256xf32> to vector<16x80xf32>
    %117 = arith.maximumf %115, %116 : vector<16x80xf32>
    %c0_101 = arith.constant 0 : index
    %c0_102 = arith.constant 0 : index
    %118 = vector.load %arg8[%c0_101, %c0_102] : memref<8x16xf32, #tpu.memory_space<vmem>>, vector<8x16xf32>
    %cst_103 = arith.constant dense<0.000000e+00> : vector<8x80xf32>
    %119 = tpu.matmul %118, %117, %cst_103 {dimension_numbers = #tpu.dot_dimension_numbers<[1], [0], [0], [1], [0, 0, 1, 1], [], []>} : vector<8x16xf32>, vector<16x80xf32>, vector<8x80xf32> -> vector<8x80xf32>
    %c0_104 = arith.constant 0 : index
    %c0_105 = arith.constant 0 : index
    %120 = vector.load %arg9[%c0_104, %c0_105] : memref<8x16xf32, #tpu.memory_space<vmem>>, vector<8x16xf32>
    %cst_106 = arith.constant dense<0.000000e+00> : vector<8x80xf32>
    %121 = tpu.matmul %120, %117, %cst_106 {dimension_numbers = #tpu.dot_dimension_numbers<[1], [0], [0], [1], [0, 0, 1, 1], [], []>} : vector<8x16xf32>, vector<16x80xf32>, vector<8x80xf32> -> vector<8x80xf32>
    %122 = arith.maximumf %119, %121 : vector<8x80xf32>
    %c0_107 = arith.constant 0 : index
    %c0_108 = arith.constant 0 : index
    %c0_109 = arith.constant 0 : index
    %123 = vector.load %arg10[%c0_107, %c0_108, %c0_109] : memref<2x8x80xf32, #tpu.memory_space<vmem>>, vector<1x8x80xf32>
    %124 = vector.shape_cast %123 : vector<1x8x80xf32> to vector<8x80xf32>
    %125 = vector.shape_cast %122 : vector<8x80xf32> to vector<1x8x80xf32>
    tpu.vector_store %arg10[%c0_107, %c0_108, %c0_109], %125 {strides = array<i32>} : memref<2x8x80xf32, #tpu.memory_space<vmem>>, vector<1x8x80xf32>,
    %c1_110 = arith.constant 1 : index
    %c0_111 = arith.constant 0 : index
    %c0_112 = arith.constant 0 : index
    %126 = vector.load %arg1[%c1_110, %c0_111, %c0_112] : memref<2x34x102xf32, #tpu.memory_space<vmem>>, vector<1x34x102xf32>
    %127 = vector.shape_cast %126 : vector<1x34x102xf32> to vector<34x102xf32>
    %cst_113 = arith.constant 0.000000e+00 : f32
    %128 = vector.broadcast %cst_113 : f32 to vector<32x256xf32>
    %129 = vector.extract_strided_slice %127 {offsets = [0, 0], sizes = [32, 96], strides = [1, 1]} : vector<34x102xf32> to vector<32x96xf32>
    %c0_114 = arith.constant 0 : index
    %c0_115 = arith.constant 0 : index
    %c0_116 = arith.constant 0 : index
    %130 = vector.load %arg2[%c0_114, %c0_115, %c0_116] : memref<9x96x256xf32, #tpu.memory_space<vmem>>, vector<1x96x256xf32>
    %131 = vector.shape_cast %130 : vector<1x96x256xf32> to vector<96x256xf32>
    %cst_117 = arith.constant dense<0.000000e+00> : vector<32x256xf32>
    %132 = tpu.matmul %129, %131, %cst_117 {dimension_numbers = #tpu.dot_dimension_numbers<[1], [0], [0], [1], [0, 0, 1, 1], [], []>} : vector<32x96xf32>, vector<96x256xf32>, vector<32x256xf32> -> vector<32x256xf32>
    %133 = arith.addf %128, %132 : vector<32x256xf32>
    %134 = vector.extract_strided_slice %127 {offsets = [0, 3], sizes = [32, 96], strides = [1, 1]} : vector<34x102xf32> to vector<32x96xf32>
    %c1_118 = arith.constant 1 : index
    %c0_119 = arith.constant 0 : index
    %c0_120 = arith.constant 0 : index
    %135 = vector.load %arg2[%c1_118, %c0_119, %c0_120] : memref<9x96x256xf32, #tpu.memory_space<vmem>>, vector<1x96x256xf32>
    %136 = vector.shape_cast %135 : vector<1x96x256xf32> to vector<96x256xf32>
    %cst_121 = arith.constant dense<0.000000e+00> : vector<32x256xf32>
    %137 = tpu.matmul %134, %136, %cst_121 {dimension_numbers = #tpu.dot_dimension_numbers<[1], [0], [0], [1], [0, 0, 1, 1], [], []>} : vector<32x96xf32>, vector<96x256xf32>, vector<32x256xf32> -> vector<32x256xf32>
    %138 = arith.addf %133, %137 : vector<32x256xf32>
    %139 = vector.extract_strided_slice %127 {offsets = [0, 6], sizes = [32, 96], strides = [1, 1]} : vector<34x102xf32> to vector<32x96xf32>
    %c2_122 = arith.constant 2 : index
    %c0_123 = arith.constant 0 : index
    %c0_124 = arith.constant 0 : index
    %140 = vector.load %arg2[%c2_122, %c0_123, %c0_124] : memref<9x96x256xf32, #tpu.memory_space<vmem>>, vector<1x96x256xf32>
    %141 = vector.shape_cast %140 : vector<1x96x256xf32> to vector<96x256xf32>
    %cst_125 = arith.constant dense<0.000000e+00> : vector<32x256xf32>
    %142 = tpu.matmul %139, %141, %cst_125 {dimension_numbers = #tpu.dot_dimension_numbers<[1], [0], [0], [1], [0, 0, 1, 1], [], []>} : vector<32x96xf32>, vector<96x256xf32>, vector<32x256xf32> -> vector<32x256xf32>
    %143 = arith.addf %138, %142 : vector<32x256xf32>
    %144 = vector.extract_strided_slice %127 {offsets = [1, 0], sizes = [32, 96], strides = [1, 1]} : vector<34x102xf32> to vector<32x96xf32>
    %c3_126 = arith.constant 3 : index
    %c0_127 = arith.constant 0 : index
    %c0_128 = arith.constant 0 : index
    %145 = vector.load %arg2[%c3_126, %c0_127, %c0_128] : memref<9x96x256xf32, #tpu.memory_space<vmem>>, vector<1x96x256xf32>
    %146 = vector.shape_cast %145 : vector<1x96x256xf32> to vector<96x256xf32>
    %cst_129 = arith.constant dense<0.000000e+00> : vector<32x256xf32>
    %147 = tpu.matmul %144, %146, %cst_129 {dimension_numbers = #tpu.dot_dimension_numbers<[1], [0], [0], [1], [0, 0, 1, 1], [], []>} : vector<32x96xf32>, vector<96x256xf32>, vector<32x256xf32> -> vector<32x256xf32>
    %148 = arith.addf %143, %147 : vector<32x256xf32>
    %149 = vector.extract_strided_slice %127 {offsets = [1, 3], sizes = [32, 96], strides = [1, 1]} : vector<34x102xf32> to vector<32x96xf32>
    %c4_130 = arith.constant 4 : index
    %c0_131 = arith.constant 0 : index
    %c0_132 = arith.constant 0 : index
    %150 = vector.load %arg2[%c4_130, %c0_131, %c0_132] : memref<9x96x256xf32, #tpu.memory_space<vmem>>, vector<1x96x256xf32>
    %151 = vector.shape_cast %150 : vector<1x96x256xf32> to vector<96x256xf32>
    %cst_133 = arith.constant dense<0.000000e+00> : vector<32x256xf32>
    %152 = tpu.matmul %149, %151, %cst_133 {dimension_numbers = #tpu.dot_dimension_numbers<[1], [0], [0], [1], [0, 0, 1, 1], [], []>} : vector<32x96xf32>, vector<96x256xf32>, vector<32x256xf32> -> vector<32x256xf32>
    %153 = arith.addf %148, %152 : vector<32x256xf32>
    %154 = vector.extract_strided_slice %127 {offsets = [1, 6], sizes = [32, 96], strides = [1, 1]} : vector<34x102xf32> to vector<32x96xf32>
    %c5_134 = arith.constant 5 : index
    %c0_135 = arith.constant 0 : index
    %c0_136 = arith.constant 0 : index
    %155 = vector.load %arg2[%c5_134, %c0_135, %c0_136] : memref<9x96x256xf32, #tpu.memory_space<vmem>>, vector<1x96x256xf32>
    %156 = vector.shape_cast %155 : vector<1x96x256xf32> to vector<96x256xf32>
    %cst_137 = arith.constant dense<0.000000e+00> : vector<32x256xf32>
    %157 = tpu.matmul %154, %156, %cst_137 {dimension_numbers = #tpu.dot_dimension_numbers<[1], [0], [0], [1], [0, 0, 1, 1], [], []>} : vector<32x96xf32>, vector<96x256xf32>, vector<32x256xf32> -> vector<32x256xf32>
    %158 = arith.addf %153, %157 : vector<32x256xf32>
    %159 = vector.extract_strided_slice %127 {offsets = [2, 0], sizes = [32, 96], strides = [1, 1]} : vector<34x102xf32> to vector<32x96xf32>
    %c6_138 = arith.constant 6 : index
    %c0_139 = arith.constant 0 : index
    %c0_140 = arith.constant 0 : index
    %160 = vector.load %arg2[%c6_138, %c0_139, %c0_140] : memref<9x96x256xf32, #tpu.memory_space<vmem>>, vector<1x96x256xf32>
    %161 = vector.shape_cast %160 : vector<1x96x256xf32> to vector<96x256xf32>
    %cst_141 = arith.constant dense<0.000000e+00> : vector<32x256xf32>
    %162 = tpu.matmul %159, %161, %cst_141 {dimension_numbers = #tpu.dot_dimension_numbers<[1], [0], [0], [1], [0, 0, 1, 1], [], []>} : vector<32x96xf32>, vector<96x256xf32>, vector<32x256xf32> -> vector<32x256xf32>
    %163 = arith.addf %158, %162 : vector<32x256xf32>
    %164 = vector.extract_strided_slice %127 {offsets = [2, 3], sizes = [32, 96], strides = [1, 1]} : vector<34x102xf32> to vector<32x96xf32>
    %c7_142 = arith.constant 7 : index
    %c0_143 = arith.constant 0 : index
    %c0_144 = arith.constant 0 : index
    %165 = vector.load %arg2[%c7_142, %c0_143, %c0_144] : memref<9x96x256xf32, #tpu.memory_space<vmem>>, vector<1x96x256xf32>
    %166 = vector.shape_cast %165 : vector<1x96x256xf32> to vector<96x256xf32>
    %cst_145 = arith.constant dense<0.000000e+00> : vector<32x256xf32>
    %167 = tpu.matmul %164, %166, %cst_145 {dimension_numbers = #tpu.dot_dimension_numbers<[1], [0], [0], [1], [0, 0, 1, 1], [], []>} : vector<32x96xf32>, vector<96x256xf32>, vector<32x256xf32> -> vector<32x256xf32>
    %168 = arith.addf %163, %167 : vector<32x256xf32>
    %169 = vector.extract_strided_slice %127 {offsets = [2, 6], sizes = [32, 96], strides = [1, 1]} : vector<34x102xf32> to vector<32x96xf32>
    %c8_146 = arith.constant 8 : index
    %c0_147 = arith.constant 0 : index
    %c0_148 = arith.constant 0 : index
    %170 = vector.load %arg2[%c8_146, %c0_147, %c0_148] : memref<9x96x256xf32, #tpu.memory_space<vmem>>, vector<1x96x256xf32>
    %171 = vector.shape_cast %170 : vector<1x96x256xf32> to vector<96x256xf32>
    %cst_149 = arith.constant dense<0.000000e+00> : vector<32x256xf32>
    %172 = tpu.matmul %169, %171, %cst_149 {dimension_numbers = #tpu.dot_dimension_numbers<[1], [0], [0], [1], [0, 0, 1, 1], [], []>} : vector<32x96xf32>, vector<96x256xf32>, vector<32x256xf32> -> vector<32x256xf32>
    %173 = arith.addf %168, %172 : vector<32x256xf32>
    %c0_150 = arith.constant 0 : index
    %c0_151 = arith.constant 0 : index
    %174 = vector.load %arg3[%c0_150, %c0_151] : memref<1x256xf32, #tpu.memory_space<vmem>>, vector<1x256xf32>
    %175 = vector.broadcast %174 : vector<1x256xf32> to vector<32x256xf32>
    %176 = arith.addf %173, %175 : vector<32x256xf32>
    %cst_152 = arith.constant 0.000000e+00 : f32
    %177 = vector.broadcast %cst_152 : f32 to vector<32x256xf32>
    %178 = arith.maximumf %176, %177 : vector<32x256xf32>
    %179 = vector.extract_strided_slice %178 {offsets = [0, 0], sizes = [32, 80], strides = [1, 1]} : vector<32x256xf32> to vector<32x80xf32>
    %180 = vector.extract_strided_slice %178 {offsets = [0, 128], sizes = [32, 80], strides = [1, 1]} : vector<32x256xf32> to vector<32x80xf32>
    %181 = arith.maximumf %179, %180 : vector<32x80xf32>
    %c0_153 = arith.constant 0 : index
    %c0_154 = arith.constant 0 : index
    %182 = vector.load %arg4[%c0_153, %c0_154] : memref<16x32xf32, #tpu.memory_space<vmem>>, vector<16x32xf32>
    %cst_155 = arith.constant dense<0.000000e+00> : vector<16x80xf32>
    %183 = tpu.matmul %182, %181, %cst_155 {dimension_numbers = #tpu.dot_dimension_numbers<[1], [0], [0], [1], [0, 0, 1, 1], [], []>} : vector<16x32xf32>, vector<32x80xf32>, vector<16x80xf32> -> vector<16x80xf32>
    %c0_156 = arith.constant 0 : index
    %c0_157 = arith.constant 0 : index
    %184 = vector.load %arg5[%c0_156, %c0_157] : memref<16x32xf32, #tpu.memory_space<vmem>>, vector<16x32xf32>
    %cst_158 = arith.constant dense<0.000000e+00> : vector<16x80xf32>
    %185 = tpu.matmul %184, %181, %cst_158 {dimension_numbers = #tpu.dot_dimension_numbers<[1], [0], [0], [1], [0, 0, 1, 1], [], []>} : vector<16x32xf32>, vector<32x80xf32>, vector<16x80xf32> -> vector<16x80xf32>
    %186 = arith.maximumf %183, %185 : vector<16x80xf32>
    %cst_159 = arith.constant 0.000000e+00 : f32
    %187 = vector.broadcast %cst_159 : f32 to vector<18x90xf32>
    %c0_160 = arith.constant 0 : index
    %c0_161 = arith.constant 0 : index
    %188 = vector.load %arg11[%c0_160, %c0_161] : memref<18x90xf32, #tpu.memory_space<vmem>>, vector<18x90xf32>
    tpu.vector_store %arg11[%c0_160, %c0_161], %187 {strides = array<i32>} : memref<18x90xf32, #tpu.memory_space<vmem>>, vector<18x90xf32>,
    %c1_162 = arith.constant 1 : index
    %c5_163 = arith.constant 5 : index
    %189 = vector.load %arg11[%c1_162, %c5_163] : memref<18x90xf32, #tpu.memory_space<vmem>>, vector<16x80xf32>
    tpu.vector_store %arg11[%c1_162, %c5_163], %186 {strides = array<i32>} : memref<18x90xf32, #tpu.memory_space<vmem>>, vector<16x80xf32>,
    %cst_164 = arith.constant 0.000000e+00 : f32
    %190 = vector.broadcast %cst_164 : f32 to vector<16x256xf32>
    %c0_165 = arith.constant 0 : index
    %c0_166 = arith.constant 0 : index
    %191 = vector.load %arg11[%c0_165, %c0_166] : memref<18x90xf32, #tpu.memory_space<vmem>>, vector<16x80xf32>
    %c0_167 = arith.constant 0 : index
    %c0_168 = arith.constant 0 : index
    %c0_169 = arith.constant 0 : index
    %192 = vector.load %arg6[%c0_167, %c0_168, %c0_169] : memref<9x80x256xf32, #tpu.memory_space<vmem>>, vector<1x80x256xf32>
    %193 = vector.shape_cast %192 : vector<1x80x256xf32> to vector<80x256xf32>
    %cst_170 = arith.constant dense<0.000000e+00> : vector<16x256xf32>
    %194 = tpu.matmul %191, %193, %cst_170 {dimension_numbers = #tpu.dot_dimension_numbers<[1], [0], [0], [1], [0, 0, 1, 1], [], []>} : vector<16x80xf32>, vector<80x256xf32>, vector<16x256xf32> -> vector<16x256xf32>
    %195 = arith.addf %190, %194 : vector<16x256xf32>
    %c0_171 = arith.constant 0 : index
    %c5_172 = arith.constant 5 : index
    %196 = vector.load %arg11[%c0_171, %c5_172] : memref<18x90xf32, #tpu.memory_space<vmem>>, vector<16x80xf32>
    %c1_173 = arith.constant 1 : index
    %c0_174 = arith.constant 0 : index
    %c0_175 = arith.constant 0 : index
    %197 = vector.load %arg6[%c1_173, %c0_174, %c0_175] : memref<9x80x256xf32, #tpu.memory_space<vmem>>, vector<1x80x256xf32>
    %198 = vector.shape_cast %197 : vector<1x80x256xf32> to vector<80x256xf32>
    %cst_176 = arith.constant dense<0.000000e+00> : vector<16x256xf32>
    %199 = tpu.matmul %196, %198, %cst_176 {dimension_numbers = #tpu.dot_dimension_numbers<[1], [0], [0], [1], [0, 0, 1, 1], [], []>} : vector<16x80xf32>, vector<80x256xf32>, vector<16x256xf32> -> vector<16x256xf32>
    %200 = arith.addf %195, %199 : vector<16x256xf32>
    %c0_177 = arith.constant 0 : index
    %c10_178 = arith.constant 10 : index
    %201 = vector.load %arg11[%c0_177, %c10_178] : memref<18x90xf32, #tpu.memory_space<vmem>>, vector<16x80xf32>
    %c2_179 = arith.constant 2 : index
    %c0_180 = arith.constant 0 : index
    %c0_181 = arith.constant 0 : index
    %202 = vector.load %arg6[%c2_179, %c0_180, %c0_181] : memref<9x80x256xf32, #tpu.memory_space<vmem>>, vector<1x80x256xf32>
    %203 = vector.shape_cast %202 : vector<1x80x256xf32> to vector<80x256xf32>
    %cst_182 = arith.constant dense<0.000000e+00> : vector<16x256xf32>
    %204 = tpu.matmul %201, %203, %cst_182 {dimension_numbers = #tpu.dot_dimension_numbers<[1], [0], [0], [1], [0, 0, 1, 1], [], []>} : vector<16x80xf32>, vector<80x256xf32>, vector<16x256xf32> -> vector<16x256xf32>
    %205 = arith.addf %200, %204 : vector<16x256xf32>
    %c1_183 = arith.constant 1 : index
    %c0_184 = arith.constant 0 : index
    %206 = vector.load %arg11[%c1_183, %c0_184] : memref<18x90xf32, #tpu.memory_space<vmem>>, vector<16x80xf32>
    %c3_185 = arith.constant 3 : index
    %c0_186 = arith.constant 0 : index
    %c0_187 = arith.constant 0 : index
    %207 = vector.load %arg6[%c3_185, %c0_186, %c0_187] : memref<9x80x256xf32, #tpu.memory_space<vmem>>, vector<1x80x256xf32>
    %208 = vector.shape_cast %207 : vector<1x80x256xf32> to vector<80x256xf32>
    %cst_188 = arith.constant dense<0.000000e+00> : vector<16x256xf32>
    %209 = tpu.matmul %206, %208, %cst_188 {dimension_numbers = #tpu.dot_dimension_numbers<[1], [0], [0], [1], [0, 0, 1, 1], [], []>} : vector<16x80xf32>, vector<80x256xf32>, vector<16x256xf32> -> vector<16x256xf32>
    %210 = arith.addf %205, %209 : vector<16x256xf32>
    %c1_189 = arith.constant 1 : index
    %c5_190 = arith.constant 5 : index
    %211 = vector.load %arg11[%c1_189, %c5_190] : memref<18x90xf32, #tpu.memory_space<vmem>>, vector<16x80xf32>
    %c4_191 = arith.constant 4 : index
    %c0_192 = arith.constant 0 : index
    %c0_193 = arith.constant 0 : index
    %212 = vector.load %arg6[%c4_191, %c0_192, %c0_193] : memref<9x80x256xf32, #tpu.memory_space<vmem>>, vector<1x80x256xf32>
    %213 = vector.shape_cast %212 : vector<1x80x256xf32> to vector<80x256xf32>
    %cst_194 = arith.constant dense<0.000000e+00> : vector<16x256xf32>
    %214 = tpu.matmul %211, %213, %cst_194 {dimension_numbers = #tpu.dot_dimension_numbers<[1], [0], [0], [1], [0, 0, 1, 1], [], []>} : vector<16x80xf32>, vector<80x256xf32>, vector<16x256xf32> -> vector<16x256xf32>
    %215 = arith.addf %210, %214 : vector<16x256xf32>
    %c1_195 = arith.constant 1 : index
    %c10_196 = arith.constant 10 : index
    %216 = vector.load %arg11[%c1_195, %c10_196] : memref<18x90xf32, #tpu.memory_space<vmem>>, vector<16x80xf32>
    %c5_197 = arith.constant 5 : index
    %c0_198 = arith.constant 0 : index
    %c0_199 = arith.constant 0 : index
    %217 = vector.load %arg6[%c5_197, %c0_198, %c0_199] : memref<9x80x256xf32, #tpu.memory_space<vmem>>, vector<1x80x256xf32>
    %218 = vector.shape_cast %217 : vector<1x80x256xf32> to vector<80x256xf32>
    %cst_200 = arith.constant dense<0.000000e+00> : vector<16x256xf32>
    %219 = tpu.matmul %216, %218, %cst_200 {dimension_numbers = #tpu.dot_dimension_numbers<[1], [0], [0], [1], [0, 0, 1, 1], [], []>} : vector<16x80xf32>, vector<80x256xf32>, vector<16x256xf32> -> vector<16x256xf32>
    %220 = arith.addf %215, %219 : vector<16x256xf32>
    %c2_201 = arith.constant 2 : index
    %c0_202 = arith.constant 0 : index
    %221 = vector.load %arg11[%c2_201, %c0_202] : memref<18x90xf32, #tpu.memory_space<vmem>>, vector<16x80xf32>
    %c6_203 = arith.constant 6 : index
    %c0_204 = arith.constant 0 : index
    %c0_205 = arith.constant 0 : index
    %222 = vector.load %arg6[%c6_203, %c0_204, %c0_205] : memref<9x80x256xf32, #tpu.memory_space<vmem>>, vector<1x80x256xf32>
    %223 = vector.shape_cast %222 : vector<1x80x256xf32> to vector<80x256xf32>
    %cst_206 = arith.constant dense<0.000000e+00> : vector<16x256xf32>
    %224 = tpu.matmul %221, %223, %cst_206 {dimension_numbers = #tpu.dot_dimension_numbers<[1], [0], [0], [1], [0, 0, 1, 1], [], []>} : vector<16x80xf32>, vector<80x256xf32>, vector<16x256xf32> -> vector<16x256xf32>
    %225 = arith.addf %220, %224 : vector<16x256xf32>
    %c2_207 = arith.constant 2 : index
    %c5_208 = arith.constant 5 : index
    %226 = vector.load %arg11[%c2_207, %c5_208] : memref<18x90xf32, #tpu.memory_space<vmem>>, vector<16x80xf32>
    %c7_209 = arith.constant 7 : index
    %c0_210 = arith.constant 0 : index
    %c0_211 = arith.constant 0 : index
    %227 = vector.load %arg6[%c7_209, %c0_210, %c0_211] : memref<9x80x256xf32, #tpu.memory_space<vmem>>, vector<1x80x256xf32>
    %228 = vector.shape_cast %227 : vector<1x80x256xf32> to vector<80x256xf32>
    %cst_212 = arith.constant dense<0.000000e+00> : vector<16x256xf32>
    %229 = tpu.matmul %226, %228, %cst_212 {dimension_numbers = #tpu.dot_dimension_numbers<[1], [0], [0], [1], [0, 0, 1, 1], [], []>} : vector<16x80xf32>, vector<80x256xf32>, vector<16x256xf32> -> vector<16x256xf32>
    %230 = arith.addf %225, %229 : vector<16x256xf32>
    %c2_213 = arith.constant 2 : index
    %c10_214 = arith.constant 10 : index
    %231 = vector.load %arg11[%c2_213, %c10_214] : memref<18x90xf32, #tpu.memory_space<vmem>>, vector<16x80xf32>
    %c8_215 = arith.constant 8 : index
    %c0_216 = arith.constant 0 : index
    %c0_217 = arith.constant 0 : index
    %232 = vector.load %arg6[%c8_215, %c0_216, %c0_217] : memref<9x80x256xf32, #tpu.memory_space<vmem>>, vector<1x80x256xf32>
    %233 = vector.shape_cast %232 : vector<1x80x256xf32> to vector<80x256xf32>
    %cst_218 = arith.constant dense<0.000000e+00> : vector<16x256xf32>
    %234 = tpu.matmul %231, %233, %cst_218 {dimension_numbers = #tpu.dot_dimension_numbers<[1], [0], [0], [1], [0, 0, 1, 1], [], []>} : vector<16x80xf32>, vector<80x256xf32>, vector<16x256xf32> -> vector<16x256xf32>
    %235 = arith.addf %230, %234 : vector<16x256xf32>
    %c0_219 = arith.constant 0 : index
    %c0_220 = arith.constant 0 : index
    %236 = vector.load %arg7[%c0_219, %c0_220] : memref<1x256xf32, #tpu.memory_space<vmem>>, vector<1x256xf32>
    %237 = vector.broadcast %236 : vector<1x256xf32> to vector<16x256xf32>
    %238 = arith.addf %235, %237 : vector<16x256xf32>
    %cst_221 = arith.constant 0.000000e+00 : f32
    %239 = vector.broadcast %cst_221 : f32 to vector<16x256xf32>
    %240 = arith.maximumf %238, %239 : vector<16x256xf32>
    %241 = vector.extract_strided_slice %240 {offsets = [0, 0], sizes = [16, 80], strides = [1, 1]} : vector<16x256xf32> to vector<16x80xf32>
    %242 = vector.extract_strided_slice %240 {offsets = [0, 128], sizes = [16, 80], strides = [1, 1]} : vector<16x256xf32> to vector<16x80xf32>
    %243 = arith.maximumf %241, %242 : vector<16x80xf32>
    %c0_222 = arith.constant 0 : index
    %c0_223 = arith.constant 0 : index
    %244 = vector.load %arg8[%c0_222, %c0_223] : memref<8x16xf32, #tpu.memory_space<vmem>>, vector<8x16xf32>
    %cst_224 = arith.constant dense<0.000000e+00> : vector<8x80xf32>
    %245 = tpu.matmul %244, %243, %cst_224 {dimension_numbers = #tpu.dot_dimension_numbers<[1], [0], [0], [1], [0, 0, 1, 1], [], []>} : vector<8x16xf32>, vector<16x80xf32>, vector<8x80xf32> -> vector<8x80xf32>
    %c0_225 = arith.constant 0 : index
    %c0_226 = arith.constant 0 : index
    %246 = vector.load %arg9[%c0_225, %c0_226] : memref<8x16xf32, #tpu.memory_space<vmem>>, vector<8x16xf32>
    %cst_227 = arith.constant dense<0.000000e+00> : vector<8x80xf32>
    %247 = tpu.matmul %246, %243, %cst_227 {dimension_numbers = #tpu.dot_dimension_numbers<[1], [0], [0], [1], [0, 0, 1, 1], [], []>} : vector<8x16xf32>, vector<16x80xf32>, vector<8x80xf32> -> vector<8x80xf32>
    %248 = arith.maximumf %245, %247 : vector<8x80xf32>
    %c1_228 = arith.constant 1 : index
    %c0_229 = arith.constant 0 : index
    %c0_230 = arith.constant 0 : index
    %249 = vector.load %arg10[%c1_228, %c0_229, %c0_230] : memref<2x8x80xf32, #tpu.memory_space<vmem>>, vector<1x8x80xf32>
    %250 = vector.shape_cast %249 : vector<1x8x80xf32> to vector<8x80xf32>
    %251 = vector.shape_cast %248 : vector<8x80xf32> to vector<1x8x80xf32>
    tpu.vector_store %arg10[%c1_228, %c0_229, %c0_230], %251 {strides = array<i32>} : memref<2x8x80xf32, #tpu.memory_space<vmem>>, vector<1x8x80xf32>,
    return
  }
  func.func @transform_0(%arg0: i32) -> (i32, i32, i32) {
    %c0_i32 = arith.constant 0 : i32
    %c0_i32_0 = arith.constant 0 : i32
    %c0_i32_1 = arith.constant 0 : i32
    return %arg0, %c0_i32, %c0_i32_0 : i32, i32, i32
  }
  func.func @transform_1(%arg0: i32) -> (i32, i32, i32) {
    %c0_i32 = arith.constant 0 : i32
    %c0_i32_0 = arith.constant 0 : i32
    %c0_i32_1 = arith.constant 0 : i32
    %c0_i32_2 = arith.constant 0 : i32
    return %c0_i32, %c0_i32_0, %c0_i32_1 : i32, i32, i32
  }
  func.func @transform_2(%arg0: i32) -> (i32, i32) {
    %c0_i32 = arith.constant 0 : i32
    %c0_i32_0 = arith.constant 0 : i32
    %c0_i32_1 = arith.constant 0 : i32
    return %c0_i32, %c0_i32_0 : i32, i32
  }
  func.func @transform_3(%arg0: i32) -> (i32, i32) {
    %c0_i32 = arith.constant 0 : i32
    %c0_i32_0 = arith.constant 0 : i32
    %c0_i32_1 = arith.constant 0 : i32
    return %c0_i32, %c0_i32_0 : i32, i32
  }
  func.func @transform_4(%arg0: i32) -> (i32, i32) {
    %c0_i32 = arith.constant 0 : i32
    %c0_i32_0 = arith.constant 0 : i32
    %c0_i32_1 = arith.constant 0 : i32
    return %c0_i32, %c0_i32_0 : i32, i32
  }
  func.func @transform_5(%arg0: i32) -> (i32, i32, i32) {
    %c0_i32 = arith.constant 0 : i32
    %c0_i32_0 = arith.constant 0 : i32
    %c0_i32_1 = arith.constant 0 : i32
    %c0_i32_2 = arith.constant 0 : i32
    return %c0_i32, %c0_i32_0, %c0_i32_1 : i32, i32, i32
  }
  func.func @transform_6(%arg0: i32) -> (i32, i32) {
    %c0_i32 = arith.constant 0 : i32
    %c0_i32_0 = arith.constant 0 : i32
    %c0_i32_1 = arith.constant 0 : i32
    return %c0_i32, %c0_i32_0 : i32, i32
  }
  func.func @transform_7(%arg0: i32) -> (i32, i32) {
    %c0_i32 = arith.constant 0 : i32
    %c0_i32_0 = arith.constant 0 : i32
    %c0_i32_1 = arith.constant 0 : i32
    return %c0_i32, %c0_i32_0 : i32, i32
  }
  func.func @transform_8(%arg0: i32) -> (i32, i32) {
    %c0_i32 = arith.constant 0 : i32
    %c0_i32_0 = arith.constant 0 : i32
    %c0_i32_1 = arith.constant 0 : i32
    return %c0_i32, %c0_i32_0 : i32, i32
  }
  func.func @transform_9(%arg0: i32) -> (i32, i32, i32) {
    %c0_i32 = arith.constant 0 : i32
    %c0_i32_0 = arith.constant 0 : i32
    %c0_i32_1 = arith.constant 0 : i32
    return %arg0, %c0_i32, %c0_i32_0 : i32, i32, i32
  }
}

module attributes {stable_mosaic.version = 11 : i64} {
  func.func @mlp_softmax_kernel(%arg0: i32, %arg1: memref<2x640xf32, #tpu.memory_space<vmem>>, %arg2: memref<640x160xf32, #tpu.memory_space<vmem>>, %arg3: memref<1x160xf32, #tpu.memory_space<vmem>>, %arg4: memref<160x80xf32, #tpu.memory_space<vmem>>, %arg5: memref<1x80xf32, #tpu.memory_space<vmem>>, %arg6: memref<80x10xf32, #tpu.memory_space<vmem>>, %arg7: memref<1x10xf32, #tpu.memory_space<vmem>>, %arg8: memref<2x10xf32, #tpu.memory_space<vmem>>) attributes {dimension_semantics = [#tpu.dimension_semantics<parallel>], iteration_bounds = array<i64: 1>, scalar_prefetch = 0 : i64, scratch_operands = 0 : i64, tpu.core_type = #tpu.core_type<tc>, window_params = [{transform_indices = @transform_0, window_bounds = array<i64: 2, 640>}, {pipeline_mode = #tpu.pipeline_mode<synchronous>, transform_indices = @transform_1, window_bounds = array<i64: 640, 160>}, {pipeline_mode = #tpu.pipeline_mode<synchronous>, transform_indices = @transform_2, window_bounds = array<i64: 1, 160>}, {pipeline_mode = #tpu.pipeline_mode<synchronous>, transform_indices = @transform_3, window_bounds = array<i64: 160, 80>}, {pipeline_mode = #tpu.pipeline_mode<synchronous>, transform_indices = @transform_4, window_bounds = array<i64: 1, 80>}, {pipeline_mode = #tpu.pipeline_mode<synchronous>, transform_indices = @transform_5, window_bounds = array<i64: 80, 10>}, {pipeline_mode = #tpu.pipeline_mode<synchronous>, transform_indices = @transform_6, window_bounds = array<i64: 1, 10>}, {transform_indices = @transform_7, window_bounds = array<i64: 2, 10>}]} {
    %c0 = arith.constant 0 : index
    %c0_0 = arith.constant 0 : index
    %0 = vector.load %arg1[%c0, %c0_0] : memref<2x640xf32, #tpu.memory_space<vmem>>, vector<2x640xf32>
    %c0_1 = arith.constant 0 : index
    %c0_2 = arith.constant 0 : index
    %1 = vector.load %arg2[%c0_1, %c0_2] : memref<640x160xf32, #tpu.memory_space<vmem>>, vector<640x160xf32>
    %cst = arith.constant dense<0.000000e+00> : vector<2x160xf32>
    %2 = tpu.matmul %0, %1, %cst {dimension_numbers = #tpu.dot_dimension_numbers<[1], [0], [0], [1], [0, 0, 1, 1], [], []>} : vector<2x640xf32>, vector<640x160xf32>, vector<2x160xf32> -> vector<2x160xf32>
    %c0_3 = arith.constant 0 : index
    %c0_4 = arith.constant 0 : index
    %3 = vector.load %arg3[%c0_3, %c0_4] : memref<1x160xf32, #tpu.memory_space<vmem>>, vector<1x160xf32>
    %4 = vector.broadcast %3 : vector<1x160xf32> to vector<2x160xf32>
    %5 = arith.addf %2, %4 : vector<2x160xf32>
    %cst_5 = arith.constant 0.000000e+00 : f32
    %6 = vector.broadcast %cst_5 : f32 to vector<2x160xf32>
    %7 = arith.maximumf %5, %6 : vector<2x160xf32>
    %c0_6 = arith.constant 0 : index
    %c0_7 = arith.constant 0 : index
    %8 = vector.load %arg4[%c0_6, %c0_7] : memref<160x80xf32, #tpu.memory_space<vmem>>, vector<160x80xf32>
    %cst_8 = arith.constant dense<0.000000e+00> : vector<2x80xf32>
    %9 = tpu.matmul %7, %8, %cst_8 {dimension_numbers = #tpu.dot_dimension_numbers<[1], [0], [0], [1], [0, 0, 1, 1], [], []>} : vector<2x160xf32>, vector<160x80xf32>, vector<2x80xf32> -> vector<2x80xf32>
    %c0_9 = arith.constant 0 : index
    %c0_10 = arith.constant 0 : index
    %10 = vector.load %arg5[%c0_9, %c0_10] : memref<1x80xf32, #tpu.memory_space<vmem>>, vector<1x80xf32>
    %11 = vector.broadcast %10 : vector<1x80xf32> to vector<2x80xf32>
    %12 = arith.addf %9, %11 : vector<2x80xf32>
    %cst_11 = arith.constant 0.000000e+00 : f32
    %13 = vector.broadcast %cst_11 : f32 to vector<2x80xf32>
    %14 = arith.maximumf %12, %13 : vector<2x80xf32>
    %c0_12 = arith.constant 0 : index
    %c0_13 = arith.constant 0 : index
    %15 = vector.load %arg6[%c0_12, %c0_13] : memref<80x10xf32, #tpu.memory_space<vmem>>, vector<80x10xf32>
    %cst_14 = arith.constant dense<0.000000e+00> : vector<2x10xf32>
    %16 = tpu.matmul %14, %15, %cst_14 {dimension_numbers = #tpu.dot_dimension_numbers<[1], [0], [0], [1], [0, 0, 1, 1], [], []>} : vector<2x80xf32>, vector<80x10xf32>, vector<2x10xf32> -> vector<2x10xf32>
    %c0_15 = arith.constant 0 : index
    %c0_16 = arith.constant 0 : index
    %17 = vector.load %arg7[%c0_15, %c0_16] : memref<1x10xf32, #tpu.memory_space<vmem>>, vector<1x10xf32>
    %18 = vector.broadcast %17 : vector<1x10xf32> to vector<2x10xf32>
    %19 = arith.addf %16, %18 : vector<2x10xf32>
    %cst_17 = arith.constant dense<0xFF800000> : vector<2xf32>
    %20 = vector.multi_reduction <maximumf>, %19, %cst_17 [1] : vector<2x10xf32> to vector<2xf32>
    %21 = vector.shape_cast %20 : vector<2xf32> to vector<2x1xf32>
    %22 = vector.broadcast %21 : vector<2x1xf32> to vector<2x10xf32>
    %23 = arith.subf %19, %22 : vector<2x10xf32>
    %24 = math.exp %23 : vector<2x10xf32>
    %cst_18 = arith.constant dense<0.000000e+00> : vector<2xf32>
    %25 = vector.multi_reduction <add>, %24, %cst_18 [1] : vector<2x10xf32> to vector<2xf32>
    %26 = vector.shape_cast %25 : vector<2xf32> to vector<2x1xf32>
    %27 = tpu.reciprocal %26 {approx = true} : vector<2x1xf32> -> vector<2x1xf32>
    %28 = vector.broadcast %27 : vector<2x1xf32> to vector<2x10xf32>
    %29 = arith.mulf %24, %28 : vector<2x10xf32>
    %c0_19 = arith.constant 0 : index
    %c0_20 = arith.constant 0 : index
    %30 = vector.load %arg8[%c0_19, %c0_20] : memref<2x10xf32, #tpu.memory_space<vmem>>, vector<2x10xf32>
    tpu.vector_store %arg8[%c0_19, %c0_20], %29 {strides = array<i32>} : memref<2x10xf32, #tpu.memory_space<vmem>>, vector<2x10xf32>,
    return
  }
  func.func @transform_0(%arg0: i32) -> (i32, i32) {
    %c0_i32 = arith.constant 0 : i32
    %c0_i32_0 = arith.constant 0 : i32
    return %arg0, %c0_i32 : i32, i32
  }
  func.func @transform_1(%arg0: i32) -> (i32, i32) {
    %c0_i32 = arith.constant 0 : i32
    %c0_i32_0 = arith.constant 0 : i32
    %c0_i32_1 = arith.constant 0 : i32
    return %c0_i32, %c0_i32_0 : i32, i32
  }
  func.func @transform_2(%arg0: i32) -> (i32, i32) {
    %c0_i32 = arith.constant 0 : i32
    %c0_i32_0 = arith.constant 0 : i32
    %c0_i32_1 = arith.constant 0 : i32
    return %c0_i32, %c0_i32_0 : i32, i32
  }
  func.func @transform_3(%arg0: i32) -> (i32, i32) {
    %c0_i32 = arith.constant 0 : i32
    %c0_i32_0 = arith.constant 0 : i32
    %c0_i32_1 = arith.constant 0 : i32
    return %c0_i32, %c0_i32_0 : i32, i32
  }
  func.func @transform_4(%arg0: i32) -> (i32, i32) {
    %c0_i32 = arith.constant 0 : i32
    %c0_i32_0 = arith.constant 0 : i32
    %c0_i32_1 = arith.constant 0 : i32
    return %c0_i32, %c0_i32_0 : i32, i32
  }
  func.func @transform_5(%arg0: i32) -> (i32, i32) {
    %c0_i32 = arith.constant 0 : i32
    %c0_i32_0 = arith.constant 0 : i32
    %c0_i32_1 = arith.constant 0 : i32
    return %c0_i32, %c0_i32_0 : i32, i32
  }
  func.func @transform_6(%arg0: i32) -> (i32, i32) {
    %c0_i32 = arith.constant 0 : i32
    %c0_i32_0 = arith.constant 0 : i32
    %c0_i32_1 = arith.constant 0 : i32
    return %c0_i32, %c0_i32_0 : i32, i32
  }
  func.func @transform_7(%arg0: i32) -> (i32, i32) {
    %c0_i32 = arith.constant 0 : i32
    %c0_i32_0 = arith.constant 0 : i32
    return %arg0, %c0_i32 : i32, i32
  }
}

</mosaic_0001>

<bundles_post_ra>
// kernel: convnn_forward.3
= control target key start
LH: loop header
LB: loop body
LE: loop exit
PB: predicated region body
PF: predicated region fallthrough
CT: control target
= control target key end

     0   :  { %s1235_s0 = inlined_call_operand.vmem [shape: f32[2,640], index: 0, kind: input, shape index: {}]   ;;  %s1236_s1 = inlined_call_operand.vmem [shape: f32[640,160], index: 1, kind: input, shape index: {}]   ;;  %s1237_s2 = inlined_call_operand.vmem [shape: f32[1,160], index: 2, kind: input, shape index: {}]   ;;  %s1238_s3 = inlined_call_operand.vmem [shape: f32[160,80], index: 3, kind: input, shape index: {}]   ;;  %s1239_s4 = inlined_call_operand.vmem [shape: f32[1,80], index: 4, kind: input, shape index: {}]   ;;  %s1240_s5 = inlined_call_operand.vmem [shape: f32[80,10], index: 5, kind: input, shape index: {}]   ;;  %s1241_s6 = inlined_call_operand.vmem [shape: f32[1,10], index: 6, kind: input, shape index: {}]   ;;  %s1242_s7 = inlined_call_operand.hbm [shape: f32[2,10], index: 7, kind: output, shape index: {}]  }
   0x1   :  { %v59_v0 = vld [vmem:[%s1236_s1 + $0xf0] sm:$0xff]  ;;  %v57_v1 = vld [vmem:[%s1236_s1 + $0xe0] sm:$0xff]  ;;  %v60_v56 = vld [vmem:[%s1236_s1 + $0xf8] sm:$0xff] }
   0x2   :  { %v91_v2 = vld [vmem:[%s1236_s1 + $0x1f0] sm:$0xff]  ;;  %210 = vmatpush.msra.mxu0 %v59_v0  ;;  %v89_v3 = vld [vmem:[%s1236_s1 + $0x1e0] sm:$0xff]  ;;  %v58_v60 = vld [vmem:[%s1236_s1 + $0xe8] sm:$0xff] }
   0x3   :  { %230 = vmatpush.msra.mxu1 %v91_v2  ;;  %v55_v4 = vld [vmem:[%s1236_s1 + $0xd0] sm:$0xff]  ;;  %v53_v6 = vld [vmem:[%s1236_s1 + $0xc0] sm:$0xff]  ;;  %v56_v0 = vld [vmem:[%s1236_s1 + $0xd8] sm:$0xff] }
   0x4   :  { %v87_v5 = vld [vmem:[%s1236_s1 + $0x1d0] sm:$0xff]  ;;  %211 = vmatpush.msra.mxu0 %v57_v1  ;;  %v85_v7 = vld [vmem:[%s1236_s1 + $0x1c0] sm:$0xff] }
   0x5   :  { %231 = vmatpush.msra.mxu1 %v89_v3  ;;  %v51_v8 = vld [vmem:[%s1236_s1 + $0xb0] sm:$0xff]  ;;  %v49_v10 = vld [vmem:[%s1236_s1 + $0xa0] sm:$0xff] }
   0x6   :  { %212 = vmatpush.msra.mxu0 %v55_v4  ;;  %v83_v9 = vld [vmem:[%s1236_s1 + $0x1b0] sm:$0xff]  ;;  %v81_v12 = vld [vmem:[%s1236_s1 + $0x1a0] sm:$0xff] }
   0x7   :  { %232 = vmatpush.msra.mxu1 %v87_v5  ;;  %v123_v11 = vld [vmem:[%s1236_s1 + $0x2f0] sm:$0xff]  ;;  %v121_v13 = vld [vmem:[%s1236_s1 + $0x2e0] sm:$0xff]  ;;  %v54_v5 = vld [vmem:[%s1236_s1 + $0xc8] sm:$0xff] }
   0x8   :  { %213 = vmatpush.msra.mxu0 %v53_v6  ;;  %250 = vmatpush.msra.mxu2 %v123_v11  ;;  %v155_v14 = vld [vmem:[%s1236_s1 + $0x3f0] sm:$0xff]  ;;  %v153_v16 = vld [vmem:[%s1236_s1 + $0x3e0] sm:$0xff] }
   0x9   :  { %233 = vmatpush.msra.mxu1 %v85_v7  ;;  %v119_v15 = vld [vmem:[%s1236_s1 + $0x2d0] sm:$0xff]  ;;  %270 = vmatpush.msra.mxu3 %v155_v14  ;;  %v117_v19 = vld [vmem:[%s1236_s1 + $0x2c0] sm:$0xff]  ;;  %v90_v14 = vld [vmem:[%s1236_s1 + $0x1e8] sm:$0xff] }
   0xa   :  { %214 = vmatpush.msra.mxu0 %v51_v8  ;;  %v47_v17 = vld [vmem:[%s1236_s1 + $0x90] sm:$0xff]  ;;  %251 = vmatpush.msra.mxu2 %v121_v13  ;;  %v45_v21 = vld [vmem:[%s1236_s1 + $0x80] sm:$0xff]  ;;  %v50_v13 = vld [vmem:[%s1236_s1 + $0xa8] sm:$0xff] }
   0xb   :  { %234 = vmatpush.msra.mxu1 %v83_v9  ;;  %v79_v18 = vld [vmem:[%s1236_s1 + $0x190] sm:$0xff]  ;;  %v77_v22 = vld [vmem:[%s1236_s1 + $0x180] sm:$0xff]  ;;  %271 = vmatpush.msra.mxu3 %v153_v16  ;;  %v52_v9 = vld [vmem:[%s1236_s1 + $0xb8] sm:$0xff] }
   0xc   :  { %215 = vmatpush.msra.mxu0 %v49_v10  ;;  %v151_v20 = vld [vmem:[%s1236_s1 + $0x3d0] sm:$0xff]  ;;  %252 = vmatpush.msra.mxu2 %v119_v15  ;;  %v149_v24 = vld [vmem:[%s1236_s1 + $0x3c0] sm:$0xff]  ;;  %v92_v10 = vld [vmem:[%s1236_s1 + $0x1f8] sm:$0xff] }
   0xd   :  { %235 = vmatpush.msra.mxu1 %v81_v12  ;;  %v115_v23 = vld [vmem:[%s1236_s1 + $0x2b0] sm:$0xff]  ;;  %272 = vmatpush.msra.mxu3 %v151_v20  ;;  %v113_v27 = vld [vmem:[%s1236_s1 + $0x2a0] sm:$0xff]  ;;  %v124_v15 = vld [vmem:[%s1236_s1 + $0x2f8] sm:$0xff] }
   0xe   :  { %216 = vmatpush.msra.mxu0 %v47_v17  ;;  %v43_v25 = vld [vmem:[%s1236_s1 + $0x70] sm:$0xff]  ;;  %253 = vmatpush.msra.mxu2 %v117_v19  ;;  %v41_v29 = vld [vmem:[%s1236_s1 + $0x60] sm:$0xff]  ;;  %v28_v16 = vld [vmem:[%s1235_s0 + $0x8] sm:$0x3] }
   0xf   :  { %236 = vmatpush.msra.mxu1 %v79_v18  ;;  %v75_v26 = vld [vmem:[%s1236_s1 + $0x170] sm:$0xff]  ;;  %v73_v30 = vld [vmem:[%s1236_s1 + $0x160] sm:$0xff]  ;;  %273 = vmatpush.msra.mxu3 %v149_v24  ;;  %v48_v18 = vld [vmem:[%s1236_s1 + $0x98] sm:$0xff]  ;;  %199 = vst [vmem:[#allocation1 + $0x20] ss:$4 sm:$0xff] %v28_v16 }
  0x10   :  { %217 = vmatpush.msra.mxu0 %v45_v21  ;;  %v147_v28 = vld [vmem:[%s1236_s1 + $0x3b0] sm:$0xff]  ;;  %254 = vmatpush.msra.mxu2 %v115_v23  ;;  %v145_v32 = vld [vmem:[%s1236_s1 + $0x3a0] sm:$0xff]  ;;  %v88_v19 = vld [vmem:[%s1236_s1 + $0x1d8] sm:$0xff] }
  0x11   :  { %237 = vmatpush.msra.mxu1 %v77_v22  ;;  %v111_v31 = vld [vmem:[%s1236_s1 + $0x290] sm:$0xff]  ;;  %274 = vmatpush.msra.mxu3 %v147_v28  ;;  %v109_v35 = vld [vmem:[%s1236_s1 + $0x280] sm:$0xff]  ;;  %v122_v20 = vld [vmem:[%s1236_s1 + $0x2e8] sm:$0xff] }
  0x12   :  { %218 = vmatpush.msra.mxu0 %v43_v25  ;;  %v39_v33 = vld [vmem:[%s1236_s1 + $0x50] sm:$0xff]  ;;  %255 = vmatpush.msra.mxu2 %v113_v27  ;;  %v37_v37 = vld [vmem:[%s1236_s1 + $0x40] sm:$0xff]  ;;  %v46_v22 = vld [vmem:[%s1236_s1 + $0x88] sm:$0xff] }
  0x13   :  { %238 = vmatpush.msra.mxu1 %v75_v26  ;;  %v71_v34 = vld [vmem:[%s1236_s1 + $0x150] sm:$0xff]  ;;  %v69_v38 = vld [vmem:[%s1236_s1 + $0x140] sm:$0xff]  ;;  %275 = vmatpush.msra.mxu3 %v145_v32  ;;  %v86_v23 = vld [vmem:[%s1236_s1 + $0x1c8] sm:$0xff] }
  0x14   :  { %219 = vmatpush.msra.mxu0 %v41_v29  ;;  %v143_v36 = vld [vmem:[%s1236_s1 + $0x390] sm:$0xff]  ;;  %256 = vmatpush.msra.mxu2 %v111_v31  ;;  %v141_v40 = vld [vmem:[%s1236_s1 + $0x380] sm:$0xff]  ;;  %v120_v24 = vld [vmem:[%s1236_s1 + $0x2d8] sm:$0xff] }
  0x15   :  { %239 = vmatpush.msra.mxu1 %v73_v30  ;;  %v107_v39 = vld [vmem:[%s1236_s1 + $0x270] sm:$0xff]  ;;  %276 = vmatpush.msra.mxu3 %v143_v36  ;;  %v105_v43 = vld [vmem:[%s1236_s1 + $0x260] sm:$0xff]  ;;  %v44_v26 = vld [vmem:[%s1236_s1 + $0x78] sm:$0xff] }
  0x16   :  { %220 = vmatpush.msra.mxu0 %v39_v33  ;;  %v35_v41 = vld [vmem:[%s1236_s1 + $0x30] sm:$0xff]  ;;  %257 = vmatpush.msra.mxu2 %v109_v35  ;;  %v33_v45 = vld [vmem:[%s1236_s1 + $0x20] sm:$0xff]  ;;  %v118_v28 = vld [vmem:[%s1236_s1 + $0x2c8] sm:$0xff] }
  0x17   :  { %240 = vmatpush.msra.mxu1 %v71_v34  ;;  %v67_v42 = vld [vmem:[%s1236_s1 + $0x130] sm:$0xff]  ;;  %v65_v46 = vld [vmem:[%s1236_s1 + $0x120] sm:$0xff]  ;;  %277 = vmatpush.msra.mxu3 %v141_v40  ;;  %v42_v30 = vld [vmem:[%s1236_s1 + $0x68] sm:$0xff] }
  0x18   :  { %221 = vmatpush.msra.mxu0 %v37_v37  ;;  %v139_v44 = vld [vmem:[%s1236_s1 + $0x370] sm:$0xff]  ;;  %258 = vmatpush.msra.mxu2 %v107_v39  ;;  %v137_v48 = vld [vmem:[%s1236_s1 + $0x360] sm:$0xff]  ;;  %v84_v31 = vld [vmem:[%s1236_s1 + $0x1b8] sm:$0xff] }
  0x19   :  { %241 = vmatpush.msra.mxu1 %v69_v38  ;;  %v103_v47 = vld [vmem:[%s1236_s1 + $0x250] sm:$0xff]  ;;  %278 = vmatpush.msra.mxu3 %v139_v44  ;;  %v101_v51 = vld [vmem:[%s1236_s1 + $0x240] sm:$0xff]  ;;  %v40_v34 = vld [vmem:[%s1236_s1 + $0x58] sm:$0xff] }
  0x1a   :  { %222 = vmatpush.msra.mxu0 %v35_v41  ;;  %v31_v49 = vld [vmem:[%s1236_s1 + $0x10] sm:$0xff]  ;;  %259 = vmatpush.msra.mxu2 %v105_v43  ;;  %v29_v53 = vld [vmem:[%s1236_s1] sm:$0xff]  ;;  %v82_v36 = vld [vmem:[%s1236_s1 + $0x1a8] sm:$0xff] }
  0x1b   :  { %242 = vmatpush.msra.mxu1 %v67_v42  ;;  %v63_v50 = vld [vmem:[%s1236_s1 + $0x110] sm:$0xff]  ;;  %v61_v54 = vld [vmem:[%s1236_s1 + $0x100] sm:$0xff]  ;;  %279 = vmatpush.msra.mxu3 %v137_v48  ;;  %v38_v38 = vld [vmem:[%s1236_s1 + $0x48] sm:$0xff] }
  0x1c   :  { %223 = vmatpush.msra.mxu0 %v33_v45  ;;  %v135_v52 = vld [vmem:[%s1236_s1 + $0x350] sm:$0xff]  ;;  %260 = vmatpush.msra.mxu2 %v103_v47  ;;  %v133_v58 = vld [vmem:[%s1236_s1 + $0x340] sm:$0xff]  ;;  %v116_v40 = vld [vmem:[%s1236_s1 + $0x2b8] sm:$0xff] }
  0x1d   :  { %243 = vmatpush.msra.mxu1 %v65_v46  ;;  %v187_v55 = vld [vmem:[%s1236_s1 + $0x4f0] sm:$0xff]  ;;  %280 = vmatpush.msra.mxu3 %v135_v52  ;;  %v185_v59 = vld [vmem:[%s1236_s1 + $0x4e0] sm:$0xff]  ;;  %v36_v42 = vld [vmem:[%s1236_s1 + $0x38] sm:$0xff] }
  0x1e   :  { %224 = vmatpush.msra.mxu0 %v31_v49  ;;  %261 = vmatpush.msra.mxu2 %v101_v51  ;;  %v99_v57 = vld [vmem:[%s1236_s1 + $0x230] sm:$0xff]  ;;  %v97_v61 = vld [vmem:[%s1236_s1 + $0x220] sm:$0xff]  ;;  %v80_v43 = vld [vmem:[%s1236_s1 + $0x198] sm:$0xff] }
  0x1f   :  { %244 = vmatpush.msra.mxu1 %v63_v50  ;;  %v131_v62 = vld [vmem:[%s1236_s1 + $0x330] sm:$0xff]  ;;  %281 = vmatpush.msra.mxu3 %v133_v58  ;;  %v27_v1 = vld [vmem:[%s1235_s0] sm:$0xff]  ;;  %v114_v44 = vld [vmem:[%s1236_s1 + $0x2a8] sm:$0xff] }
  0x20   :  { %225 = vmatpush.msra.mxu0 %v29_v53  ;;  %v183_v63 = vld [vmem:[%s1236_s1 + $0x4d0] sm:$0xff]  ;;  %262 = vmatpush.msra.mxu2 %v99_v57  ;;  %v129_v3 = vld [vmem:[%s1236_s1 + $0x320] sm:$0xff]  ;;  %197 = vst [vmem:[#allocation1] ss:$4 sm:$0xff] %v27_v1 }
  0x21   :  { %245 = vmatpush.msra.mxu1 %v61_v54  ;;  %v95_v2 = vld [vmem:[%s1236_s1 + $0x210] sm:$0xff]  ;;  %v181_v4 = vld [vmem:[%s1236_s1 + $0x4c0] sm:$0xff]  ;;  %282 = vmatpush.msra.mxu3 %v131_v62 }
  0x22   :  { %290 = vmatpush.msrb.mxu0 %v187_v55  ;;  %263 = vmatpush.msra.mxu2 %v97_v61  ;;  %v93_v6 = vld [vmem:[%s1236_s1 + $0x200] sm:$0xff]  ;;  %v127_v7 = vld [vmem:[%s1236_s1 + $0x310] sm:$0xff] }
  0x23   :  { %310 = vmatpush.msrb.mxu1 %v60_v56  ;;  %v179_v8 = vld [vmem:[%s1236_s1 + $0x4b0] sm:$0xff]  ;;  %283 = vmatpush.msra.mxu3 %v129_v3  ;;  %v125_v11 = vld [vmem:[%s1236_s1 + $0x300] sm:$0xff] }
  0x24   :  { %291 = vmatpush.msrb.mxu0 %v185_v59  ;;  %264 = vmatpush.msra.mxu2 %v95_v2  ;;  %v177_v12 = vld [vmem:[%s1236_s1 + $0x4a0] sm:$0xff]  ;;  %v175_v17 = vld [vmem:[%s1236_s1 + $0x490] sm:$0xff] }
  0x25   :  { %311 = vmatpush.msrb.mxu1 %v58_v60  ;;  %284 = vmatpush.msra.mxu3 %v127_v7  ;;  %v173_v21 = vld [vmem:[%s1236_s1 + $0x480] sm:$0xff]  ;;  %v171_v25 = vld [vmem:[%s1236_s1 + $0x470] sm:$0xff] }
  0x26   :  { %292 = vmatpush.msrb.mxu0 %v183_v63  ;;  %265 = vmatpush.msra.mxu2 %v93_v6  ;;  %v169_v29 = vld [vmem:[%s1236_s1 + $0x460] sm:$0xff]  ;;  %v167_v33 = vld [vmem:[%s1236_s1 + $0x450] sm:$0xff] }
  0x27   :  { %312 = vmatpush.msrb.mxu1 %v56_v0  ;;  %285 = vmatpush.msra.mxu3 %v125_v11  ;;  %v897_v27 = vld.sshfl [vmem:[#allocation1 + $0x10] sm:$0xff pattern:$0x73625140]  ;;  %v911_v32 = vld.sshfl [vmem:[#allocation1] sm:$0xff pattern:$0x73625140] }
  0x28   :  { %293 = vmatpush.msrb.mxu0 %v181_v4  ;;  %330 = vmatpush.msrb.mxu2 %v92_v10  ;;  %v920_v35 = vld.sshfl [vmem:[#allocation1 + $0x18] sm:$0xff pattern:$0x73625140]  ;;  %v165_v37 = vld [vmem:[%s1236_s1 + $0x440] sm:$0xff]  ;;  %v163_v39 = vld [vmem:[%s1236_s1 + $0x430] sm:$0xff] }
  0x29   :  { %313 = vmatpush.msrb.mxu1 %v54_v5  ;;  %350 = vmatpush.msrb.mxu3 %v124_v15  ;;  %v938_v41 = vld.sshfl [vmem:[#allocation1 + $0x8] sm:$0xff pattern:$0x73625140] }
  0x2a   :  { %294 = vmatpush.msrb.mxu0 %v179_v8  ;;  %331 = vmatpush.msrb.mxu2 %v90_v14 }
  0x2b   :  { %314 = vmatpush.msrb.mxu1 %v52_v9  ;;  %351 = vmatpush.msrb.mxu3 %v122_v20 }
  0x2c   :  { %295 = vmatpush.msrb.mxu0 %v177_v12  ;;  %332 = vmatpush.msrb.mxu2 %v88_v19 }
  0x2d   :  { %315 = vmatpush.msrb.mxu1 %v50_v13  ;;  %352 = vmatpush.msrb.mxu3 %v120_v24 }
  0x2e   :  { %296 = vmatpush.msrb.mxu0 %v175_v17  ;;  %333 = vmatpush.msrb.mxu2 %v86_v23 }
  0x2f   :  { %316 = vmatpush.msrb.mxu1 %v48_v18  ;;  %266 = vmatmul.f32.vlgmr.msra.gmra.mxu2 %v897_v27 }
  0x30   :  { %297 = vmatpush.msrb.mxu0 %v173_v21  ;;  %353 = vmatpush.msrb.mxu3 %v118_v28 }
  0x31   :  { %317 = vmatpush.msrb.mxu1 %v46_v22  ;;  %334 = vmatpush.msrb.mxu2 %v84_v31 }
  0x32   :  { %298 = vmatpush.msrb.mxu0 %v171_v25  ;;  %286 = vmatmul.f32.vlgmr.msra.gmra.mxu3 %v920_v35 }
  0x33   :  { %318 = vmatpush.msrb.mxu1 %v44_v26  ;;  %226 = vmatmul.f32.vlgmr.msra.gmra.mxu0 %v911_v32 }
  0x34   :  { %299 = vmatpush.msrb.mxu0 %v169_v29  ;;  %335 = vmatpush.msrb.mxu2 %v82_v36 }
  0x35   :  { %319 = vmatpush.msrb.mxu1 %v42_v30 }
  0x36   :  { %300 = vmatpush.msrb.mxu0 %v167_v33 }
  0x37   :  { %320 = vmatpush.msrb.mxu1 %v40_v34 }
  0x38   :  { %301 = vmatpush.msrb.mxu0 %v165_v37 }
  0x39   :  { %321 = vmatpush.msrb.mxu1 %v38_v38 }
  0x3a   :  { %12 = vsyncpa [#allocation3], 0  ;;  %v161_v45 = vld [vmem:[%s1236_s1 + $0x420] sm:$0xff]  ;;  %v34_v46 = vld [vmem:[%s1236_s1 + $0x28] sm:$0xff]  ;;  %354 = vmatpush.msrb.mxu3 %v116_v40  ;;  %246 = vmatmul.f32.vlgmr.msra.gmra.mxu1 %v938_v41  ;;  %vm436_vm0 = vcmask 261120   ;;  %vm495_vm1 = vcmask 654336  }
  0x3b   :  { %302 = vmatpush.msrb.mxu0 %v163_v39  ;;  %322 = vmatpush.msrb.mxu1 %v36_v42  ;;  %v78_v47 = vld [vmem:[%s1236_s1 + $0x188] sm:$0xff]  ;;  %v112_v48 = vld [vmem:[%s1236_s1 + $0x298] sm:$0xff]  ;;  %v159_v49 = vld [vmem:[%s1236_s1 + $0x410] sm:$0xff]  ;;  %vm519_vm2 = vcmask 74752   ;;  %s539_s0 = sshll.u32 %s1242_s7, 4  ;;  %s540_s0 = int_to_ptr.hbm [resolvable:$true] %s539_s0 }
  0x3c   :  { %v32_v50 = vld [vmem:[%s1236_s1 + $0x18] sm:$0xff]  ;;  %336 = vmatpush.msrb.mxu2 %v80_v43  ;;  %355 = vmatpush.msrb.mxu3 %v114_v44  ;;  %v110_v52 = vld [vmem:[%s1236_s1 + $0x288] sm:$0xff]  ;;  %v157_v53 = vld [vmem:[%s1236_s1 + $0x400] sm:$0xff] }
  0x3d   :  { %303 = vmatpush.msrb.mxu0 %v161_v45  ;;  %323 = vmatpush.msrb.mxu1 %v34_v46  ;;  %v76_v51 = vld [vmem:[%s1236_s1 + $0x178] sm:$0xff]  ;;  %v30_v54 = vld [vmem:[%s1236_s1 + $0x8] sm:$0xff]  ;;  %v987_v57 = vld.sshfl [vmem:[#allocation1 + $0x20] sm:$0xff pattern:$0x73625140] }
  0x3e   :  { %337 = vmatpush.msrb.mxu2 %v78_v47  ;;  %356 = vmatpush.msrb.mxu3 %v112_v48  ;;  %v156_v55 = vld [vmem:[%s1236_s1 + $0x3f8] sm:$0xff]  ;;  %v74_v58 = vld [vmem:[%s1236_s1 + $0x168] sm:$0xff]  ;;  %v426_v31 = vld [vmem:[%s1238_s3 + $0x70] sm:$0xff] }
  0x3f   :  { %304 = vmatpush.msrb.mxu0 %v159_v49  ;;  %324 = vmatpush.msrb.mxu1 %v32_v50  ;;  %v188_v56 = vld [vmem:[%s1236_s1 + $0x4f8] sm:$0xff]  ;;  %v154_v59 = vld [vmem:[%s1236_s1 + $0x3e8] sm:$0xff]  ;;  %v422_v43 = vld [vmem:[%s1238_s3 + $0x50] sm:$0xff] }
  0x40   :  { %338 = vmatpush.msrb.mxu2 %v76_v51  ;;  %357 = vmatpush.msrb.mxu3 %v110_v52  ;;  %v186_v60 = vld [vmem:[%s1236_s1 + $0x4e8] sm:$0xff]  ;;  %v108_v61 = vld [vmem:[%s1236_s1 + $0x278] sm:$0xff]  ;;  %v420_v47 = vld [vmem:[%s1238_s3 + $0x40] sm:$0xff] }
  0x41   :  { %305 = vmatpush.msrb.mxu0 %v157_v53  ;;  %325 = vmatpush.msrb.mxu1 %v30_v54  ;;  %v72_v62 = vld [vmem:[%s1236_s1 + $0x158] sm:$0xff]  ;;  %v106_v1 = vld [vmem:[%s1236_s1 + $0x268] sm:$0xff]  ;;  %v418_v49 = vld [vmem:[%s1238_s3 + $0x30] sm:$0xff] }
  0x42   :  { %v152_v63 = vld [vmem:[%s1236_s1 + $0x3d8] sm:$0xff]  ;;  %306 = vmatmul.f32.vlgmr.msrb.gmra.mxu0 %v987_v57  ;;  %339 = vmatpush.msrb.mxu2 %v74_v58  ;;  %v70_v2 = vld [vmem:[%s1236_s1 + $0x148] sm:$0xff]  ;;  %v416_v50 = vld [vmem:[%s1238_s3 + $0x20] sm:$0xff] }
  0x43   :  { %370 = vmatpush.msra.mxu0 %v156_v55  ;;  %390 = vmatpush.msra.mxu1 %v188_v56  ;;  %v184_v0 = vld [vmem:[%s1236_s1 + $0x4d8] sm:$0xff]  ;;  %v150_v3 = vld [vmem:[%s1236_s1 + $0x3c8] sm:$0xff]  ;;  %v414_v52 = vld [vmem:[%s1238_s3 + $0x10] sm:$0xff] }
  0x44   :  { %358 = vmatpush.msrb.mxu3 %v108_v61  ;;  %v182_v4 = vld [vmem:[%s1236_s1 + $0x4c8] sm:$0xff]  ;;  %340 = vmatpush.msrb.mxu2 %v72_v62  ;;  %v104_v5 = vld [vmem:[%s1236_s1 + $0x258] sm:$0xff]  ;;  %v412_v54 = vld [vmem:[%s1238_s3] sm:$0xff] }
  0x45   :  { %371 = vmatpush.msra.mxu0 %v154_v59  ;;  %391 = vmatpush.msra.mxu1 %v186_v60  ;;  %v68_v6 = vld [vmem:[%s1236_s1 + $0x138] sm:$0xff]  ;;  %v102_v9 = vld [vmem:[%s1236_s1 + $0x248] sm:$0xff]  ;;  %v189_v55 = vld [vmem:[%s1237_s2] sm:$0x3] }
  0x46   :  { %v148_v7 = vld [vmem:[%s1236_s1 + $0x3b8] sm:$0xff]  ;;  %359 = vmatpush.msrb.mxu3 %v106_v1  ;;  %341 = vmatpush.msrb.mxu2 %v70_v2  ;;  %v66_v10 = vld [vmem:[%s1236_s1 + $0x128] sm:$0xff]  ;;  %v191_v56 = vperm.slane %v189_v55, 0  ;;  %v430_v2 = vld [vmem:[%s1238_s3 + $0x90] sm:$0xff] }
  0x47   :  { %372 = vmatpush.msra.mxu0 %v152_v63  ;;  %392 = vmatpush.msra.mxu1 %v184_v0  ;;  %v180_v8 = vld [vmem:[%s1236_s1 + $0x4b8] sm:$0xff]  ;;  %v146_v11 = vld [vmem:[%s1236_s1 + $0x3a8] sm:$0xff] }
  0x48   :  { %360 = vmatpush.msrb.mxu3 %v104_v5  ;;  %v178_v12 = vld [vmem:[%s1236_s1 + $0x4a8] sm:$0xff]  ;;  %342 = vmatpush.msrb.mxu2 %v68_v6  ;;  %v100_v13 = vld [vmem:[%s1236_s1 + $0x238] sm:$0xff] }
  0x49   :  { %373 = vmatpush.msra.mxu0 %v150_v3  ;;  %393 = vmatpush.msra.mxu1 %v182_v4  ;;  %v64_v14 = vld [vmem:[%s1236_s1 + $0x118] sm:$0xff]  ;;  %v98_v17 = vld [vmem:[%s1236_s1 + $0x228] sm:$0xff] }
  0x4a   :  { %v144_v15 = vld [vmem:[%s1236_s1 + $0x398] sm:$0xff]  ;;  %361 = vmatpush.msrb.mxu3 %v102_v9  ;;  %343 = vmatpush.msrb.mxu2 %v66_v10  ;;  %v62_v18 = vld [vmem:[%s1236_s1 + $0x108] sm:$0xff] }
  0x4b   :  { %374 = vmatpush.msra.mxu0 %v148_v7  ;;  %394 = vmatpush.msra.mxu1 %v180_v8  ;;  %v176_v16 = vld [vmem:[%s1236_s1 + $0x498] sm:$0xff]  ;;  %v142_v19 = vld [vmem:[%s1236_s1 + $0x388] sm:$0xff]  ;;  %v428_v7 = vld [vmem:[%s1238_s3 + $0x80] sm:$0xff]  ;;  %v192_v8 = vperm.slane %v189_v55, 1 }
  0x4c   :  { %362 = vmatpush.msrb.mxu3 %v100_v13  ;;  %v174_v20 = vld [vmem:[%s1236_s1 + $0x488] sm:$0xff]  ;;  %344 = vmatpush.msrb.mxu2 %v64_v14  ;;  %v96_v21 = vld [vmem:[%s1236_s1 + $0x218] sm:$0xff] }
  0x4d   :  { %375 = vmatpush.msra.mxu0 %v146_v11  ;;  %395 = vmatpush.msra.mxu1 %v178_v12  ;;  %v140_v22 = vld [vmem:[%s1236_s1 + $0x378] sm:$0xff]  ;;  %v94_v24 = vld [vmem:[%s1236_s1 + $0x208] sm:$0xff] }
  0x4e   :  { %363 = vmatpush.msrb.mxu3 %v98_v17  ;;  %v172_v23 = vld [vmem:[%s1236_s1 + $0x478] sm:$0xff]  ;;  %345 = vmatpush.msrb.mxu2 %v62_v18  ;;  %v138_v25 = vld [vmem:[%s1236_s1 + $0x368] sm:$0xff] }
  0x4f   :  { %376 = vmatpush.msra.mxu0 %v144_v15  ;;  %396 = vmatpush.msra.mxu1 %v176_v16  ;;  %v170_v26 = vld [vmem:[%s1236_s1 + $0x468] sm:$0xff]  ;;  %v427_v28 = vld [vmem:[%s1238_s3 + $0x78] sm:$0xff] }
  0x50   :  { %364 = vmatpush.msrb.mxu3 %v96_v21  ;;  %346 = vmatmul.f32.vlgmr.msrb.gmra.mxu2 %v938_v41  ;;  %v136_v29 = vld [vmem:[%s1236_s1 + $0x358] sm:$0xff]  ;;  %v134_v33 = vld [vmem:[%s1236_s1 + $0x348] sm:$0xff]  ;;  %v489_v21 = vld [vmem:[%s1240_s5 + $0x40] sm:$0xff] }
  0x51   :  { %377 = vmatpush.msra.mxu0 %v142_v19  ;;  %397 = vmatpush.msra.mxu1 %v174_v20  ;;  %v168_v30 = vld [vmem:[%s1236_s1 + $0x458] sm:$0xff]  ;;  %v166_v34 = vld [vmem:[%s1236_s1 + $0x448] sm:$0xff] }
  0x52   :  { %365 = vmatpush.msrb.mxu3 %v94_v24  ;;  %326 = vmatmul.f32.vlgmr.msrb.gmra.mxu1 %v911_v32  ;;  %v425_v32 = vld [vmem:[%s1238_s3 + $0x68] sm:$0xff]  ;;  %v132_v36 = vld [vmem:[%s1236_s1 + $0x338] sm:$0xff] }
  0x53   :  { %378 = vmatpush.msra.mxu0 %v140_v22  ;;  %398 = vmatpush.msra.mxu1 %v172_v23  ;;  %v164_v37 = vld [vmem:[%s1236_s1 + $0x438] sm:$0xff]  ;;  %v130_v38 = vld [vmem:[%s1236_s1 + $0x328] sm:$0xff]  ;;  %v487_v23 = vld [vmem:[%s1240_s5 + $0x30] sm:$0xff] }
  0x54   :  { %366 = vmatmul.f32.vlgmr.msrb.gmra.mxu3 %v897_v27  ;;  %440 = vmatpush.msra.mxu2 %v427_v28  ;;  %v424_v27 = vld [vmem:[%s1238_s3 + $0x60] sm:$0xff]  ;;  %v162_v39 = vld [vmem:[%s1236_s1 + $0x428] sm:$0xff]  ;;  %v423_v40 = vld [vmem:[%s1238_s3 + $0x58] sm:$0xff] }
  0x55   :  { %379 = vmatpush.msra.mxu0 %v138_v25  ;;  %399 = vmatpush.msra.mxu1 %v170_v26  ;;  %v128_v41 = vld [vmem:[%s1236_s1 + $0x318] sm:$0xff]  ;;  %v126_v44 = vld [vmem:[%s1236_s1 + $0x308] sm:$0xff]  ;;  %v485_v25 = vld [vmem:[%s1240_s5 + $0x20] sm:$0xff] }
  0x56   :  { %441 = vmatpush.msra.mxu2 %v426_v31  ;;  %v160_v42 = vld [vmem:[%s1236_s1 + $0x418] sm:$0xff]  ;;  %v158_v45 = vld [vmem:[%s1236_s1 + $0x408] sm:$0xff]  ;;  %v483_v28 = vld [vmem:[%s1240_s5 + $0x10] sm:$0xff] }
  0x57   :  { %380 = vmatpush.msra.mxu0 %v136_v29  ;;  %400 = vmatpush.msra.mxu1 %v168_v30  ;;  %v421_v46 = vld [vmem:[%s1238_s3 + $0x48] sm:$0xff]  ;;  %v419_v48 = vld [vmem:[%s1238_s3 + $0x38] sm:$0xff]  ;;  %v481_v30 = vld [vmem:[%s1240_s5] sm:$0xff] }
  0x58   :  { %442 = vmatpush.msra.mxu2 %v425_v32  ;;  %v415_v51 = vld [vmem:[%s1238_s3 + $0x18] sm:$0xff]  ;;  %v413_v53 = vld [vmem:[%s1238_s3 + $0x8] sm:$0xff]  ;;  %v551_v31 = vld [vmem:[%s1239_s4] ss:$0 sm:$0xff]  ;;  %s583_s4 = smov [#allocation2]  }
  0x59   :  { %381 = vmatpush.msra.mxu0 %v134_v33  ;;  %401 = vmatpush.msra.mxu1 %v166_v34  ;;  %v431_v62 = vld [vmem:[%s1238_s3 + $0x98] sm:$0xff]  ;;  %v429_v5 = vld [vmem:[%s1238_s3 + $0x88] sm:$0xff] }
  0x5a   :  { %443 = vmatpush.msra.mxu2 %v424_v27  ;;  %472 = vmatpush.msra.mxu3 %v431_v62  ;;  %v490_v20 = vld [vmem:[%s1240_s5 + $0x48] sm:$0xff]  ;;  %v488_v22 = vld [vmem:[%s1240_s5 + $0x38] sm:$0xff]  ;;  %v552_v27 = vld [vmem:[%s1241_s6] ss:$0 sm:$0xff] }
  0x5b   :  { %382 = vmatpush.msra.mxu0 %v132_v36  ;;  %402 = vmatpush.msra.mxu1 %v164_v37  ;;  %v486_v24 = vld [vmem:[%s1240_s5 + $0x28] sm:$0xff]  ;;  %v484_v26 = vld [vmem:[%s1240_s5 + $0x18] sm:$0xff] }
  0x5c   :  { %444 = vmatpush.msra.mxu2 %v423_v40  ;;  %473 = vmatpush.msra.mxu3 %v430_v2  ;;  %v482_v29 = vld [vmem:[%s1240_s5 + $0x8] sm:$0xff]  ;;  %s537_s5 = sshll.u32 %s583_s4, 4  ;;  %s538_s5 = int_to_ptr.vmem [resolvable:$true] %s537_s5 }
  0x5d   :  { %383 = vmatpush.msra.mxu0 %v130_v38  ;;  %403 = vmatpush.msra.mxu1 %v162_v39 }
  0x5e   :  { %445 = vmatpush.msra.mxu2 %v422_v43  ;;  %474 = vmatpush.msra.mxu3 %v429_v5 }
  0x5f   :  { %384 = vmatpush.msra.mxu0 %v128_v41  ;;  %404 = vmatpush.msra.mxu1 %v160_v42 }
  0x60   :  { %446 = vmatpush.msra.mxu2 %v421_v46  ;;  %475 = vmatpush.msra.mxu3 %v428_v7 }
  0x61   :  { %385 = vmatpush.msra.mxu0 %v126_v44  ;;  %405 = vmatpush.msra.mxu1 %v158_v45 }
  0x62   :  { %386 = vmatmul.f32.vlgmr.msra.gmra.mxu0 %v920_v35  ;;  %406 = vmatmul.f32.vlgmr.msra.gmra.mxu1 %v987_v57  ;;  %v417_v35 = vld [vmem:[%s1238_s3 + $0x28] sm:$0xff] }
  0x63   :  { %447 = vmatpush.msra.mxu2 %v420_v47  ;;  %505 = vmatpush.msrb.mxu3 %v490_v20 }
  0x65   :  { %448 = vmatpush.msra.mxu2 %v419_v48  ;;  %506 = vmatpush.msrb.mxu3 %v489_v21 }
  0x67   :  { %449 = vmatpush.msra.mxu2 %v418_v49  ;;  %507 = vmatpush.msrb.mxu3 %v488_v22 }
  0x69   :  { %450 = vmatpush.msra.mxu2 %v417_v35  ;;  %508 = vmatpush.msrb.mxu3 %v487_v23 }
  0x6b   :  { %451 = vmatpush.msra.mxu2 %v416_v50  ;;  %509 = vmatpush.msrb.mxu3 %v486_v24 }
  0x6d   :  { %452 = vmatpush.msra.mxu2 %v415_v51  ;;  %510 = vmatpush.msrb.mxu3 %v485_v25 }
  0x6f   :  { %453 = vmatpush.msra.mxu2 %v414_v52  ;;  %511 = vmatpush.msrb.mxu3 %v484_v26 }
  0x71   :  { %454 = vmatpush.msra.mxu2 %v413_v53  ;;  %512 = vmatpush.msrb.mxu3 %v483_v28 }
  0x73   :  { %455 = vmatpush.msra.mxu2 %v412_v54  ;;  %513 = vmatpush.msrb.mxu3 %v482_v29 }
  0x75   :  { %514 = vmatpush.msrb.mxu3 %v481_v30 }
  0xb0   :  { %v227_v57 = vpop.f32.mrf.mxu0 }
  0xb1   :  { %v228_v58 = vadd.f32 %v227_v57, %v191_v56 }
  0xb2   :  { %v267_v60 = vpop.f32.mrf.mxu2 }
  0xb5   :  { %v287_v0 = vpop.f32.mrf.mxu3 }
  0xb7   :  { %v247_v59 = vpop.f32.mrf.mxu1 }
  0xb8   :  { %v248_v61 = vadd.f32 %v247_v59, %v228_v58 }
  0xba   :  { %v268_v63 = vadd.f32 %v267_v60, %v248_v61 }
  0xbc   :  { %v288_v1 = vadd.f32 %v287_v0, %v268_v63 }
  0xbf   :  { %v307_v3 = vpop.f32.mrf.mxu0 }
  0xc0   :  { %v308_v4 = vadd.f32 %v307_v3, %v288_v1 }
  0xc2   :  { %v410_v6 = vmax.f32 %v308_v4, 0.0 }
  0xc4   :  { %456 = vmatmul.f32.vlgmr.msra.gmra.mxu2 %v410_v6 }
  0xcf   :  { %v327_v9 = vpop.f32.mrf.mxu1 }
  0xd0   :  { %v328_v10 = vadd.f32 %v327_v9, %v192_v8 }
  0xd3   :  { %v347_v11 = vpop.f32.mrf.mxu2 }
  0xd4   :  { %v348_v12 = vadd.f32 %v347_v11, %v328_v10 }
  0xd7   :  { %v367_v13 = vpop.f32.mrf.mxu3 }
  0xd8   :  { %v368_v14 = vadd.f32 %v367_v13, %v348_v12 }
  0xdf   :  { %v387_v15 = vpop.f32.mrf.mxu0  ;;  %v407_v16 = vpop.f32.mrf.mxu1 }
  0xe0   :  { %v388_v17 = vadd.f32 %v387_v15, %v368_v14 }
  0xe2   :  { %v408_v18 = vadd.f32 %v407_v16, %v388_v17 }
  0xe4   :  { %v411_v19 = vmax.f32 %v408_v18, 0.0 }
  0xe6   :  { %548 = vmatmul.msk.f32.vlgmr.msra.gmra.mxu3 %vm436_vm0, %v411_v19 }
 0x147   :  { %v457_v33 = vpop.f32.mrf.mxu2 }
 0x148   :  { %v458_v34 = vadd.f32 %v551_v31, %v457_v33 }
 0x169   :  { %v477_v32 = vpop.f32.mrf.mxu3 }
 0x16a   :  { %v478_v36 = vadd.f32 %v477_v32, %v458_v34 }
 0x16c   :  { %v480_v37 = vmax.f32 %v478_v36, 0.0 }
 0x16e   :  { %549 = vmatmul.msk.f32.vlgmr.msrb.gmra.mxu3 %vm495_vm1, %v480_v37 }
 0x1f1   :  { %v516_v38 = vpop.f32.mrf.mxu3 }
 0x1f2   :  { %v517_v39 = vadd.f32 %v552_v27, %v516_v38 }
 0x1f4   :  { %v520_v40 = vsel %vm519_vm2, %v517_v39, -inf }
 0x1f5   :  { %521 = vmax.xlane.f32.xlu0 %v520_v40 }
 0x268   :  { %v522_v41 = vpop.xlane.xlu0 %521 }
 0x269   :  { %v523_v42 = vsub.f32 %v517_v39, %v522_v41 }
 0x26b   :  { %v524_v43 = vmul.f32 1.442695, %v523_v42 }
 0x26d   :  { %553 = vpow2.f32 %v524_v43 }
 0x273   :  { %v554_v44 = vpop.eup %553 }
 0x274   :  { %v526_v45 = vsel %vm519_vm2, %v554_v44, 0.0 }
 0x275   :  { %527 = vadd.xlane.f32.xlu0 %v526_v45 }
 0x2e8   :  { %v528_v46 = vpop.xlane.xlu0 %527 }
 0x2e9   :  { %555 = vrcp.f32 %v528_v46 }
 0x2ef   :  { %v556_v47 = vpop.eup %555 }
 0x2f0   :  { %v530_v48 = vmul.f32 %v556_v47, %v554_v44 }
 0x2f2   :  { %531 = vst.msk [vmem:[#allocation2] sm:$0x3] %vm519_vm2, %v530_v48 }
 0x2f3   :  { %542 = dma.vmem_to_hbm [thread:$0]  %s538_s5, 32, %s540_s0, [#allocation3]  }
 0x2f4   :  { %581 = dma.done.wait [#allocation3], 32  }
 0x2f5   :  { %582 = vsyncadd [#allocation3], 4294967264 }
 0x2f6   :  { %547 = vsyncpa [#allocation3], 1 }

// kernel: convnn_forward.2
= control target key start
LH: loop header
LB: loop body
LE: loop exit
PB: predicated region body
PF: predicated region fallthrough
CT: control target
= control target key end

     0   :  { %14 = vsyncpa [#allocation4], 0  ;;  %s4921_s0 = inlined_call_operand.vmem [shape: f32[2,34,102], index: 0, kind: input, shape index: {}]   ;;  %s4922_s1 = inlined_call_operand.hbm [shape: f32[9,96,256], index: 1, kind: input, shape index: {}]   ;;  %s4923_s2 = inlined_call_operand.vmem [shape: f32[1,256], index: 2, kind: input, shape index: {}]   ;;  %s4924_s3 = inlined_call_operand.vmem [shape: f32[16,32], index: 3, kind: input, shape index: {}]   ;;  %s4925_s4 = inlined_call_operand.vmem [shape: f32[16,32], index: 4, kind: input, shape index: {}]   ;;  %s4926_s5 = inlined_call_operand.hbm [shape: f32[9,80,256], index: 5, kind: input, shape index: {}]   ;;  %s4927_s6 = inlined_call_operand.vmem [shape: f32[1,256], index: 6, kind: input, shape index: {}]   ;;  %s4928_s7 = inlined_call_operand.vmem [shape: f32[8,16], index: 7, kind: input, shape index: {}]   ;;  %s4929_s8 = inlined_call_operand.vmem [shape: f32[8,16], index: 8, kind: input, shape index: {}]   ;;  %s4930_s9 = inlined_call_operand.vmem [shape: f32[2,8,80], index: 9, kind: output, shape index: {}]  }
   0x1   :  { %s22_s11 = sshll.u32 %s4922_s1, 4  ;;  %s23_s11 = int_to_ptr.hbm [resolvable:$true] %s22_s11 }
   0x2   :  { %15 = vsyncpa [#allocation6], 0  ;;  %s4003_s12 = smov [#allocation3]   ;;  %s41_s16 = sshll.u32 %s4926_s5, 4  ;;  %s42_s16 = int_to_ptr.hbm [resolvable:$true] %s41_s16 }
   0x3   :  { %s24_s13 = sshll.u32 %s4003_s12, 4  ;;  %s4004_s17 = smov 256   ;;  %s25_s13 = int_to_ptr.vmem [resolvable:$true] %s24_s13 }
   0x4   :  { %s4005_s18 = smov 16   ;;  %s4006_s19 = smov [#allocation5]  }
   0x5   :  { %30 = dma.hbm_to_vmem [thread:$0]  %s23_s11, 27648, %s25_s13, [#allocation4], %s4004_s17, %s4004_s17, %s4005_s18  }
   0x6   :  { %s43_s20 = sshll.u32 %s4006_s19, 4  ;;  %s44_s20 = int_to_ptr.vmem [resolvable:$true] %s43_s20 }
   0x7   :  { %49 = dma.hbm_to_vmem [thread:$0]  %s42_s16, 23040, %s44_s20, [#allocation6], %s4004_s17, %s4004_s17, %s4005_s18  }
   0x8   :  { %3999 = dma.done.wait [#allocation4], 27648  }
   0x9   :  { %4000 = vsyncadd [#allocation4], 4294939648 }
   0xa   :  { %4001 = dma.done.wait [#allocation6], 23040  }
   0xb   :  { %4002 = vsyncadd [#allocation6], 4294944256  ;;  %v4072_v0 = vld [vmem:[%s4921_s0] sm:$0xff]  ;;  %v4077_v1 = vld [vmem:[%s4921_s0 + $0x10] sm:$0xff]  ;;  %s4007_s5 = smov 125   ;;  %s4008_s24 = smov 122  }
   0xc   :  { %122 = vrot.lane.b32.xlu0 %v4072_v0, %s4007_s5  ;;  %126 = vrot.lane.b32.xlu1 %v4077_v1, %s4007_s5  ;;  %v4088_v2 = vld [vmem:[%s4921_s0 + $0x8] sm:$0xff]  ;;  %v4093_v3 = vld [vmem:[%s4921_s0 + $0x18] sm:$0xff]  ;;  %v92_v5 = vld [vmem:[#allocation3 + $0xb8] sm:$0xff]  ;;  %v397_v14 = vrot.slane %v4072_v0, 1  ;;  %vm396_vm0 = vcmask 1046528   ;;  %v400_v24 = vrot.slane %v4077_v1, 1 }
   0xd   :  { %288 = vrot.lane.b32.xlu2 %v4072_v0, %s4008_s24  ;;  %v91_v4 = vld [vmem:[#allocation3 + $0xb0] sm:$0xff]  ;;  %v89_v6 = vld [vmem:[#allocation3 + $0xa0] sm:$0xff]  ;;  %v90_v7 = vld [vmem:[#allocation3 + $0xa8] sm:$0xff]  ;;  %238 = vmatpush.msra.mxu3 %v92_v5  ;;  %v398_v17 = vrot.slane %v4088_v2, 1  ;;  %v402_v25 = vrot.slane %v4093_v3, 1  ;;  %vm130_vm1 = vcmask 785408  }
   0xe   :  { %209 = vmatpush.msra.mxu2 %v91_v4  ;;  %v87_v8 = vld [vmem:[#allocation3 + $0x90] sm:$0xff]  ;;  %v117_v10 = vld [vmem:[#allocation3 + $0x178] sm:$0xff]  ;;  %v114_v12 = vld [vmem:[#allocation3 + $0x160] sm:$0xff]  ;;  %v720_v56 = vrot.slane %v4072_v0, 2  ;;  %v721_v57 = vrot.slane %v4088_v2, 2  ;;  %vm719_vm2 = vcmask 1045504  }
   0xf   :  { %v116_v9 = vld [vmem:[#allocation3 + $0x170] sm:$0xff]  ;;  %v88_v11 = vld [vmem:[#allocation3 + $0x98] sm:$0xff]  ;;  %v115_v13 = vld [vmem:[#allocation3 + $0x168] sm:$0xff]  ;;  %239 = vmatpush.msra.mxu3 %v90_v7  ;;  %172 = vmatpush.msra.mxu1 %v117_v10  ;;  %v4108_v21 = vsel %vm396_vm0, %v397_v14, %v398_v17  ;;  %v4121_v36 = vsel %vm396_vm0, %v398_v17, %v400_v24  ;;  %v4124_v37 = vsel %vm396_vm0, %v400_v24, %v402_v25  ;;  %v723_v5 = vrot.slane %v4077_v1, 2  ;;  %s4010_s20 = smov 5   ;;  %s4011_s1 = smov 123  }
  0x10   :  { %210 = vmatpush.msra.mxu2 %v89_v6  ;;  %143 = vmatpush.msra.mxu0 %v116_v9  ;;  %v85_v15 = vld [vmem:[#allocation3 + $0x80] sm:$0xff]  ;;  %v112_v16 = vld [vmem:[#allocation3 + $0x150] sm:$0xff]  ;;  %v86_v18 = vld [vmem:[#allocation3 + $0x88] sm:$0xff]  ;;  %v4148_v62 = vsel %vm719_vm2, %v720_v56, %v721_v57  ;;  %vm1045_vm3 = vcmask 261120   ;;  %vm1108_vm4 = vcmask 736256   ;;  %vm1111_vm5 = vcmask 730112  }
  0x11   :  { %240 = vmatpush.msra.mxu3 %v88_v11  ;;  %173 = vmatpush.msra.mxu1 %v115_v13  ;;  %v83_v19 = vld [vmem:[#allocation3 + $0x70] sm:$0xff]  ;;  %v113_v20 = vld [vmem:[#allocation3 + $0x158] sm:$0xff]  ;;  %v110_v23 = vld [vmem:[#allocation3 + $0x140] sm:$0xff]  ;;  %vm1121_vm6 = vcmask 695336   ;;  %vm1173_vm7 = vcmask 654336   ;;  %s4012_s21 = smov 118  }
  0x12   :  { %211 = vmatpush.msra.mxu2 %v87_v8  ;;  %144 = vmatpush.msra.mxu0 %v114_v12  ;;  %v84_v22 = vld [vmem:[#allocation3 + $0x78] sm:$0xff]  ;;  %v4115_v26 = vld [vmem:[%s4921_s0 + $0x20] sm:$0x3]  ;;  %v81_v27 = vld [vmem:[#allocation3 + $0x60] sm:$0xff]  ;;  %vm1844_vm8 = vcmask 130048  }
  0x13   :  { %241 = vmatpush.msra.mxu3 %v86_v18  ;;  %v111_v28 = vld [vmem:[#allocation3 + $0x148] sm:$0xff]  ;;  %174 = vmatpush.msra.mxu1 %v113_v20  ;;  %v108_v30 = vld [vmem:[#allocation3 + $0x130] sm:$0xff]  ;;  %v109_v32 = vld [vmem:[#allocation3 + $0x138] sm:$0xff]  ;;  %v404_v33 = vrot.slane %v4115_v26, 1 }
  0x14   :  { %124 = vrot.lane.b32.xlu0 %v4088_v2, %s4007_s5  ;;  %128 = vrot.lane.b32.xlu1 %v4093_v3, %s4007_s5  ;;  %v82_v29 = vld [vmem:[#allocation3 + $0x68] sm:$0xff]  ;;  %v79_v31 = vld [vmem:[#allocation3 + $0x50] sm:$0xff]  ;;  %v80_v34 = vld [vmem:[#allocation3 + $0x58] sm:$0xff] }
  0x15   :  { %290 = vrot.lane.b32.xlu2 %v4088_v2, %s4008_s24  ;;  %212 = vmatpush.msra.mxu2 %v85_v15  ;;  %v106_v35 = vld [vmem:[#allocation3 + $0x120] sm:$0xff]  ;;  %v78_v39 = vld [vmem:[#allocation3 + $0x48] sm:$0xff]  ;;  %v4131_v41 = vsel %vm396_vm0, %v402_v25, %v404_v33  ;;  %v75_v42 = vld [vmem:[#allocation3 + $0x30] sm:$0xff] }
  0x16   :  { %145 = vmatpush.msra.mxu0 %v112_v16  ;;  %242 = vmatpush.msra.mxu3 %v84_v22  ;;  %v77_v38 = vld [vmem:[#allocation3 + $0x40] sm:$0xff]  ;;  %v107_v40 = vld [vmem:[#allocation3 + $0x128] sm:$0xff]  ;;  %v104_v43 = vld [vmem:[#allocation3 + $0x110] sm:$0xff] }
  0x17   :  { %213 = vmatpush.msra.mxu2 %v83_v19  ;;  %175 = vmatpush.msra.mxu1 %v111_v28  ;;  %v76_v44 = vld [vmem:[#allocation3 + $0x38] sm:$0xff]  ;;  %v73_v46 = vld [vmem:[#allocation3 + $0x20] sm:$0xff]  ;;  %v74_v48 = vld [vmem:[#allocation3 + $0x28] sm:$0xff] }
  0x18   :  { %146 = vmatpush.msra.mxu0 %v110_v23  ;;  %243 = vmatpush.msra.mxu3 %v82_v29  ;;  %v105_v45 = vld [vmem:[#allocation3 + $0x118] sm:$0xff]  ;;  %v102_v47 = vld [vmem:[#allocation3 + $0x100] sm:$0xff]  ;;  %v103_v49 = vld [vmem:[#allocation3 + $0x108] sm:$0xff] }
  0x19   :  { %214 = vmatpush.msra.mxu2 %v81_v27  ;;  %176 = vmatpush.msra.mxu1 %v109_v32  ;;  %v71_v50 = vld [vmem:[#allocation3 + $0x10] sm:$0xff]  ;;  %v72_v52 = vld [vmem:[#allocation3 + $0x18] sm:$0xff]  ;;  %v69_v54 = vld [vmem:[#allocation3] sm:$0xff] }
  0x1a   :  { %147 = vmatpush.msra.mxu0 %v108_v30  ;;  %244 = vmatpush.msra.mxu3 %v80_v34  ;;  %v100_v51 = vld [vmem:[#allocation3 + $0xf0] sm:$0xff]  ;;  %v101_v53 = vld [vmem:[#allocation3 + $0xf8] sm:$0xff]  ;;  %v70_v55 = vld [vmem:[#allocation3 + $0x8] sm:$0xff] }
  0x1b   :  { %215 = vmatpush.msra.mxu2 %v79_v31  ;;  %177 = vmatpush.msra.mxu1 %v107_v40  ;;  %v98_v58 = vld [vmem:[#allocation3 + $0xe0] sm:$0xff]  ;;  %v99_v59 = vld [vmem:[#allocation3 + $0xe8] sm:$0xff]  ;;  %v96_v60 = vld [vmem:[#allocation3 + $0xd0] sm:$0xff] }
  0x1c   :  { %292 = vrot.lane.b32.xlu0 %v4077_v1, %s4008_s24  ;;  %294 = vrot.lane.b32.xlu1 %v4093_v3, %s4008_s24  ;;  %v97_v61 = vld [vmem:[#allocation3 + $0xd8] sm:$0xff]  ;;  %v94_v63 = vld [vmem:[#allocation3 + $0xc0] sm:$0xff]  ;;  %v95_v4 = vld [vmem:[#allocation3 + $0xc8] sm:$0xff] }
  0x1d   :  { %505 = vrot.lane.b32.xlu2 %v4108_v21, %s4007_s5  ;;  %148 = vmatpush.msra.mxu0 %v106_v35  ;;  %v393_v8 = vld [vmem:[#allocation3 + $0x2f0] sm:$0xff]  ;;  %v394_v9 = vld [vmem:[#allocation3 + $0x2f8] sm:$0xff]  ;;  %v391_v10 = vld [vmem:[#allocation3 + $0x2e0] sm:$0xff] }
  0x1e   :  { %216 = vmatpush.msra.mxu2 %v77_v38  ;;  %245 = vmatpush.msra.mxu3 %v78_v39  ;;  %v286_v11 = vld [vmem:[#allocation3 + $0x230] sm:$0xff]  ;;  %v287_v12 = vld [vmem:[#allocation3 + $0x238] sm:$0xff]  ;;  %v284_v15 = vld [vmem:[#allocation3 + $0x220] sm:$0xff] }
  0x1f   :  { %149 = vmatpush.msra.mxu0 %v104_v43  ;;  %178 = vmatpush.msra.mxu1 %v105_v45  ;;  %v389_v13 = vld [vmem:[#allocation3 + $0x2d0] sm:$0xff]  ;;  %v390_v14 = vld [vmem:[#allocation3 + $0x2d8] sm:$0xff]  ;;  %v285_v16 = vld [vmem:[#allocation3 + $0x228] sm:$0xff] }
  0x20   :  { %217 = vmatpush.msra.mxu2 %v75_v42  ;;  %246 = vmatpush.msra.mxu3 %v76_v44  ;;  %v387_v17 = vld [vmem:[#allocation3 + $0x2c0] sm:$0xff]  ;;  %v388_v18 = vld [vmem:[#allocation3 + $0x2c8] sm:$0xff]  ;;  %v282_v19 = vld [vmem:[#allocation3 + $0x210] sm:$0xff] }
  0x21   :  { %150 = vmatpush.msra.mxu0 %v102_v47  ;;  %179 = vmatpush.msra.mxu1 %v103_v49  ;;  %v283_v20 = vld [vmem:[#allocation3 + $0x218] sm:$0xff]  ;;  %v385_v22 = vld [vmem:[#allocation3 + $0x2b0] sm:$0xff]  ;;  %v280_v24 = vld [vmem:[#allocation3 + $0x200] sm:$0xff] }
  0x22   :  { %218 = vmatpush.msra.mxu2 %v73_v46  ;;  %247 = vmatpush.msra.mxu3 %v74_v48  ;;  %v386_v23 = vld [vmem:[#allocation3 + $0x2b8] sm:$0xff]  ;;  %v281_v25 = vld [vmem:[#allocation3 + $0x208] sm:$0xff]  ;;  %v278_v28 = vld [vmem:[#allocation3 + $0x1f0] sm:$0xff] }
  0x23   :  { %151 = vmatpush.msra.mxu0 %v100_v51  ;;  %180 = vmatpush.msra.mxu1 %v101_v53  ;;  %v384_v27 = vld [vmem:[#allocation3 + $0x2a8] sm:$0xff]  ;;  %v279_v29 = vld [vmem:[#allocation3 + $0x1f8] sm:$0xff]  ;;  %v381_v30 = vld [vmem:[#allocation3 + $0x290] sm:$0xff] }
  0x24   :  { %507 = vrot.lane.b32.xlu0 %v4121_v36, %s4007_s5  ;;  %509 = vrot.lane.b32.xlu1 %v4124_v37, %s4007_s5  ;;  %v382_v31 = vld [vmem:[#allocation3 + $0x298] sm:$0xff]  ;;  %v276_v32 = vld [vmem:[#allocation3 + $0x1e0] sm:$0xff]  ;;  %v277_v33 = vld [vmem:[#allocation3 + $0x1e8] sm:$0xff] }
  0x25   :  { %511 = vrot.lane.b32.xlu2 %v4131_v41, %s4007_s5  ;;  %219 = vmatpush.msra.mxu2 %v71_v50  ;;  %v379_v34 = vld [vmem:[#allocation3 + $0x280] sm:$0xff]  ;;  %v380_v35 = vld [vmem:[#allocation3 + $0x288] sm:$0xff]  ;;  %v274_v38 = vld [vmem:[#allocation3 + $0x1d0] sm:$0xff] }
  0x26   :  { %248 = vmatpush.msra.mxu3 %v72_v52  ;;  %152 = vmatpush.msra.mxu0 %v98_v58  ;;  %v275_v39 = vld [vmem:[#allocation3 + $0x1d8] sm:$0xff]  ;;  %v377_v40 = vld [vmem:[#allocation3 + $0x270] sm:$0xff]  ;;  %v272_v43 = vld [vmem:[#allocation3 + $0x1c0] sm:$0xff] }
  0x27   :  { %220 = vmatpush.msra.mxu2 %v69_v54  ;;  %181 = vmatpush.msra.mxu1 %v99_v59  ;;  %v378_v42 = vld [vmem:[#allocation3 + $0x278] sm:$0xff]  ;;  %v273_v44 = vld [vmem:[#allocation3 + $0x1c8] sm:$0xff]  ;;  %v375_v45 = vld [vmem:[#allocation3 + $0x260] sm:$0xff] }
  0x28   :  { %249 = vmatpush.msra.mxu3 %v70_v55  ;;  %3715 = vmatmul.msk.f32.vlgmr.msra.gmra.mxu2 %vm130_vm1, %v4072_v0  ;;  %v376_v46 = vld [vmem:[#allocation3 + $0x268] sm:$0xff]  ;;  %v270_v47 = vld [vmem:[#allocation3 + $0x1b0] sm:$0xff]  ;;  %v271_v48 = vld [vmem:[#allocation3 + $0x1b8] sm:$0xff] }
  0x29   :  { %3719 = vmatmul.msk.f32.vlgmr.msra.gmra.mxu3 %vm130_vm1, %v4072_v0  ;;  %153 = vmatpush.msra.mxu0 %v96_v60  ;;  %v725_v0 = vrot.slane %v4093_v3, 2  ;;  %v373_v49 = vld [vmem:[#allocation3 + $0x250] sm:$0xff]  ;;  %v374_v50 = vld [vmem:[#allocation3 + $0x258] sm:$0xff]  ;;  %v268_v51 = vld [vmem:[#allocation3 + $0x1a0] sm:$0xff] }
  0x2a   :  { %182 = vmatpush.msra.mxu1 %v97_v61  ;;  %418 = vmatpush.msrb.mxu2 %v393_v8  ;;  %v269_v52 = vld [vmem:[#allocation3 + $0x1a8] sm:$0xff]  ;;  %v371_v53 = vld [vmem:[#allocation3 + $0x240] sm:$0xff]  ;;  %v266_v55 = vld [vmem:[#allocation3 + $0x190] sm:$0xff] }
  0x2b   :  { %154 = vmatpush.msra.mxu0 %v94_v63  ;;  %v4161_v6 = vsel %vm719_vm2, %v723_v5, %v725_v0  ;;  %447 = vmatpush.msrb.mxu3 %v394_v9  ;;  %v372_v54 = vld [vmem:[#allocation3 + $0x248] sm:$0xff]  ;;  %v267_v56 = vld [vmem:[#allocation3 + $0x198] sm:$0xff]  ;;  %v610_v60 = vld [vmem:[#allocation3 + $0x470] sm:$0xff] }
  0x2c   :  { %612 = vrot.lane.b32.xlu0 %v4108_v21, %s4008_s24  ;;  %614 = vrot.lane.b32.xlu1 %v4121_v36, %s4008_s24  ;;  %v265_v58 = vld [vmem:[#allocation3 + $0x188] sm:$0xff]  ;;  %v611_v61 = vld [vmem:[#allocation3 + $0x478] sm:$0xff]  ;;  %v606_v8 = vld [vmem:[#allocation3 + $0x450] sm:$0xff] }
  0x2d   :  { %616 = vrot.lane.b32.xlu2 %v4124_v37, %s4008_s24  ;;  %183 = vmatpush.msra.mxu1 %v95_v4  ;;  %v608_v4 = vld [vmem:[#allocation3 + $0x460] sm:$0xff] }
  0x2e   :  { %419 = vmatpush.msrb.mxu2 %v391_v10  ;;  %308 = vmatpush.msrb.mxu0 %v286_v11  ;;  %v607_v10 = vld [vmem:[#allocation3 + $0x458] sm:$0xff]  ;;  %v502_v11 = vld [vmem:[#allocation3 + $0x3a8] sm:$0xff] }
  0x2f   :  { %337 = vmatpush.msrb.mxu1 %v287_v12  ;;  %v605_v12 = vld [vmem:[#allocation3 + $0x448] sm:$0xff] }
  0x30   :  { %3716 = vmatmul.msk.f32.gmra.mxu2 %vm130_vm1, %v4088_v2  ;;  %309 = vmatpush.msrb.mxu0 %v284_v15  ;;  %v500_v15 = vld [vmem:[#allocation3 + $0x398] sm:$0xff] }
  0x31   :  { %3720 = vmatmul.msk.f32.gmra.mxu3 %vm130_vm1, %v4088_v2  ;;  %v727_v2 = vrot.slane %v4115_v26, 2  ;;  %420 = vmatpush.msrb.mxu2 %v389_v13  ;;  %v383_v26 = vld [vmem:[#allocation3 + $0x2a0] sm:$0xff]  ;;  %v499_v13 = vld [vmem:[#allocation3 + $0x390] sm:$0xff] }
  0x32   :  { %338 = vmatpush.msrb.mxu1 %v285_v16  ;;  %310 = vmatpush.msrb.mxu0 %v282_v19  ;;  %v602_v16 = vld [vmem:[#allocation3 + $0x430] sm:$0xff]  ;;  %v498_v19 = vld [vmem:[#allocation3 + $0x388] sm:$0xff] }
  0x33   :  { %v4179_v7 = vsel %vm719_vm2, %v725_v0, %v727_v2  ;;  %421 = vmatpush.msrb.mxu2 %v387_v17  ;;  %v503_v0 = vld [vmem:[#allocation3 + $0x3b0] sm:$0xff]  ;;  %v504_v2 = vld [vmem:[#allocation3 + $0x3b8] sm:$0xff] }
  0x34   :  { %618 = vrot.lane.b32.xlu0 %v4131_v41, %s4008_s24  ;;  %828 = vrot.lane.b32.xlu1 %v4148_v62, %s4007_s5  ;;  %v603_v17 = vld [vmem:[#allocation3 + $0x438] sm:$0xff] }
  0x35   :  { %339 = vmatpush.msrb.mxu1 %v283_v20  ;;  %422 = vmatpush.msrb.mxu2 %v385_v22  ;;  %v600_v22 = vld [vmem:[#allocation3 + $0x420] sm:$0xff] }
  0x36   :  { %311 = vmatpush.msrb.mxu0 %v280_v24  ;;  %v495_v24 = vld [vmem:[#allocation3 + $0x370] sm:$0xff] }
  0x37   :  { %340 = vmatpush.msrb.mxu1 %v281_v25  ;;  %423 = vmatpush.msrb.mxu2 %v383_v26  ;;  %v496_v25 = vld [vmem:[#allocation3 + $0x378] sm:$0xff]  ;;  %v598_v26 = vld [vmem:[#allocation3 + $0x410] sm:$0xff] }
  0x38   :  { %3717 = vmatmul.msk.f32.gmra.mxu2 %vm130_vm1, %v4077_v1  ;;  %312 = vmatpush.msrb.mxu0 %v278_v28  ;;  %v494_v28 = vld [vmem:[#allocation3 + $0x368] sm:$0xff] }
  0x39   :  { %3721 = vmatmul.msk.f32.gmra.mxu3 %vm130_vm1, %v4077_v1  ;;  %v392_v1 = vld [vmem:[#allocation3 + $0x2e8] sm:$0xff]  ;;  %341 = vmatpush.msrb.mxu1 %v279_v29 }
  0x3a   :  { %448 = vmatpush.msrb.mxu3 %v392_v1  ;;  %424 = vmatpush.msrb.mxu2 %v381_v30  ;;  %v501_v1 = vld [vmem:[#allocation3 + $0x3a0] sm:$0xff] }
  0x3b   :  { %313 = vmatpush.msrb.mxu0 %v276_v32  ;;  %342 = vmatpush.msrb.mxu1 %v277_v33  ;;  %v597_v32 = vld [vmem:[#allocation3 + $0x408] sm:$0xff]  ;;  %v491_v33 = vld [vmem:[#allocation3 + $0x350] sm:$0xff] }
  0x3c   :  { %832 = vrot.lane.b32.xlu1 %v4161_v6, %s4007_s5  ;;  %935 = vrot.lane.b32.xlu0 %v4148_v62, %s4008_s24 }
  0x3d   :  { %449 = vmatpush.msrb.mxu3 %v390_v14  ;;  %425 = vmatpush.msrb.mxu2 %v379_v34  ;;  %v492_v34 = vld [vmem:[#allocation3 + $0x358] sm:$0xff] }
  0x3e   :  { %314 = vmatpush.msrb.mxu0 %v274_v38  ;;  %343 = vmatpush.msrb.mxu1 %v275_v39  ;;  %v594_v38 = vld [vmem:[#allocation3 + $0x3f0] sm:$0xff]  ;;  %v595_v39 = vld [vmem:[#allocation3 + $0x3f8] sm:$0xff] }
  0x3f   :  { %450 = vmatpush.msrb.mxu3 %v388_v18  ;;  %426 = vmatpush.msrb.mxu2 %v377_v40  ;;  %v497_v18 = vld [vmem:[#allocation3 + $0x380] sm:$0xff] }
  0x40   :  { %3718 = vmatmul.msk.f32.gmra.mxu2 %vm130_vm1, %v4093_v3  ;;  %315 = vmatpush.msrb.mxu0 %v272_v43  ;;  %v489_v40 = vld [vmem:[#allocation3 + $0x340] sm:$0xff] }
  0x41   :  { %3722 = vmatmul.msk.f32.gmra.mxu3 %vm130_vm1, %v4093_v3  ;;  %v4184_v3 = vsel %vm719_vm2, %v721_v57, %v723_v5  ;;  %344 = vmatpush.msrb.mxu1 %v273_v44  ;;  %v264_v57 = vld [vmem:[#allocation3 + $0x180] sm:$0xff]  ;;  %v609_v5 = vld [vmem:[#allocation3 + $0x468] sm:$0xff] }
  0x42   :  { %830 = vrot.lane.b32.xlu2 %v4184_v3, %s4007_s5  ;;  %451 = vmatpush.msrb.mxu3 %v386_v23  ;;  %v601_v23 = vld [vmem:[#allocation3 + $0x428] sm:$0xff]  ;;  %v592_v43 = vld [vmem:[#allocation3 + $0x3e0] sm:$0xff] }
  0x43   :  { %427 = vmatpush.msrb.mxu2 %v375_v45  ;;  %316 = vmatpush.msrb.mxu0 %v270_v47  ;;  %v593_v44 = vld [vmem:[#allocation3 + $0x3e8] sm:$0xff]  ;;  %v487_v45 = vld [vmem:[#allocation3 + $0x330] sm:$0xff] }
  0x44   :  { %939 = vrot.lane.b32.xlu1 %v4161_v6, %s4008_s24  ;;  %834 = vrot.lane.b32.xlu0 %v4179_v7, %s4007_s5  ;;  %v590_v47 = vld [vmem:[#allocation3 + $0x3d0] sm:$0xff] }
  0x45   :  { %452 = vmatpush.msrb.mxu3 %v384_v27  ;;  %345 = vmatpush.msrb.mxu1 %v271_v48  ;;  %v599_v27 = vld [vmem:[#allocation3 + $0x418] sm:$0xff] }
  0x46   :  { %428 = vmatpush.msrb.mxu2 %v373_v49  ;;  %317 = vmatpush.msrb.mxu0 %v268_v51  ;;  %v485_v49 = vld [vmem:[#allocation3 + $0x320] sm:$0xff] }
  0x47   :  { %453 = vmatpush.msrb.mxu3 %v382_v31  ;;  %346 = vmatpush.msrb.mxu1 %v269_v52  ;;  %v596_v31 = vld [vmem:[#allocation3 + $0x400] sm:$0xff] }
  0x48   :  { %429 = vmatpush.msrb.mxu2 %v371_v53  ;;  %318 = vmatpush.msrb.mxu0 %v266_v55  ;;  %v588_v52 = vld [vmem:[#allocation3 + $0x3c0] sm:$0xff]  ;;  %v589_v53 = vld [vmem:[#allocation3 + $0x3c8] sm:$0xff]  ;;  %v483_v55 = vld [vmem:[#allocation3 + $0x310] sm:$0xff] }
  0x49   :  { %454 = vmatpush.msrb.mxu3 %v380_v35  ;;  %3731 = vmatmul.msk.f32.vlgmr.msrb.gmra.mxu2 %vm130_vm1, %v4108_v21 }
  0x4a   :  { %347 = vmatpush.msrb.mxu1 %v267_v56  ;;  %937 = vrot.lane.b32.xlu2 %v4184_v3, %s4008_s24  ;;  %v484_v56 = vld [vmem:[#allocation3 + $0x318] sm:$0xff] }
  0x4b   :  { %455 = vmatpush.msrb.mxu3 %v378_v42  ;;  %319 = vmatpush.msrb.mxu0 %v264_v57  ;;  %v490_v42 = vld [vmem:[#allocation3 + $0x348] sm:$0xff]  ;;  %v826_v57 = vld [vmem:[#allocation3 + $0x5f0] sm:$0xff] }
  0x4c   :  { %348 = vmatpush.msrb.mxu1 %v265_v58  ;;  %632 = vmatpush.msra.mxu2 %v610_v60  ;;  %v827_v58 = vld [vmem:[#allocation3 + $0x5f8] sm:$0xff]  ;;  %v482_v60 = vld [vmem:[#allocation3 + $0x308] sm:$0xff] }
  0x4d   :  { %456 = vmatpush.msrb.mxu3 %v376_v46  ;;  %v488_v46 = vld [vmem:[#allocation3 + $0x338] sm:$0xff] }
  0x4e   :  { %633 = vmatpush.msra.mxu2 %v608_v4 }
  0x4f   :  { %457 = vmatpush.msrb.mxu3 %v374_v50  ;;  %v486_v50 = vld [vmem:[#allocation3 + $0x328] sm:$0xff] }
  0x50   :  { %634 = vmatpush.msra.mxu2 %v606_v8  ;;  %v823_v8 = vld [vmem:[#allocation3 + $0x5d8] sm:$0xff] }
  0x51   :  { %458 = vmatpush.msrb.mxu3 %v372_v54  ;;  %3732 = vmatmul.msk.f32.gmra.mxu2 %vm130_vm1, %v4121_v36 }
  0x52   :  { %3735 = vmatmul.msk.f32.vlgmr.msrb.gmra.mxu3 %vm130_vm1, %v4108_v21  ;;  %941 = vrot.lane.b32.xlu2 %v4179_v7, %s4008_s24 }
  0x53   :  { %661 = vmatpush.msra.mxu3 %v611_v61  ;;  %v824_v61 = vld [vmem:[#allocation3 + $0x5e0] sm:$0xff] }
  0x55   :  { %662 = vmatpush.msra.mxu3 %v609_v5 }
  0x57   :  { %663 = vmatpush.msra.mxu3 %v607_v10  ;;  %v716_v10 = vld [vmem:[#allocation3 + $0x528] sm:$0xff] }
  0x59   :  { %664 = vmatpush.msra.mxu3 %v605_v12  ;;  %3733 = vmatmul.msk.f32.gmra.mxu2 %vm130_vm1, %v4124_v37  ;;  %v714_v12 = vld [vmem:[#allocation3 + $0x518] sm:$0xff] }
  0x5a   :  { %3736 = vmatmul.msk.f32.gmra.mxu3 %vm130_vm1, %v4121_v36  ;;  %v604_v36 = vld [vmem:[#allocation3 + $0x440] sm:$0xff] }
  0x5b   :  { %635 = vmatpush.msra.mxu2 %v604_v36  ;;  %665 = vmatpush.msra.mxu3 %v603_v17  ;;  %v713_v36 = vld [vmem:[#allocation3 + $0x510] sm:$0xff] }
  0x5d   :  { %636 = vmatpush.msra.mxu2 %v602_v16  ;;  %666 = vmatpush.msra.mxu3 %v601_v23  ;;  %v712_v16 = vld [vmem:[#allocation3 + $0x508] sm:$0xff]  ;;  %v710_v23 = vld [vmem:[#allocation3 + $0x4f8] sm:$0xff] }
  0x5f   :  { %637 = vmatpush.msra.mxu2 %v600_v22  ;;  %667 = vmatpush.msra.mxu3 %v599_v27  ;;  %v709_v22 = vld [vmem:[#allocation3 + $0x4f0] sm:$0xff]  ;;  %v708_v27 = vld [vmem:[#allocation3 + $0x4e8] sm:$0xff] }
  0x61   :  { %638 = vmatpush.msra.mxu2 %v598_v26  ;;  %668 = vmatpush.msra.mxu3 %v597_v32  ;;  %v707_v26 = vld [vmem:[#allocation3 + $0x4e0] sm:$0xff]  ;;  %v810_v32 = vld [vmem:[#allocation3 + $0x570] sm:$0xff] }
  0x62   :  { %3737 = vmatmul.msk.f32.gmra.mxu3 %vm130_vm1, %v4124_v37  ;;  %v493_v37 = vld [vmem:[#allocation3 + $0x360] sm:$0xff]  ;;  %3734 = vmatmul.msk.f32.gmra.mxu2 %vm130_vm1, %v4131_v41 }
  0x63   :  { %639 = vmatpush.msra.mxu2 %v596_v31  ;;  %669 = vmatpush.msra.mxu3 %v595_v39  ;;  %v808_v39 = vld [vmem:[#allocation3 + $0x560] sm:$0xff] }
  0x65   :  { %640 = vmatpush.msra.mxu2 %v594_v38  ;;  %670 = vmatpush.msra.mxu3 %v593_v44  ;;  %v704_v38 = vld [vmem:[#allocation3 + $0x4c8] sm:$0xff]  ;;  %v806_v44 = vld [vmem:[#allocation3 + $0x550] sm:$0xff] }
  0x67   :  { %v4204_v9 = vpop.permute.xlu2 %288  ;;  %641 = vmatpush.msra.mxu2 %v592_v43  ;;  %v702_v43 = vld [vmem:[#allocation3 + $0x4b8] sm:$0xff] }
  0x69   :  { %642 = vmatpush.msra.mxu2 %v590_v47  ;;  %v804_v47 = vld [vmem:[#allocation3 + $0x540] sm:$0xff] }
  0x6a   :  { %3738 = vmatmul.msk.f32.gmra.mxu3 %vm130_vm1, %v4131_v41  ;;  %v591_v41 = vld [vmem:[#allocation3 + $0x3d8] sm:$0xff] }
  0x6b   :  { %671 = vmatpush.msra.mxu3 %v591_v41  ;;  %643 = vmatpush.msra.mxu2 %v588_v52  ;;  %v805_v41 = vld [vmem:[#allocation3 + $0x548] sm:$0xff]  ;;  %v698_v52 = vld [vmem:[#allocation3 + $0x498] sm:$0xff] }
  0x6d   :  { %672 = vmatpush.msra.mxu3 %v589_v53  ;;  %848 = vmatpush.msrb.mxu2 %v826_v57  ;;  %v695_v53 = vld [vmem:[#allocation3 + $0x480] sm:$0xff] }
  0x6e   :  { %v931_v57 = vld [vmem:[#allocation3 + $0x6a0] sm:$0xff] }
  0x6f   :  { %v4214_v29 = vpop.permute.xlu2 %290  ;;  %877 = vmatpush.msrb.mxu3 %v827_v58  ;;  %849 = vmatpush.msrb.mxu2 %v824_v61  ;;  %v932_v58 = vld [vmem:[#allocation3 + $0x6a8] sm:$0xff] }
  0x77   :  { %v4226_v48 = vpop.permute.xlu2 %505 }
  0x7e   :  { %v123_v59 = vpop.permute.xlu0 %122  ;;  %v127_v63 = vpop.permute.xlu1 %126 }
  0x7f   :  { %3707 = vmatmul.msk.f32.vlgmr.msra.gmra.mxu0 %vm130_vm1, %v123_v59  ;;  %3711 = vmatmul.msk.f32.vlgmr.msra.gmra.mxu1 %vm130_vm1, %v123_v59  ;;  %v481_v59 = vld [vmem:[#allocation3 + $0x300] sm:$0xff]  ;;  %v4236_v4 = vpop.permute.xlu2 %511 }
  0x80   :  { %525 = vmatpush.msra.mxu0 %v503_v0  ;;  %554 = vmatpush.msra.mxu1 %v504_v2  ;;  %v718_v0 = vld [vmem:[#allocation3 + $0x538] sm:$0xff]  ;;  %v822_v2 = vld [vmem:[#allocation3 + $0x5d0] sm:$0xff] }
  0x81   :  { %850 = vmatpush.msrb.mxu2 %v822_v2  ;;  %v923_v2 = vld [vmem:[#allocation3 + $0x660] sm:$0xff] }
  0x82   :  { %526 = vmatpush.msra.mxu0 %v501_v1  ;;  %555 = vmatpush.msra.mxu1 %v502_v11  ;;  %v820_v1 = vld [vmem:[#allocation3 + $0x5c0] sm:$0xff]  ;;  %v821_v11 = vld [vmem:[#allocation3 + $0x5c8] sm:$0xff] }
  0x83   :  { %851 = vmatpush.msrb.mxu2 %v820_v1  ;;  %v919_v1 = vld [vmem:[#allocation3 + $0x640] sm:$0xff] }
  0x84   :  { %527 = vmatpush.msra.mxu0 %v499_v13  ;;  %556 = vmatpush.msra.mxu1 %v500_v15  ;;  %v818_v13 = vld [vmem:[#allocation3 + $0x5b0] sm:$0xff]  ;;  %v711_v15 = vld [vmem:[#allocation3 + $0x500] sm:$0xff] }
  0x85   :  { %852 = vmatpush.msrb.mxu2 %v818_v13  ;;  %v915_v13 = vld [vmem:[#allocation3 + $0x620] sm:$0xff] }
  0x86   :  { %v125_v21 = vpop.permute.xlu0 %124  ;;  %v129_v14 = vpop.permute.xlu1 %128  ;;  %528 = vmatpush.msra.mxu0 %v497_v18  ;;  %557 = vmatpush.msra.mxu1 %v498_v19  ;;  %v816_v18 = vld [vmem:[#allocation3 + $0x5a0] sm:$0xff]  ;;  %v817_v19 = vld [vmem:[#allocation3 + $0x5a8] sm:$0xff] }
  0x87   :  { %3708 = vmatmul.msk.f32.gmra.mxu0 %vm130_vm1, %v125_v21  ;;  %3712 = vmatmul.msk.f32.gmra.mxu1 %vm130_vm1, %v125_v21  ;;  %v717_v21 = vld [vmem:[#allocation3 + $0x530] sm:$0xff]  ;;  %v617_v17 = vpop.permute.xlu2 %616 }
  0x88   :  { %529 = vmatpush.msra.mxu0 %v495_v24  ;;  %558 = vmatpush.msra.mxu1 %v496_v25  ;;  %v814_v24 = vld [vmem:[#allocation3 + $0x590] sm:$0xff]  ;;  %v815_v25 = vld [vmem:[#allocation3 + $0x598] sm:$0xff] }
  0x89   :  { %853 = vmatpush.msrb.mxu2 %v816_v18 }
  0x8a   :  { %530 = vmatpush.msra.mxu0 %v493_v37  ;;  %559 = vmatpush.msra.mxu1 %v494_v28  ;;  %v812_v37 = vld [vmem:[#allocation3 + $0x580] sm:$0xff]  ;;  %v705_v28 = vld [vmem:[#allocation3 + $0x4d0] sm:$0xff] }
  0x8b   :  { %854 = vmatpush.msrb.mxu2 %v814_v24 }
  0x8c   :  { %531 = vmatpush.msra.mxu0 %v491_v33  ;;  %560 = vmatpush.msra.mxu1 %v492_v34  ;;  %v811_v33 = vld [vmem:[#allocation3 + $0x578] sm:$0xff]  ;;  %v703_v34 = vld [vmem:[#allocation3 + $0x4c0] sm:$0xff] }
  0x8d   :  { %855 = vmatpush.msrb.mxu2 %v812_v37 }
  0x8e   :  { %v4210_v20 = vpop.permute.xlu0 %292  ;;  %v4216_v30 = vpop.permute.xlu1 %294  ;;  %532 = vmatpush.msra.mxu0 %v489_v40  ;;  %561 = vmatpush.msra.mxu1 %v490_v42  ;;  %v809_v40 = vld [vmem:[#allocation3 + $0x568] sm:$0xff]  ;;  %v701_v42 = vld [vmem:[#allocation3 + $0x4b0] sm:$0xff] }
  0x8f   :  { %3709 = vmatmul.msk.f32.gmra.mxu0 %vm130_vm1, %v127_v63  ;;  %3713 = vmatmul.msk.f32.gmra.mxu1 %vm130_vm1, %v127_v63  ;;  %v825_v63 = vld [vmem:[#allocation3 + $0x5e8] sm:$0xff] }
  0x90   :  { %533 = vmatpush.msra.mxu0 %v487_v45  ;;  %562 = vmatpush.msra.mxu1 %v488_v46  ;;  %v699_v45 = vld [vmem:[#allocation3 + $0x4a0] sm:$0xff]  ;;  %v700_v46 = vld [vmem:[#allocation3 + $0x4a8] sm:$0xff] }
  0x91   :  { %878 = vmatpush.msrb.mxu3 %v825_v63  ;;  %856 = vmatpush.msrb.mxu2 %v810_v32  ;;  %v927_v63 = vld [vmem:[#allocation3 + $0x680] sm:$0xff] }
  0x92   :  { %534 = vmatpush.msra.mxu0 %v485_v49  ;;  %563 = vmatpush.msra.mxu1 %v486_v50  ;;  %v697_v50 = vld [vmem:[#allocation3 + $0x490] sm:$0xff] }
  0x93   :  { %879 = vmatpush.msrb.mxu3 %v823_v8  ;;  %857 = vmatpush.msrb.mxu2 %v808_v39  ;;  %v924_v8 = vld [vmem:[#allocation3 + $0x668] sm:$0xff] }
  0x94   :  { %535 = vmatpush.msra.mxu0 %v483_v55  ;;  %564 = vmatpush.msra.mxu1 %v484_v56  ;;  %v933_v55 = vld [vmem:[#allocation3 + $0x6b0] sm:$0xff]  ;;  %v934_v56 = vld [vmem:[#allocation3 + $0x6b8] sm:$0xff] }
  0x95   :  { %880 = vmatpush.msrb.mxu3 %v821_v11  ;;  %858 = vmatpush.msrb.mxu2 %v806_v44  ;;  %v920_v11 = vld [vmem:[#allocation3 + $0x648] sm:$0xff] }
  0x96   :  { %v4218_v35 = vpop.permute.xlu0 %507  ;;  %v4228_v51 = vpop.permute.xlu1 %509  ;;  %536 = vmatpush.msra.mxu0 %v481_v59  ;;  %565 = vmatpush.msra.mxu1 %v482_v60  ;;  %v929_v59 = vld [vmem:[#allocation3 + $0x690] sm:$0xff]  ;;  %v930_v60 = vld [vmem:[#allocation3 + $0x698] sm:$0xff] }
  0x97   :  { %3710 = vmatmul.msk.f32.gmra.mxu0 %vm130_vm1, %v129_v14  ;;  %3714 = vmatmul.msk.f32.gmra.mxu1 %vm130_vm1, %v129_v14  ;;  %v819_v14 = vld [vmem:[#allocation3 + $0x5b8] sm:$0xff] }
  0x98   :  { %881 = vmatpush.msrb.mxu3 %v819_v14  ;;  %859 = vmatpush.msrb.mxu2 %v804_v47  ;;  %v916_v14 = vld [vmem:[#allocation3 + $0x628] sm:$0xff] }
  0x9a   :  { %882 = vmatpush.msrb.mxu3 %v817_v19 }
  0x9c   :  { %883 = vmatpush.msrb.mxu3 %v815_v25 }
  0x9e   :  { %v613_v54 = vpop.permute.xlu0 %612  ;;  %v615_v5 = vpop.permute.xlu1 %614 }
  0x9f   :  { %3723 = vmatmul.msk.f32.vlgmr.msrb.gmra.mxu0 %vm130_vm1, %v4204_v9  ;;  %3727 = vmatmul.msk.f32.vlgmr.msrb.gmra.mxu1 %vm130_vm1, %v4204_v9  ;;  %v715_v9 = vld [vmem:[#allocation3 + $0x520] sm:$0xff] }
  0xa0   :  { %3747 = vmatmul.msk.f32.vlgmr.msra.gmra.mxu2 %vm130_vm1, %v613_v54  ;;  %3751 = vmatmul.msk.f32.vlgmr.msra.gmra.mxu3 %vm130_vm1, %v613_v54  ;;  %v696_v54 = vld [vmem:[#allocation3 + $0x488] sm:$0xff] }
  0xa1   :  { %741 = vmatpush.msrb.mxu0 %v717_v21  ;;  %770 = vmatpush.msrb.mxu1 %v718_v0  ;;  %v925_v21 = vld [vmem:[#allocation3 + $0x670] sm:$0xff]  ;;  %v926_v0 = vld [vmem:[#allocation3 + $0x678] sm:$0xff] }
  0xa3   :  { %742 = vmatpush.msrb.mxu0 %v715_v9  ;;  %771 = vmatpush.msrb.mxu1 %v716_v10  ;;  %v921_v9 = vld [vmem:[#allocation3 + $0x650] sm:$0xff]  ;;  %v922_v10 = vld [vmem:[#allocation3 + $0x658] sm:$0xff] }
  0xa5   :  { %743 = vmatpush.msrb.mxu0 %v713_v36  ;;  %772 = vmatpush.msrb.mxu1 %v714_v12  ;;  %v917_v36 = vld [vmem:[#allocation3 + $0x630] sm:$0xff]  ;;  %v918_v12 = vld [vmem:[#allocation3 + $0x638] sm:$0xff] }
  0xa6   :  { %v619_v31 = vpop.permute.xlu0 %618  ;;  %v829_v49 = vpop.permute.xlu1 %828 }
  0xa7   :  { %3724 = vmatmul.msk.f32.gmra.mxu0 %vm130_vm1, %v4214_v29  ;;  %3728 = vmatmul.msk.f32.gmra.mxu1 %vm130_vm1, %v4214_v29  ;;  %v706_v29 = vld [vmem:[#allocation3 + $0x4d8] sm:$0xff] }
  0xa8   :  { %3748 = vmatmul.msk.f32.gmra.mxu2 %vm130_vm1, %v615_v5  ;;  %3752 = vmatmul.msk.f32.gmra.mxu3 %vm130_vm1, %v615_v5 }
  0xa9   :  { %744 = vmatpush.msrb.mxu0 %v711_v15  ;;  %773 = vmatpush.msrb.mxu1 %v712_v16  ;;  %v914_v15 = vld [vmem:[#allocation3 + $0x618] sm:$0xff]  ;;  %v911_v16 = vld [vmem:[#allocation3 + $0x600] sm:$0xff] }
  0xab   :  { %745 = vmatpush.msrb.mxu0 %v709_v22  ;;  %774 = vmatpush.msrb.mxu1 %v710_v23 }
  0xac   :  { %v4298_v18 = vpop.f32.mrf.mxu3 }
  0xad   :  { %746 = vmatpush.msrb.mxu0 %v707_v26  ;;  %775 = vmatpush.msrb.mxu1 %v708_v27 }
  0xae   :  { %v936_v61 = vpop.permute.xlu0 %935  ;;  %v833_v5 = vpop.permute.xlu1 %832 }
  0xaf   :  { %3725 = vmatmul.msk.f32.gmra.mxu0 %vm130_vm1, %v4210_v20  ;;  %3729 = vmatmul.msk.f32.gmra.mxu1 %vm130_vm1, %v4210_v20  ;;  %v813_v20 = vld [vmem:[#allocation3 + $0x588] sm:$0xff] }
  0xb0   :  { %3749 = vmatmul.msk.f32.gmra.mxu2 %vm130_vm1, %v617_v17  ;;  %3753 = vmatmul.msk.f32.gmra.mxu3 %vm130_vm1, %v617_v17  ;;  %v912_v17 = vld [vmem:[#allocation3 + $0x608] sm:$0xff] }
  0xb1   :  { %884 = vmatpush.msrb.mxu3 %v813_v20  ;;  %747 = vmatpush.msrb.mxu0 %v705_v28 }
  0xb2   :  { %776 = vmatpush.msrb.mxu1 %v706_v29 }
  0xb3   :  { %885 = vmatpush.msrb.mxu3 %v811_v33  ;;  %748 = vmatpush.msrb.mxu0 %v703_v34 }
  0xb4   :  { %777 = vmatpush.msrb.mxu1 %v704_v38 }
  0xb5   :  { %886 = vmatpush.msrb.mxu3 %v809_v40  ;;  %749 = vmatpush.msrb.mxu0 %v701_v42 }
  0xb6   :  { %778 = vmatpush.msrb.mxu1 %v702_v43  ;;  %v940_v25 = vpop.permute.xlu1 %939 }
  0xb7   :  { %3726 = vmatmul.msk.f32.gmra.mxu0 %vm130_vm1, %v4216_v30  ;;  %3730 = vmatmul.msk.f32.gmra.mxu1 %vm130_vm1, %v4216_v30  ;;  %v807_v30 = vld [vmem:[#allocation3 + $0x558] sm:$0xff] }
  0xb8   :  { %3750 = vmatmul.msk.f32.gmra.mxu2 %vm130_vm1, %v619_v31  ;;  %3754 = vmatmul.msk.f32.gmra.mxu3 %vm130_vm1, %v619_v31 }
  0xb9   :  { %887 = vmatpush.msrb.mxu3 %v807_v30  ;;  %750 = vmatpush.msrb.mxu0 %v699_v45 }
  0xba   :  { %779 = vmatpush.msrb.mxu1 %v700_v46 }
  0xbb   :  { %888 = vmatpush.msrb.mxu3 %v805_v41  ;;  %751 = vmatpush.msrb.mxu0 %v697_v50 }
  0xbc   :  { %780 = vmatpush.msrb.mxu1 %v698_v52 }
  0xbd   :  { %752 = vmatpush.msrb.mxu0 %v695_v53 }
  0xbe   :  { %781 = vmatpush.msrb.mxu1 %v696_v54 }
  0xbf   :  { %3739 = vmatmul.msk.f32.vlgmr.msra.gmra.mxu0 %vm130_vm1, %v4226_v48  ;;  %3743 = vmatmul.msk.f32.vlgmr.msra.gmra.mxu1 %vm130_vm1, %v4226_v48  ;;  %v831_v48 = vpop.permute.xlu2 %830 }
  0xc0   :  { %3763 = vmatmul.msk.f32.vlgmr.msrb.gmra.mxu2 %vm130_vm1, %v829_v49  ;;  %3767 = vmatmul.msk.f32.vlgmr.msrb.gmra.mxu3 %vm130_vm1, %v829_v49 }
  0xc1   :  { %955 = vmatpush.msra.mxu0 %v933_v55  ;;  %984 = vmatpush.msra.mxu1 %v934_v56 }
  0xc3   :  { %956 = vmatpush.msra.mxu0 %v931_v57  ;;  %985 = vmatpush.msra.mxu1 %v932_v58 }
  0xc5   :  { %957 = vmatpush.msra.mxu0 %v929_v59  ;;  %986 = vmatpush.msra.mxu1 %v930_v60 }
  0xc7   :  { %3740 = vmatmul.msk.f32.gmra.mxu0 %vm130_vm1, %v4218_v35  ;;  %3744 = vmatmul.msk.f32.gmra.mxu1 %vm130_vm1, %v4218_v35  ;;  %v928_v35 = vld [vmem:[#allocation3 + $0x688] sm:$0xff] }
  0xc8   :  { %3764 = vmatmul.msk.f32.gmra.mxu2 %vm130_vm1, %v831_v48  ;;  %3768 = vmatmul.msk.f32.gmra.mxu3 %vm130_vm1, %v831_v48 }
  0xc9   :  { %958 = vmatpush.msra.mxu0 %v927_v63  ;;  %987 = vmatpush.msra.mxu1 %v928_v35 }
  0xcb   :  { %959 = vmatpush.msra.mxu0 %v925_v21  ;;  %988 = vmatpush.msra.mxu1 %v926_v0 }
  0xcd   :  { %960 = vmatpush.msra.mxu0 %v923_v2  ;;  %989 = vmatpush.msra.mxu1 %v924_v8 }
  0xcf   :  { %3741 = vmatmul.msk.f32.gmra.mxu0 %vm130_vm1, %v4228_v51  ;;  %3745 = vmatmul.msk.f32.gmra.mxu1 %vm130_vm1, %v4228_v51  ;;  %v835_v51 = vpop.permute.xlu0 %834 }
  0xd0   :  { %3765 = vmatmul.msk.f32.gmra.mxu2 %vm130_vm1, %v833_v5  ;;  %3769 = vmatmul.msk.f32.gmra.mxu3 %vm130_vm1, %v833_v5 }
  0xd1   :  { %961 = vmatpush.msra.mxu0 %v921_v9  ;;  %990 = vmatpush.msra.mxu1 %v922_v10 }
  0xd3   :  { %962 = vmatpush.msra.mxu0 %v919_v1  ;;  %991 = vmatpush.msra.mxu1 %v920_v11 }
  0xd5   :  { %963 = vmatpush.msra.mxu0 %v917_v36  ;;  %992 = vmatpush.msra.mxu1 %v918_v12 }
  0xd7   :  { %3742 = vmatmul.msk.f32.gmra.mxu0 %vm130_vm1, %v4236_v4  ;;  %3746 = vmatmul.msk.f32.gmra.mxu1 %vm130_vm1, %v4236_v4  ;;  %v913_v4 = vld [vmem:[#allocation3 + $0x610] sm:$0xff] }
  0xd8   :  { %3766 = vmatmul.msk.f32.gmra.mxu2 %vm130_vm1, %v835_v51  ;;  %3770 = vmatmul.msk.f32.gmra.mxu3 %vm130_vm1, %v835_v51 }
  0xd9   :  { %964 = vmatpush.msra.mxu0 %v915_v13  ;;  %993 = vmatpush.msra.mxu1 %v916_v14 }
  0xdb   :  { %965 = vmatpush.msra.mxu0 %v913_v4  ;;  %994 = vmatpush.msra.mxu1 %v914_v15 }
  0xdd   :  { %966 = vmatpush.msra.mxu0 %v911_v16  ;;  %995 = vmatpush.msra.mxu1 %v912_v17 }
  0xdf   :  { %3755 = vmatmul.msk.f32.vlgmr.msrb.gmra.mxu0 %vm130_vm1, %v4148_v62  ;;  %3759 = vmatmul.msk.f32.vlgmr.msrb.gmra.mxu1 %vm130_vm1, %v4148_v62  ;;  %v4296_v62 = vpop.f32.mrf.mxu2 }
  0xe7   :  { %3756 = vmatmul.msk.f32.gmra.mxu0 %vm130_vm1, %v4184_v3  ;;  %3760 = vmatmul.msk.f32.gmra.mxu1 %vm130_vm1, %v4184_v3  ;;  %v938_v3 = vpop.permute.xlu2 %937  ;;  %v4310_v24 = vpop.f32.mrf.mxu2 }
  0xef   :  { %3757 = vmatmul.msk.f32.gmra.mxu0 %vm130_vm1, %v4161_v6  ;;  %3761 = vmatmul.msk.f32.gmra.mxu1 %vm130_vm1, %v4161_v6  ;;  %v228_v37 = vpop.f32.mrf.mxu2  ;;  %v942_v28 = vpop.permute.xlu2 %941 }
  0xf7   :  { %3758 = vmatmul.msk.f32.gmra.mxu0 %vm130_vm1, %v4179_v7  ;;  %3762 = vmatmul.msk.f32.gmra.mxu1 %vm130_vm1, %v4179_v7  ;;  %v4312_v7 = vpop.f32.mrf.mxu3  ;;  %v231_v32 = vpop.f32.mrf.mxu2 }
  0xfc   :  { %v4300_v19 = vpop.f32.mrf.mxu0  ;;  %v4302_v22 = vpop.f32.mrf.mxu1 }
  0xff   :  { %3771 = vmatmul.msk.f32.vlgmr.msra.gmra.mxu0 %vm130_vm1, %v936_v61  ;;  %3775 = vmatmul.msk.f32.vlgmr.msra.gmra.mxu1 %vm130_vm1, %v936_v61  ;;  %v257_v20 = vpop.f32.mrf.mxu3  ;;  %v4320_v39 = vpop.f32.mrf.mxu2 }
 0x104   :  { %v4306_v6 = vpop.f32.mrf.mxu0  ;;  %v4308_v23 = vpop.f32.mrf.mxu1 }
 0x107   :  { %3772 = vmatmul.msk.f32.gmra.mxu0 %vm130_vm1, %v938_v3  ;;  %3776 = vmatmul.msk.f32.gmra.mxu1 %vm130_vm1, %v938_v3  ;;  %v260_v33 = vpop.f32.mrf.mxu3  ;;  %v434_v44 = vpop.f32.mrf.mxu2 }
 0x10c   :  { %v162_v26 = vpop.f32.mrf.mxu0  ;;  %v191_v27 = vpop.f32.mrf.mxu1 }
 0x10f   :  { %3773 = vmatmul.msk.f32.gmra.mxu0 %vm130_vm1, %v940_v25  ;;  %3777 = vmatmul.msk.f32.gmra.mxu1 %vm130_vm1, %v940_v25  ;;  %v4322_v40 = vpop.f32.mrf.mxu3  ;;  %v437_v49 = vpop.f32.mrf.mxu2  ;;  %v229_v25 = vadd.f32 %v228_v37, %v162_v26 }
 0x114   :  { %v165_v29 = vpop.f32.mrf.mxu0  ;;  %v194_v31 = vpop.f32.mrf.mxu1 }
 0x117   :  { %3774 = vmatmul.msk.f32.gmra.mxu0 %vm130_vm1, %v942_v28  ;;  %3778 = vmatmul.msk.f32.gmra.mxu1 %vm130_vm1, %v942_v28  ;;  %v463_v30 = vpop.f32.mrf.mxu3  ;;  %v440_v54 = vpop.f32.mrf.mxu2  ;;  %v258_v28 = vadd.f32 %v257_v20, %v191_v27 }
 0x11c   :  { %v321_v34 = vpop.f32.mrf.mxu0  ;;  %v350_v38 = vpop.f32.mrf.mxu1 }
 0x11f   :  { %v466_v50 = vpop.f32.mrf.mxu3 }
 0x123   :  { %v4328_v57 = vpop.f32.mrf.mxu2 }
 0x124   :  { %v324_v42 = vpop.f32.mrf.mxu0  ;;  %v353_v43 = vpop.f32.mrf.mxu1  ;;  %4932 = vst [vmem:[#allocation10_spill] sm:$0xff] %v4328_v57 }
 0x127   :  { %v469_v48 = vpop.f32.mrf.mxu3 }
 0x12b   :  { %v648_v61 = vpop.f32.mrf.mxu2 }
 0x12c   :  { %v327_v45 = vpop.f32.mrf.mxu0  ;;  %v356_v46 = vpop.f32.mrf.mxu1 }
 0x12f   :  { %v4330_v58 = vpop.f32.mrf.mxu3 }
 0x130   :  { %4933 = vst [vmem:[#allocation11_spill] sm:$0xff] %v4330_v58  ;;  %v223_v58 = vadd.f32 %v4296_v62, %v4300_v19 }
 0x132   :  { %v362_v26 = vadd.f32 %v321_v34, %v223_v58 }
 0x133   :  { %v651_v2 = vpop.f32.mrf.mxu2 }
 0x134   :  { %v330_v47 = vpop.f32.mrf.mxu0  ;;  %v359_v41 = vpop.f32.mrf.mxu1  ;;  %v472_v62 = vadd.f32 %v4320_v39, %v362_v26 }
 0x137   :  { %v677_v63 = vpop.f32.mrf.mxu3  ;;  %v4944_v58 = vld [vmem:[#allocation11_spill] sm:$0xff] }
 0x13b   :  { %v654_v51 = vpop.f32.mrf.mxu2 }
 0x13c   :  { %v4324_v52 = vpop.f32.mrf.mxu0  ;;  %v4326_v53 = vpop.f32.mrf.mxu1 }
 0x13d   :  { %4931 = vst [vmem:[#allocation9_spill] sm:$0xff] %v4326_v53  ;;  %v579_v34 = vadd.f32 %v4324_v52, %v472_v62 }
 0x13f   :  { %v680_v8 = vpop.f32.mrf.mxu3 }
 0x143   :  { %v4336_v12 = vpop.f32.mrf.mxu2 }
 0x144   :  { %v541_v55 = vpop.f32.mrf.mxu0  ;;  %v570_v56 = vpop.f32.mrf.mxu1  ;;  %4936 = vst [vmem:[#allocation14_spill] sm:$0xff] %v4336_v12  ;;  %v255_v12 = vadd.f32 %v4312_v7, %v4308_v23 }
 0x147   :  { %v683_v1 = vpop.f32.mrf.mxu3 }
 0x14b   :  { %v4340_v15 = vpop.f32.mrf.mxu2 }
 0x14c   :  { %v544_v59 = vpop.f32.mrf.mxu0  ;;  %v573_v60 = vpop.f32.mrf.mxu1  ;;  %4938 = vst [vmem:[#allocation16_spill] sm:$0xff] %v4340_v15  ;;  %v232_v15 = vadd.f32 %v231_v32, %v165_v29 }
 0x14f   :  { %v4338_v13 = vpop.f32.mrf.mxu3 }
 0x150   :  { %4937 = vst [vmem:[#allocation15_spill] sm:$0xff] %v4338_v13  ;;  %v367_v13 = vadd.f32 %v356_v46, %v258_v28 }
 0x152   :  { %v477_v20 = vadd.f32 %v466_v50, %v367_v13 }
 0x153   :  { %v867_v19 = vpop.f32.mrf.mxu2  ;;  %v4947_v13 = vld [vmem:[#allocation16_spill] sm:$0xff] }
 0x154   :  { %v547_v35 = vpop.f32.mrf.mxu0  ;;  %v576_v5 = vpop.f32.mrf.mxu1 }
 0x157   :  { %v4342_v16 = vpop.f32.mrf.mxu3 }
 0x158   :  { %4939 = vst [vmem:[#allocation17_spill] sm:$0xff] %v4342_v16  ;;  %v252_v16 = vadd.f32 %v4298_v18, %v4302_v22 }
 0x15a   :  { %v363_v27 = vadd.f32 %v350_v38, %v252_v16  ;;  %v4942_v38 = vld [vmem:[#allocation9_spill] sm:$0xff]  ;;  %v4949_v16 = vld [vmem:[#allocation14_spill] sm:$0xff] }
 0x15c   :  { %v4332_v21 = vpop.f32.mrf.mxu0  ;;  %v4334_v0 = vpop.f32.mrf.mxu1  ;;  %v473_v18 = vadd.f32 %v4322_v40, %v363_v27 }
 0x15d   :  { %4934 = vst [vmem:[#allocation12_spill] sm:$0xff] %v4332_v21  ;;  %v366_v21 = vadd.f32 %v327_v45, %v229_v25  ;;  %v584_v25 = vadd.f32 %v573_v60, %v477_v20 }
 0x15e   :  { %4935 = vst [vmem:[#allocation13_spill] sm:$0xff] %v4334_v0  ;;  %v226_v0 = vadd.f32 %v4310_v24, %v4306_v6  ;;  %v368_v6 = vadd.f32 %v330_v47, %v232_v15 }
 0x15f   :  { %v476_v37 = vadd.f32 %v437_v49, %v366_v21  ;;  %v896_v22 = vpop.f32.mrf.mxu3  ;;  %v691_v47 = vadd.f32 %v680_v8, %v584_v25 }
 0x160   :  { %v364_v57 = vadd.f32 %v324_v42, %v226_v0  ;;  %v478_v29 = vadd.f32 %v440_v54, %v368_v6  ;;  %v580_v42 = vadd.f32 %v4942_v38, %v473_v18 }
 0x161   :  { %v583_v46 = vadd.f32 %v544_v59, %v476_v37 }
 0x162   :  { %v474_v7 = vadd.f32 %v434_v44, %v364_v57  ;;  %v585_v44 = vadd.f32 %v547_v35, %v478_v29  ;;  %v4943_v57 = vld [vmem:[#allocation10_spill] sm:$0xff]  ;;  %v687_v59 = vadd.f32 %v4944_v58, %v580_v42 }
 0x163   :  { %v686_v40 = vadd.f32 %v4943_v57, %v579_v34  ;;  %v1075_v58 = vld [vmem:[%s4925_s4] sm:$0xff] }
 0x164   :  { %v757_v9 = vpop.f32.mrf.mxu0  ;;  %v786_v10 = vpop.f32.mrf.mxu1  ;;  %v581_v32 = vadd.f32 %v541_v55, %v474_v7  ;;  %v692_v55 = vadd.f32 %v654_v51, %v585_v44  ;;  %v4945_v21 = vld [vmem:[#allocation12_spill] sm:$0xff]  ;;  %v4948_v51 = vld [vmem:[#allocation17_spill] sm:$0xff] }
 0x165   :  { %v795_v0 = vadd.f32 %v4945_v21, %v686_v40  ;;  %v1043_v40 = vld [vmem:[%s4924_s3] sm:$0xff]  ;;  %v1140_v21 = vld [vmem:[#allocation5 + $0x70] sm:$0xff] }
 0x16c   :  { %v760_v11 = vpop.f32.mrf.mxu0  ;;  %v789_v36 = vpop.f32.mrf.mxu1 }
 0x16d   :  { %v800_v39 = vadd.f32 %v789_v36, %v691_v47  ;;  %v870_v36 = vpop.f32.mrf.mxu2 }
 0x174   :  { %v763_v14 = vpop.f32.mrf.mxu0  ;;  %v792_v4 = vpop.f32.mrf.mxu1 }
 0x17c   :  { %v4344_v17 = vpop.f32.mrf.mxu0  ;;  %v4346_v3 = vpop.f32.mrf.mxu1 }
 0x17d   :  { %4940 = vst [vmem:[#allocation18_spill] sm:$0xff] %v4344_v17  ;;  %v261_v17 = vadd.f32 %v260_v33, %v194_v31 }
 0x17e   :  { %4941 = vst [vmem:[#allocation19_spill] sm:$0xff] %v4346_v3  ;;  %v365_v3 = vadd.f32 %v353_v43, %v255_v12  ;;  %v690_v43 = vadd.f32 %v651_v2, %v583_v46  ;;  %v4946_v2 = vld [vmem:[#allocation13_spill] sm:$0xff]  ;;  %v899_v12 = vpop.f32.mrf.mxu3 }
 0x17f   :  { %v369_v24 = vadd.f32 %v359_v41, %v261_v17  ;;  %v688_v41 = vadd.f32 %v648_v61, %v581_v32  ;;  %v796_v8 = vadd.f32 %v4946_v2, %v687_v59  ;;  %v801_v61 = vadd.f32 %v763_v14, %v692_v55  ;;  %v1044_v59 = vld [vmem:[%s4924_s3 + $0x8] sm:$0xff]  ;;  %v1145_v55 = vld [vmem:[#allocation5 + $0x98] sm:$0xff]  ;;  %v1138_v2 = vld [vmem:[#allocation5 + $0x60] sm:$0xff] }
 0x180   :  { %v475_v45 = vadd.f32 %v463_v30, %v365_v3  ;;  %v799_v50 = vadd.f32 %v760_v11, %v690_v43  ;;  %v1017_v11 = vld [vmem:[%s4923_s2] sm:$0x3]  ;;  %v902_v17 = vadd.f32 %v4949_v16, %v795_v0  ;;  %v4950_v3 = vld [vmem:[#allocation15_spill] sm:$0xff]  ;;  %1257 = vmatpush.msrb.mxu1 %v1145_v55  ;;  %v1141_v0 = vld [vmem:[#allocation5 + $0x78] sm:$0xff] }
 0x181   :  { %v479_v31 = vadd.f32 %v469_v48, %v369_v24  ;;  %v797_v60 = vadd.f32 %v757_v9, %v688_v41  ;;  %v903_v28 = vadd.f32 %v4950_v3, %v796_v8  ;;  %v1019_v26 = vperm.slane %v1017_v11, 0  ;;  %v1139_v8 = vld [vmem:[#allocation5 + $0x68] sm:$0xff]  ;;  %v1129_v3 = vld [vmem:[#allocation5 + $0x18] sm:$0xff]  ;;  %v1157_v55 = vld [vmem:[#allocation5 + $0xf0] sm:$0xff] }
 0x182   :  { %v582_v33 = vadd.f32 %v570_v56, %v475_v45  ;;  %v906_v35 = vadd.f32 %v867_v19, %v799_v50  ;;  %v1020_v27 = vperm.slane %v1017_v11, 1  ;;  %v908_v14 = vadd.f32 %v870_v36, %v801_v61  ;;  %v1134_v61 = vld [vmem:[#allocation5 + $0x40] sm:$0xff]  ;;  %v1132_v11 = vld [vmem:[#allocation5 + $0x30] sm:$0xff]  ;;  %v1133_v36 = vld [vmem:[#allocation5 + $0x38] sm:$0xff] }
 0x183   :  { %v586_v30 = vadd.f32 %v576_v5, %v479_v31  ;;  %v907_v5 = vadd.f32 %v896_v22, %v800_v39  ;;  %v904_v15 = vadd.f32 %v4947_v13, %v797_v60  ;;  %v1143_v60 = vld [vmem:[#allocation5 + $0x88] sm:$0xff] }
 0x184   :  { %v971_v53 = vpop.f32.mrf.mxu0  ;;  %v1000_v23 = vpop.f32.mrf.mxu1  ;;  %v689_v49 = vadd.f32 %v677_v63, %v582_v33  ;;  %v4951_v6 = vld [vmem:[#allocation18_spill] sm:$0xff]  ;;  %1258 = vmatpush.msrb.mxu1 %v1143_v60  ;;  %v1155_v60 = vld [vmem:[#allocation5 + $0xe0] sm:$0xff] }
 0x185   :  { %v693_v56 = vadd.f32 %v683_v1, %v586_v30  ;;  %v1011_v37 = vadd.f32 %v971_v53, %v904_v15  ;;  %v1009_v24 = vadd.f32 %v4951_v6, %v902_v17  ;;  %v4952_v7 = vld [vmem:[#allocation19_spill] sm:$0xff]  ;;  %v1131_v16 = vld [vmem:[#allocation5 + $0x28] sm:$0xff]  ;;  %v1371_v6 = vld [vmem:[#allocation5 + $0x258] sm:$0xff] }
 0x186   :  { %v798_v52 = vadd.f32 %v786_v10, %v689_v49  ;;  %v1010_v45 = vadd.f32 %v4952_v7, %v903_v28  ;;  %1259 = vmatpush.msrb.mxu1 %v1141_v0  ;;  %v1128_v17 = vld [vmem:[#allocation5 + $0x10] sm:$0xff]  ;;  %v1126_v28 = vld [vmem:[#allocation5] sm:$0xff]  ;;  %v1369_v7 = vld [vmem:[#allocation5 + $0x248] sm:$0xff] }
 0x187   :  { %v802_v63 = vadd.f32 %v792_v4, %v693_v56  ;;  %v1025_v29 = vadd.f32 %v1019_v26, %v1011_v37  ;;  %v1023_v34 = vadd.f32 %v1019_v26, %v1009_v24  ;;  %v1142_v56 = vld [vmem:[#allocation5 + $0x80] sm:$0xff]  ;;  %v1373_v37 = vld [vmem:[#allocation5 + $0x268] sm:$0xff]  ;;  %v1153_v0 = vld [vmem:[#allocation5 + $0xd0] sm:$0xff] }
 0x188   :  { %v905_v1 = vadd.f32 %v4948_v51, %v798_v52  ;;  %v1024_v38 = vadd.f32 %v1020_v27, %v1010_v45  ;;  %v4009_v52 = vmov 0.0   ;;  %1260 = vmatpush.msrb.mxu1 %v1139_v8  ;;  %v1368_v24 = vld [vmem:[#allocation5 + $0x240] sm:$0xff]  ;;  %v1366_v45 = vld [vmem:[#allocation5 + $0x230] sm:$0xff]  ;;  %v1152_v8 = vld [vmem:[#allocation5 + $0xc8] sm:$0xff] }
 0x189   :  { %v909_v4 = vadd.f32 %v899_v12, %v802_v63  ;;  %v1033_v47 = vmax.f32 %v1025_v29, 0.0  ;;  %v1031_v41 = vmax.f32 %v1023_v34, 0.0  ;;  %1109 = vst.msk [vmem:[#allocation2] sm:$0xff] %vm1108_vm4, %v4009_v52  ;;  %v1135_v63 = vld [vmem:[#allocation5 + $0x48] sm:$0xff] }
 0x18a   :  { %v1012_v20 = vadd.f32 %v1000_v23, %v905_v1  ;;  %v1032_v49 = vmax.f32 %v1024_v38, 0.0  ;;  %1110 = vst.msk [vmem:[#allocation2 + $0x8] sm:$0xff] %vm1108_vm4, %v4009_v52  ;;  %v1361_v29 = vld [vmem:[#allocation5 + $0x208] sm:$0xff] }
 0x18b   :  { %1112 = vst.msk [vmem:[#allocation2 + $0x10] sm:$0x3] %vm1111_vm5, %v4009_v52  ;;  %v1357_v34 = vld [vmem:[#allocation5 + $0x1e8] sm:$0xff] }
 0x18c   :  { %v974_v54 = vpop.f32.mrf.mxu0  ;;  %v1003_v48 = vpop.f32.mrf.mxu1  ;;  %v1026_v31 = vadd.f32 %v1020_v27, %v1012_v20  ;;  %v1039_v57 = vmax.f32 %v1031_v41, %v1032_v49  ;;  %v1370_v20 = vld [vmem:[#allocation5 + $0x250] sm:$0xff]  ;;  %v1162_v41 = vld [vmem:[#allocation5 + $0x118] sm:$0xff] }
 0x18d   :  { %v1013_v9 = vadd.f32 %v974_v54, %v906_v35  ;;  %v1014_v10 = vadd.f32 %v1003_v48, %v907_v5  ;;  %v1076_v54 = vld [vmem:[%s4925_s4 + $0x8] sm:$0xff]  ;;  %v1137_v5 = vld [vmem:[#allocation5 + $0x58] sm:$0xff] }
 0x18e   :  { %v1034_v44 = vmax.f32 %v1026_v31, 0.0  ;;  %v1144_v48 = vld [vmem:[#allocation5 + $0x90] sm:$0xff]  ;;  %1261 = vmatpush.msrb.mxu1 %v1137_v5  ;;  %v1150_v5 = vld [vmem:[#allocation5 + $0xb8] sm:$0xff] }
 0x18f   :  { %v1027_v62 = vadd.f32 %v1019_v26, %v1013_v9  ;;  %v1028_v18 = vadd.f32 %v1020_v27, %v1014_v10  ;;  %1234 = vmatpush.msrb.mxu0 %v1144_v48  ;;  %v1136_v35 = vld [vmem:[#allocation5 + $0x50] sm:$0xff]  ;;  %v1130_v10 = vld [vmem:[#allocation5 + $0x20] sm:$0xff]  ;;  %v1160_v48 = vld [vmem:[#allocation5 + $0x108] sm:$0xff] }
 0x190   :  { %v1040_v39 = vmax.f32 %v1033_v47, %v1034_v44  ;;  %1262 = vmatpush.msrb.mxu1 %v1135_v63  ;;  %v1358_v31 = vld [vmem:[#allocation5 + $0x1f0] sm:$0xff]  ;;  %v1163_v47 = vld [vmem:[#allocation5 + $0x120] sm:$0xff]  ;;  %v1164_v44 = vld [vmem:[#allocation5 + $0x128] sm:$0xff] }
 0x191   :  { %v1035_v42 = vmax.f32 %v1027_v62, 0.0  ;;  %v1036_v43 = vmax.f32 %v1028_v18, 0.0  ;;  %1235 = vmatpush.msrb.mxu0 %v1142_v56  ;;  %v1365_v62 = vld [vmem:[#allocation5 + $0x228] sm:$0xff]  ;;  %v1362_v18 = vld [vmem:[#allocation5 + $0x210] sm:$0xff]  ;;  %v1158_v56 = vld [vmem:[#allocation5 + $0xf8] sm:$0xff] }
 0x192   :  { %1263 = vmatpush.msrb.mxu1 %v1133_v36  ;;  %v1148_v63 = vld [vmem:[#allocation5 + $0xa8] sm:$0xff] }
 0x193   :  { %v1041_v50 = vmax.f32 %v1035_v42, %v1036_v43  ;;  %1236 = vmatpush.msrb.mxu0 %v1140_v21  ;;  %v1156_v21 = vld [vmem:[#allocation5 + $0xe8] sm:$0xff] }
 0x194   :  { %v977_v46 = vpop.f32.mrf.mxu0  ;;  %v1006_v25 = vpop.f32.mrf.mxu1  ;;  %1264 = vmatpush.msrb.mxu1 %v1131_v16  ;;  %v1529_v36 = vld [vmem:[#allocation5 + $0x3a8] sm:$0xff] }
 0x195   :  { %v1015_v19 = vadd.f32 %v977_v46, %v908_v14  ;;  %v1016_v22 = vadd.f32 %v1006_v25, %v909_v4  ;;  %1237 = vmatpush.msrb.mxu0 %v1138_v2  ;;  %v1375_v14 = vld [vmem:[#allocation5 + $0x278] sm:$0xff]  ;;  %v1372_v4 = vld [vmem:[#allocation5 + $0x260] sm:$0xff]  ;;  %v1521_v16 = vld [vmem:[#allocation5 + $0x368] sm:$0xff] }
 0x196   :  { %1265 = vmatpush.msrb.mxu1 %v1129_v3  ;;  %v1367_v46 = vld [vmem:[#allocation5 + $0x238] sm:$0xff]  ;;  %v1364_v25 = vld [vmem:[#allocation5 + $0x220] sm:$0xff] }
 0x197   :  { %v1029_v32 = vadd.f32 %v1019_v26, %v1015_v19  ;;  %v1030_v33 = vadd.f32 %v1020_v27, %v1016_v22  ;;  %1238 = vmatpush.msrb.mxu0 %v1136_v35  ;;  %v1127_v26 = vld [vmem:[#allocation5 + $0x8] sm:$0xff]  ;;  %v1374_v27 = vld [vmem:[#allocation5 + $0x270] sm:$0xff]  ;;  %v1363_v19 = vld [vmem:[#allocation5 + $0x218] sm:$0xff] }
 0x198   :  { %1266 = vmatpush.msrb.mxu1 %v1127_v26  ;;  %v1360_v22 = vld [vmem:[#allocation5 + $0x200] sm:$0xff]  ;;  %v1154_v2 = vld [vmem:[#allocation5 + $0xd8] sm:$0xff]  ;;  %v1149_v35 = vld [vmem:[#allocation5 + $0xb0] sm:$0xff] }
 0x199   :  { %v1037_v53 = vmax.f32 %v1029_v32, 0.0  ;;  %v1038_v23 = vmax.f32 %v1030_v33, 0.0  ;;  %1239 = vmatpush.msrb.mxu0 %v1134_v61  ;;  %v1359_v32 = vld [vmem:[#allocation5 + $0x1f8] sm:$0xff]  ;;  %v1356_v33 = vld [vmem:[#allocation5 + $0x1e0] sm:$0xff] }
 0x19a   :  { %1411 = vmatpush.msra.mxu1 %v1375_v14  ;;  %v1147_v61 = vld [vmem:[#allocation5 + $0xa0] sm:$0xff]  ;;  %v1519_v3 = vld [vmem:[#allocation5 + $0x358] sm:$0xff]  ;;  %v1517_v14 = vld [vmem:[#allocation5 + $0x348] sm:$0xff] }
 0x19b   :  { %v1042_v30 = vmax.f32 %v1037_v53, %v1038_v23  ;;  %1240 = vmatpush.msrb.mxu0 %v1132_v11  ;;  %v1165_v53 = vld [vmem:[#allocation5 + $0x130] sm:$0xff]  ;;  %v1166_v23 = vld [vmem:[#allocation5 + $0x138] sm:$0xff]  ;;  %v1528_v11 = vld [vmem:[#allocation5 + $0x3a0] sm:$0xff] }
 0x19c   :  { %1412 = vmatpush.msra.mxu1 %v1373_v37  ;;  %v1294_v26 = vld [vmem:[#allocation5 + $0x1d8] sm:$0xff]  ;;  %v1292_v37 = vld [vmem:[#allocation5 + $0x1c8] sm:$0xff] }
 0x19d   :  { %1064 = vmatpush.msra.mxu2 %v1042_v30  ;;  %1095 = vmatpush.msra.mxu3 %v1042_v30  ;;  %v1161_v30 = vld [vmem:[#allocation5 + $0x110] sm:$0xff] }
 0x19e   :  { %1241 = vmatpush.msrb.mxu0 %v1130_v10  ;;  %1413 = vmatpush.msra.mxu1 %v1371_v6  ;;  %v1520_v10 = vld [vmem:[#allocation5 + $0x360] sm:$0xff]  ;;  %v1515_v6 = vld [vmem:[#allocation5 + $0x338] sm:$0xff] }
 0x19f   :  { %1065 = vmatpush.msra.mxu2 %v1041_v50  ;;  %1096 = vmatpush.msra.mxu3 %v1041_v50  ;;  %v1159_v50 = vld [vmem:[#allocation5 + $0x100] sm:$0xff] }
 0x1a0   :  { %1242 = vmatpush.msrb.mxu0 %v1128_v17  ;;  %1414 = vmatpush.msra.mxu1 %v1369_v7  ;;  %v1518_v17 = vld [vmem:[#allocation5 + $0x350] sm:$0xff]  ;;  %v1513_v7 = vld [vmem:[#allocation5 + $0x328] sm:$0xff] }
 0x1a1   :  { %1066 = vmatpush.msra.mxu2 %v1040_v39  ;;  %1097 = vmatpush.msra.mxu3 %v1040_v39  ;;  %v1530_v39 = vld [vmem:[#allocation5 + $0x3b0] sm:$0xff] }
 0x1a2   :  { %1243 = vmatpush.msrb.mxu0 %v1126_v28  ;;  %1415 = vmatpush.msra.mxu1 %v1367_v46  ;;  %v1293_v28 = vld [vmem:[#allocation5 + $0x1d0] sm:$0xff]  ;;  %v1290_v46 = vld [vmem:[#allocation5 + $0x1b8] sm:$0xff] }
 0x1a3   :  { %1067 = vmatpush.msra.mxu2 %v1039_v57  ;;  %1098 = vmatpush.msra.mxu3 %v1039_v57  ;;  %v1531_v57 = vld [vmem:[#allocation5 + $0x3b8] sm:$0xff] }
 0x1a4   :  { %3779 = vmatmul.msk.f32.vlgmr.msra.gmra.mxu2 %vm1045_vm3, %v1043_v40  ;;  %3781 = vmatmul.msk.f32.vlgmr.msra.gmra.mxu3 %vm1045_vm3, %v1075_v58 }
 0x1a5   :  { %1388 = vmatpush.msra.mxu0 %v1374_v27  ;;  %1416 = vmatpush.msra.mxu1 %v1365_v62  ;;  %v1516_v27 = vld [vmem:[#allocation5 + $0x340] sm:$0xff]  ;;  %v1288_v62 = vld [vmem:[#allocation5 + $0x1a8] sm:$0xff] }
 0x1a6   :  { %1184 = vmatpush.msrb.mxu2 %v1165_v53  ;;  %1207 = vmatpush.msrb.mxu3 %v1166_v23  ;;  %v1276_v53 = vld [vmem:[#allocation5 + $0x148] sm:$0xff]  ;;  %v1451_v23 = vld [vmem:[#allocation5 + $0x310] sm:$0xff] }
 0x1a7   :  { %1389 = vmatpush.msra.mxu0 %v1372_v4  ;;  %1417 = vmatpush.msra.mxu1 %v1363_v19  ;;  %v1291_v4 = vld [vmem:[#allocation5 + $0x1c0] sm:$0xff]  ;;  %v1286_v19 = vld [vmem:[#allocation5 + $0x198] sm:$0xff] }
 0x1a8   :  { %1185 = vmatpush.msrb.mxu2 %v1163_v47  ;;  %1208 = vmatpush.msrb.mxu3 %v1164_v44  ;;  %v1452_v47 = vld [vmem:[#allocation5 + $0x318] sm:$0xff] }
 0x1a9   :  { %1390 = vmatpush.msra.mxu0 %v1370_v20  ;;  %1418 = vmatpush.msra.mxu1 %v1361_v29  ;;  %v1514_v20 = vld [vmem:[#allocation5 + $0x330] sm:$0xff]  ;;  %v1284_v29 = vld [vmem:[#allocation5 + $0x188] sm:$0xff] }
 0x1aa   :  { %1186 = vmatpush.msrb.mxu2 %v1161_v30  ;;  %1209 = vmatpush.msrb.mxu3 %v1162_v41  ;;  %v1449_v30 = vld [vmem:[#allocation5 + $0x300] sm:$0xff]  ;;  %v1450_v41 = vld [vmem:[#allocation5 + $0x308] sm:$0xff] }
 0x1ab   :  { %1391 = vmatpush.msra.mxu0 %v1368_v24  ;;  %1419 = vmatpush.msra.mxu1 %v1359_v32  ;;  %v1512_v24 = vld [vmem:[#allocation5 + $0x320] sm:$0xff]  ;;  %v1282_v32 = vld [vmem:[#allocation5 + $0x178] sm:$0xff] }
 0x1ac   :  { %3780 = vmatmul.msk.f32.gmra.mxu2 %vm1045_vm3, %v1044_v59  ;;  %3782 = vmatmul.msk.f32.gmra.mxu3 %vm1045_vm3, %v1076_v54 }
 0x1ad   :  { %1392 = vmatpush.msra.mxu0 %v1366_v45  ;;  %1420 = vmatpush.msra.mxu1 %v1357_v34  ;;  %v1289_v45 = vld [vmem:[#allocation5 + $0x1b0] sm:$0xff]  ;;  %v1280_v34 = vld [vmem:[#allocation5 + $0x168] sm:$0xff] }
 0x1ae   :  { %1187 = vmatpush.msrb.mxu2 %v1159_v50  ;;  %1210 = vmatpush.msrb.mxu3 %v1160_v48  ;;  %v1448_v50 = vld [vmem:[#allocation5 + $0x2f8] sm:$0xff]  ;;  %v1443_v48 = vld [vmem:[#allocation5 + $0x2d0] sm:$0xff] }
 0x1af   :  { %1393 = vmatpush.msra.mxu0 %v1364_v25  ;;  %v1287_v25 = vld [vmem:[#allocation5 + $0x1a0] sm:$0xff] }
 0x1b0   :  { %1188 = vmatpush.msrb.mxu2 %v1157_v55  ;;  %1211 = vmatpush.msrb.mxu3 %v1158_v56  ;;  %v1444_v55 = vld [vmem:[#allocation5 + $0x2d8] sm:$0xff] }
 0x1b1   :  { %1394 = vmatpush.msra.mxu0 %v1362_v18  ;;  %v1285_v18 = vld [vmem:[#allocation5 + $0x190] sm:$0xff] }
 0x1b2   :  { %1189 = vmatpush.msrb.mxu2 %v1155_v60  ;;  %1212 = vmatpush.msrb.mxu3 %v1156_v21  ;;  %v1686_v60 = vld [vmem:[#allocation5 + $0x4e0] sm:$0xff]  ;;  %v1687_v21 = vld [vmem:[#allocation5 + $0x4e8] sm:$0xff] }
 0x1b3   :  { %1395 = vmatpush.msra.mxu0 %v1360_v22  ;;  %v1283_v22 = vld [vmem:[#allocation5 + $0x180] sm:$0xff] }
 0x1b4   :  { %1190 = vmatpush.msrb.mxu2 %v1153_v0  ;;  %1213 = vmatpush.msrb.mxu3 %v1154_v2  ;;  %v1441_v0 = vld [vmem:[#allocation5 + $0x2c0] sm:$0xff]  ;;  %v1442_v2 = vld [vmem:[#allocation5 + $0x2c8] sm:$0xff] }
 0x1b5   :  { %1396 = vmatpush.msra.mxu0 %v1358_v31  ;;  %v1281_v31 = vld [vmem:[#allocation5 + $0x170] sm:$0xff] }
 0x1b6   :  { %1214 = vmatpush.msrb.mxu3 %v1152_v8  ;;  %v1685_v8 = vld [vmem:[#allocation5 + $0x4d8] sm:$0xff] }
 0x1b7   :  { %1397 = vmatpush.msra.mxu0 %v1356_v33  ;;  %v1279_v33 = vld [vmem:[#allocation5 + $0x160] sm:$0xff] }
 0x1b8   :  { %1215 = vmatpush.msrb.mxu3 %v1150_v5  ;;  %v1440_v5 = vld [vmem:[#allocation5 + $0x2b8] sm:$0xff] }
 0x1ba   :  { %1216 = vmatpush.msrb.mxu3 %v1148_v63  ;;  %v1683_v63 = vld [vmem:[#allocation5 + $0x4c8] sm:$0xff] }
 0x1bc   :  { %1332 = vmatpush.msra.mxu3 %v1294_v26  ;;  %v1674_v26 = vld [vmem:[#allocation5 + $0x480] sm:$0xff] }
 0x1be   :  { %1333 = vmatpush.msra.mxu3 %v1292_v37  ;;  %v1670_v37 = vld [vmem:[#allocation5 + $0x460] sm:$0xff] }
 0x1c0   :  { %1334 = vmatpush.msra.mxu3 %v1290_v46 }
 0x1c2   :  { %1335 = vmatpush.msra.mxu3 %v1288_v62  ;;  %v1610_v62 = vld [vmem:[#allocation5 + $0x448] sm:$0xff] }
 0x1c4   :  { %1336 = vmatpush.msra.mxu3 %v1286_v19  ;;  %v1608_v19 = vld [vmem:[#allocation5 + $0x438] sm:$0xff] }
 0x1c6   :  { %1337 = vmatpush.msra.mxu3 %v1284_v29  ;;  %v1605_v29 = vld [vmem:[#allocation5 + $0x420] sm:$0xff] }
 0x1c8   :  { %1338 = vmatpush.msra.mxu3 %v1282_v32 }
 0x1ca   :  { %1339 = vmatpush.msra.mxu3 %v1280_v34  ;;  %v1604_v34 = vld [vmem:[#allocation5 + $0x418] sm:$0xff] }
 0x227   :  { %v1069_v12 = vpop.f32.mrf.mxu2  ;;  %v1100_v13 = vpop.f32.mrf.mxu3 }
 0x228   :  { %v1106_v15 = vmax.f32 %v1069_v12, %v1100_v13  ;;  %v1526_v12 = vld [vmem:[#allocation5 + $0x390] sm:$0xff]  ;;  %v1527_v13 = vld [vmem:[#allocation5 + $0x398] sm:$0xff] }
 0x22a   :  { %1115 = vrot.lane.b32.xlu0 %v1106_v15, %s4010_s20  ;;  %v1524_v15 = vld [vmem:[#allocation5 + $0x380] sm:$0xff] }
 0x22f   :  { %v1072_v51 = vpop.f32.mrf.mxu2  ;;  %v1103_v1 = vpop.f32.mrf.mxu3 }
 0x230   :  { %v1107_v9 = vmax.f32 %v1072_v51, %v1103_v1  ;;  %v1525_v51 = vld [vmem:[#allocation5 + $0x388] sm:$0xff]  ;;  %v1522_v1 = vld [vmem:[#allocation5 + $0x370] sm:$0xff] }
 0x232   :  { %1117 = vrot.lane.b32.xlu1 %v1107_v9, %s4010_s20  ;;  %v1523_v9 = vld [vmem:[#allocation5 + $0x378] sm:$0xff] }
 0x29c   :  { %v1116_v38 = vpop.permute.xlu0 %1115 }
 0x29d   :  { %1122 = vst.msk [vmem:[#allocation2 + $0x1] sm:$0xff] %vm1121_vm6, %v1116_v38  ;;  %v1277_v38 = vld [vmem:[#allocation5 + $0x150] sm:$0xff] }
 0x2a4   :  { %v1118_v42 = vpop.permute.xlu1 %1117  ;;  %v1124_v43 = vld [vmem:[#allocation2] sm:$0xff] }
 0x2a5   :  { %1123 = vst.msk [vmem:[#allocation2 + $0x9] sm:$0xff] %vm1121_vm6, %v1118_v42  ;;  %1169 = vrot.lane.b32.xlu2 %v1124_v43, %s4011_s1  ;;  %3787 = vmatmul.msk.f32.vlgmr.msrb.gmra.mxu0 %vm1173_vm7, %v1124_v43  ;;  %v1353_v49 = vld [vmem:[#allocation2 + $0x1] sm:$0xff]  ;;  %v1278_v42 = vld [vmem:[#allocation5 + $0x158] sm:$0xff] }
 0x2a6   :  { %3789 = vmatmul.msk.f32.vlgmr.msrb.gmra.mxu1 %vm1173_vm7, %v1124_v43  ;;  %1295 = vrot.lane.b32.xlu1 %v1124_v43, %s4012_s21  ;;  %v1275_v43 = vld [vmem:[#allocation5 + $0x140] sm:$0xff] }
 0x2a7   :  { %1546 = vmatpush.msrb.mxu0 %v1530_v39  ;;  %1569 = vmatpush.msrb.mxu1 %v1531_v57  ;;  %v1445_v39 = vld [vmem:[#allocation5 + $0x2e0] sm:$0xff]  ;;  %v1446_v57 = vld [vmem:[#allocation5 + $0x2e8] sm:$0xff] }
 0x2a8   :  { %1340 = vmatpush.msra.mxu3 %v1278_v42  ;;  %v1602_v42 = vld [vmem:[#allocation5 + $0x408] sm:$0xff] }
 0x2a9   :  { %1547 = vmatpush.msrb.mxu0 %v1528_v11  ;;  %1570 = vmatpush.msrb.mxu1 %v1529_v36  ;;  %v1437_v11 = vld [vmem:[#allocation5 + $0x2a0] sm:$0xff]  ;;  %v1438_v36 = vld [vmem:[#allocation5 + $0x2a8] sm:$0xff] }
 0x2aa   :  { %1341 = vmatpush.msra.mxu3 %v1276_v53  ;;  %v1600_v53 = vld [vmem:[#allocation5 + $0x3f8] sm:$0xff] }
 0x2ab   :  { %1548 = vmatpush.msrb.mxu0 %v1526_v12  ;;  %1571 = vmatpush.msrb.mxu1 %v1527_v13  ;;  %v1680_v12 = vld [vmem:[#allocation5 + $0x4b0] sm:$0xff]  ;;  %v1681_v13 = vld [vmem:[#allocation5 + $0x4b8] sm:$0xff] }
 0x2ac   :  { %v1354_v40 = vld [vmem:[#allocation2 + $0x9] sm:$0xff] }
 0x2ad   :  { %v1125_v58 = vld [vmem:[#allocation2 + $0x8] sm:$0xff]  ;;  %1549 = vmatpush.msrb.mxu0 %v1524_v15  ;;  %1572 = vmatpush.msrb.mxu1 %v1525_v51 }
 0x2ae   :  { %v4403_v59 = vld [vmem:[#allocation2 + $0x2] sm:$0xff]  ;;  %1297 = vrot.lane.b32.xlu2 %v1125_v58, %s4012_s21  ;;  %1171 = vrot.lane.b32.xlu0 %v1125_v58, %s4011_s1  ;;  %v4409_v54 = vld [vmem:[#allocation2 + $0xa] sm:$0xff] }
 0x2af   :  { %2927 = vst.msk [vmem:[#allocation2] sm:$0xff] %vm1108_vm4, %v4009_v52  ;;  %1455 = vrot.lane.b32.xlu1 %v1354_v40, %s4011_s1  ;;  %3788 = vmatmul.msk.f32.gmra.mxu0 %vm1173_vm7, %v1125_v58  ;;  %v1435_v51 = vld [vmem:[#allocation5 + $0x290] sm:$0xff] }
 0x2b0   :  { %2929 = vst.msk [vmem:[#allocation2 + $0x10] sm:$0x3] %vm1111_vm5, %v4009_v52  ;;  %3790 = vmatmul.msk.f32.gmra.mxu1 %vm1173_vm7, %v1125_v58  ;;  %1550 = vmatpush.msrb.mxu0 %v1522_v1  ;;  %v1689_v58 = vld [vmem:[#allocation5 + $0x4f8] sm:$0xff] }
 0x2b1   :  { %2928 = vst.msk [vmem:[#allocation2 + $0x8] sm:$0xff] %vm1108_vm4, %v4009_v52  ;;  %v1151_v52 = vld [vmem:[#allocation5 + $0xc0] sm:$0xff]  ;;  %1573 = vmatpush.msrb.mxu1 %v1523_v9  ;;  %v1436_v1 = vld [vmem:[#allocation5 + $0x298] sm:$0xff] }
 0x2b2   :  { %1191 = vmatpush.msrb.mxu2 %v1151_v52  ;;  %1551 = vmatpush.msrb.mxu0 %v1520_v10  ;;  %v1684_v52 = vld [vmem:[#allocation5 + $0x4d0] sm:$0xff]  ;;  %v1678_v9 = vld [vmem:[#allocation5 + $0x4a0] sm:$0xff]  ;;  %v1679_v10 = vld [vmem:[#allocation5 + $0x4a8] sm:$0xff] }
 0x2b3   :  { %1574 = vmatpush.msrb.mxu1 %v1521_v16  ;;  %v1433_v16 = vld [vmem:[#allocation5 + $0x280] sm:$0xff] }
 0x2b4   :  { %1192 = vmatpush.msrb.mxu2 %v1149_v35  ;;  %1552 = vmatpush.msrb.mxu0 %v1518_v17  ;;  %v1439_v35 = vld [vmem:[#allocation5 + $0x2b0] sm:$0xff]  ;;  %v1434_v17 = vld [vmem:[#allocation5 + $0x288] sm:$0xff] }
 0x2b5   :  { %1575 = vmatpush.msrb.mxu1 %v1519_v3  ;;  %v1676_v3 = vld [vmem:[#allocation5 + $0x490] sm:$0xff] }
 0x2b6   :  { %1532 = vrot.lane.b32.xlu2 %v1353_v49, %s4012_s21  ;;  %1453 = vrot.lane.b32.xlu0 %v1353_v49, %s4011_s1 }
 0x2b7   :  { %1769 = vrot.lane.b32.xlu1 %v4403_v59, %s4012_s21  ;;  %3795 = vmatmul.msk.f32.vlgmr.msra.gmra.mxu0 %vm1173_vm7, %v1353_v49 }
 0x2b8   :  { %3797 = vmatmul.msk.f32.vlgmr.msra.gmra.mxu1 %vm1173_vm7, %v1353_v49  ;;  %1193 = vmatpush.msrb.mxu2 %v1147_v61  ;;  %v1447_v49 = vld [vmem:[#allocation5 + $0x2f0] sm:$0xff]  ;;  %v1682_v61 = vld [vmem:[#allocation5 + $0x4c0] sm:$0xff] }
 0x2b9   :  { %1553 = vmatpush.msrb.mxu0 %v1516_v27  ;;  %1576 = vmatpush.msrb.mxu1 %v1517_v14  ;;  %v1675_v27 = vld [vmem:[#allocation5 + $0x488] sm:$0xff]  ;;  %v1672_v14 = vld [vmem:[#allocation5 + $0x470] sm:$0xff] }
 0x2ba   :  { %1309 = vmatpush.msra.mxu2 %v1293_v28  ;;  %v1677_v28 = vld [vmem:[#allocation5 + $0x498] sm:$0xff] }
 0x2bb   :  { %1554 = vmatpush.msrb.mxu0 %v1514_v20  ;;  %1577 = vmatpush.msrb.mxu1 %v1515_v6  ;;  %v1671_v20 = vld [vmem:[#allocation5 + $0x468] sm:$0xff] }
 0x2bc   :  { %1310 = vmatpush.msra.mxu2 %v1291_v4  ;;  %v1673_v4 = vld [vmem:[#allocation5 + $0x478] sm:$0xff] }
 0x2bd   :  { %1555 = vmatpush.msrb.mxu0 %v1512_v24  ;;  %1578 = vmatpush.msrb.mxu1 %v1513_v7  ;;  %v1611_v7 = vld [vmem:[#allocation5 + $0x450] sm:$0xff] }
 0x2be   :  { %1690 = vrot.lane.b32.xlu2 %v4403_v59, %s4011_s1  ;;  %1534 = vrot.lane.b32.xlu0 %v1354_v40, %s4012_s21 }
 0x2bf   :  { %1692 = vrot.lane.b32.xlu1 %v4409_v54, %s4011_s1  ;;  %3796 = vmatmul.msk.f32.gmra.mxu0 %vm1173_vm7, %v1354_v40 }
 0x2c0   :  { %3798 = vmatmul.msk.f32.gmra.mxu1 %vm1173_vm7, %v1354_v40  ;;  %1311 = vmatpush.msra.mxu2 %v1289_v45  ;;  %v1688_v40 = vld [vmem:[#allocation5 + $0x4f0] sm:$0xff]  ;;  %v1612_v45 = vld [vmem:[#allocation5 + $0x458] sm:$0xff] }
 0x2c1   :  { %1704 = vmatpush.msra.mxu0 %v1688_v40  ;;  %1727 = vmatpush.msra.mxu1 %v1689_v58  ;;  %v1768_v40 = vld [vmem:[#allocation5 + $0x598] sm:$0xff]  ;;  %v1765_v58 = vld [vmem:[#allocation5 + $0x580] sm:$0xff] }
 0x2c2   :  { %1312 = vmatpush.msra.mxu2 %v1287_v25  ;;  %v1609_v25 = vld [vmem:[#allocation5 + $0x440] sm:$0xff] }
 0x2c3   :  { %1705 = vmatpush.msra.mxu0 %v1686_v60  ;;  %1728 = vmatpush.msra.mxu1 %v1687_v21  ;;  %v4465_v60 = vld [vmem:[%s4921_s0 + $0x38] sm:$0xff]  ;;  %v1763_v21 = vld [vmem:[#allocation5 + $0x570] sm:$0xff] }
 0x2c4   :  { %1313 = vmatpush.msra.mxu2 %v1285_v18  ;;  %v1607_v18 = vld [vmem:[#allocation5 + $0x430] sm:$0xff] }
 0x2c5   :  { %1706 = vmatpush.msra.mxu0 %v1684_v52  ;;  %1729 = vmatpush.msra.mxu1 %v1685_v8  ;;  %v1762_v52 = vld [vmem:[#allocation5 + $0x568] sm:$0xff]  ;;  %v1759_v8 = vld [vmem:[#allocation5 + $0x550] sm:$0xff] }
 0x2c6   :  { %1771 = vrot.lane.b32.xlu0 %v4409_v54, %s4012_s21  ;;  %1314 = vmatpush.msra.mxu2 %v1283_v22 }
 0x2c7   :  { %1707 = vmatpush.msra.mxu0 %v1682_v61  ;;  %1730 = vmatpush.msra.mxu1 %v1683_v63  ;;  %v1758_v61 = vld [vmem:[#allocation5 + $0x548] sm:$0xff]  ;;  %v1755_v63 = vld [vmem:[#allocation5 + $0x530] sm:$0xff] }
 0x2c8   :  { %1315 = vmatpush.msra.mxu2 %v1281_v31  ;;  %v1606_v31 = vld [vmem:[#allocation5 + $0x428] sm:$0xff]  ;;  %1956 = vrot.lane.b32.xlu1 %v4465_v60, %s4007_s5 }
 0x2c9   :  { %1708 = vmatpush.msra.mxu0 %v1680_v12  ;;  %1731 = vmatpush.msra.mxu1 %v1681_v13  ;;  %v1754_v12 = vld [vmem:[#allocation5 + $0x528] sm:$0xff]  ;;  %v1751_v13 = vld [vmem:[#allocation5 + $0x510] sm:$0xff] }
 0x2ca   :  { %1316 = vmatpush.msra.mxu2 %v1279_v33  ;;  %v1603_v33 = vld [vmem:[#allocation5 + $0x410] sm:$0xff] }
 0x2cb   :  { %1709 = vmatpush.msra.mxu0 %v1678_v9  ;;  %1732 = vmatpush.msra.mxu1 %v1679_v10  ;;  %v4501_v9 = vld [vmem:[%s4921_s0 + $0x40] sm:$0xff] }
 0x2cc   :  { %1317 = vmatpush.msra.mxu2 %v1277_v38  ;;  %v1601_v38 = vld [vmem:[#allocation5 + $0x400] sm:$0xff] }
 0x2cd   :  { %1710 = vmatpush.msra.mxu0 %v1676_v3  ;;  %1733 = vmatpush.msra.mxu1 %v1677_v28 }
 0x2ce   :  { %1318 = vmatpush.msra.mxu2 %v1275_v43  ;;  %v1599_v43 = vld [vmem:[#allocation5 + $0x3f0] sm:$0xff] }
 0x2cf   :  { %1711 = vmatpush.msra.mxu0 %v1674_v26  ;;  %1734 = vmatpush.msra.mxu1 %v1675_v27 }
 0x2d1   :  { %1712 = vmatpush.msra.mxu0 %v1672_v14  ;;  %1735 = vmatpush.msra.mxu1 %v1673_v4  ;;  %v2226_v14 = vrot.slane %v4465_v60, 1  ;;  %v2228_v4 = vrot.slane %v4501_v9, 1 }
 0x2d3   :  { %1713 = vmatpush.msra.mxu0 %v1670_v37  ;;  %1736 = vmatpush.msra.mxu1 %v1671_v20  ;;  %v4527_v37 = vsel %vm396_vm0, %v2226_v14, %v2228_v4 }
 0x2ff   :  { %v1170_v44 = vpop.permute.xlu2 %1169 }
 0x300   :  { %3783 = vmatmul.msk.f32.vlgmr.msrb.gmra.mxu2 %vm1173_vm7, %v1170_v44  ;;  %3785 = vmatmul.msk.f32.vlgmr.msrb.gmra.mxu3 %vm1173_vm7, %v1170_v44  ;;  %v1598_v44 = vld [vmem:[#allocation5 + $0x3e8] sm:$0xff] }
 0x301   :  { %1467 = vmatpush.msrb.mxu2 %v1451_v23  ;;  %1490 = vmatpush.msrb.mxu3 %v1452_v47  ;;  %v1597_v47 = vld [vmem:[#allocation5 + $0x3e0] sm:$0xff] }
 0x303   :  { %1468 = vmatpush.msrb.mxu2 %v1449_v30  ;;  %1491 = vmatpush.msrb.mxu3 %v1450_v41  ;;  %v1595_v41 = vld [vmem:[#allocation5 + $0x3d0] sm:$0xff] }
 0x305   :  { %1469 = vmatpush.msrb.mxu2 %v1447_v49  ;;  %1492 = vmatpush.msrb.mxu3 %v1448_v50  ;;  %v1596_v49 = vld [vmem:[#allocation5 + $0x3d8] sm:$0xff]  ;;  %v1593_v50 = vld [vmem:[#allocation5 + $0x3c0] sm:$0xff] }
 0x307   :  { %1470 = vmatpush.msrb.mxu2 %v1445_v39  ;;  %1493 = vmatpush.msrb.mxu3 %v1446_v57  ;;  %v1594_v39 = vld [vmem:[#allocation5 + $0x3c8] sm:$0xff]  ;;  %v1767_v57 = vld [vmem:[#allocation5 + $0x590] sm:$0xff] }
 0x308   :  { %v4435_v56 = vpop.permute.xlu2 %1297 }
 0x309   :  { %1471 = vmatpush.msrb.mxu2 %v1443_v48  ;;  %1494 = vmatpush.msrb.mxu3 %v1444_v55  ;;  %v1766_v48 = vld [vmem:[#allocation5 + $0x588] sm:$0xff] }
 0x30b   :  { %1472 = vmatpush.msrb.mxu2 %v1441_v0  ;;  %1495 = vmatpush.msrb.mxu3 %v1442_v2  ;;  %v1764_v0 = vld [vmem:[#allocation5 + $0x578] sm:$0xff]  ;;  %v1761_v2 = vld [vmem:[#allocation5 + $0x560] sm:$0xff] }
 0x30d   :  { %1473 = vmatpush.msrb.mxu2 %v1439_v35  ;;  %1496 = vmatpush.msrb.mxu3 %v1440_v5  ;;  %v1760_v35 = vld [vmem:[#allocation5 + $0x558] sm:$0xff]  ;;  %v1757_v5 = vld [vmem:[#allocation5 + $0x540] sm:$0xff] }
 0x30f   :  { %1474 = vmatpush.msrb.mxu2 %v1437_v11  ;;  %1497 = vmatpush.msrb.mxu3 %v1438_v36  ;;  %v1756_v11 = vld [vmem:[#allocation5 + $0x538] sm:$0xff]  ;;  %v1753_v36 = vld [vmem:[#allocation5 + $0x520] sm:$0xff] }
 0x310   :  { %v1533_v15 = vpop.permute.xlu2 %1532 }
 0x311   :  { %3803 = vmatmul.msk.f32.vlgmr.msrb.gmra.mxu0 %vm1173_vm7, %v1533_v15  ;;  %3805 = vmatmul.msk.f32.vlgmr.msrb.gmra.mxu1 %vm1173_vm7, %v1533_v15  ;;  %v1752_v15 = vld [vmem:[#allocation5 + $0x518] sm:$0xff] }
 0x312   :  { %1475 = vmatpush.msrb.mxu2 %v1435_v51  ;;  %1498 = vmatpush.msrb.mxu3 %v1436_v1  ;;  %v1750_v51 = vld [vmem:[#allocation5 + $0x508] sm:$0xff] }
 0x314   :  { %1476 = vmatpush.msrb.mxu2 %v1433_v16  ;;  %1499 = vmatpush.msrb.mxu3 %v1434_v17 }
 0x318   :  { %v1296_v24 = vpop.permute.xlu1 %1295  ;;  %v1691_v30 = vpop.permute.xlu2 %1690 }
 0x320   :  { %v1172_v6 = vpop.permute.xlu0 %1171 }
 0x321   :  { %3784 = vmatmul.msk.f32.gmra.mxu2 %vm1173_vm7, %v1172_v6  ;;  %3786 = vmatmul.msk.f32.gmra.mxu3 %vm1173_vm7, %v1172_v6  ;;  %v1456_v22 = vpop.permute.xlu1 %1455 }
 0x322   :  { %v4520_v26 = vpop.f32.mrf.mxu0 }
 0x323   :  { %v4522_v27 = vpop.f32.mrf.mxu1 }
 0x328   :  { %v1454_v46 = vpop.permute.xlu0 %1453 }
 0x329   :  { %3791 = vmatmul.msk.f32.vlgmr.msra.gmra.mxu2 %vm1173_vm7, %v1296_v24  ;;  %3793 = vmatmul.msk.f32.vlgmr.msra.gmra.mxu3 %vm1173_vm7, %v1296_v24  ;;  %v4449_v23 = vpop.permute.xlu1 %1769  ;;  %v4538_v24 = vld [vmem:[%s4921_s0 + $0x48] sm:$0x3] }
 0x32a   :  { %1625 = vmatpush.msra.mxu2 %v1611_v7  ;;  %1648 = vmatpush.msra.mxu3 %v1612_v45  ;;  %v2230_v7 = vrot.slane %v4538_v24, 1 }
 0x32c   :  { %1626 = vmatpush.msra.mxu2 %v1609_v25  ;;  %1649 = vmatpush.msra.mxu3 %v1610_v62  ;;  %v4542_v45 = vsel %vm396_vm0, %v2228_v4, %v2230_v7 }
 0x32d   :  { %v4546_v25 = vpop.f32.mrf.mxu1 }
 0x32e   :  { %1627 = vmatpush.msra.mxu2 %v1607_v18  ;;  %1650 = vmatpush.msra.mxu3 %v1608_v19  ;;  %v1946_v19 = vld [vmem:[#allocation3 + $0x170] sm:$0xff] }
 0x330   :  { %v1535_v32 = vpop.permute.xlu0 %1534  ;;  %1628 = vmatpush.msra.mxu2 %v1605_v29  ;;  %1651 = vmatpush.msra.mxu3 %v1606_v31  ;;  %v1944_v29 = vld [vmem:[#allocation3 + $0x160] sm:$0xff] }
 0x331   :  { %3792 = vmatmul.msk.f32.gmra.mxu2 %vm1173_vm7, %v4435_v56  ;;  %3794 = vmatmul.msk.f32.gmra.mxu3 %vm1173_vm7, %v4435_v56  ;;  %v1693_v55 = vpop.permute.xlu1 %1692  ;;  %v4460_v56 = vld [vmem:[%s4921_s0 + $0x30] sm:$0xff] }
 0x332   :  { %3804 = vmatmul.msk.f32.gmra.mxu0 %vm1173_vm7, %v1535_v32  ;;  %3806 = vmatmul.msk.f32.gmra.mxu1 %vm1173_vm7, %v1535_v32  ;;  %v2224_v16 = vrot.slane %v4460_v56, 1  ;;  %v1945_v32 = vld [vmem:[#allocation3 + $0x168] sm:$0xff] }
 0x333   :  { %1629 = vmatpush.msra.mxu2 %v1603_v33  ;;  %1652 = vmatpush.msra.mxu3 %v1604_v34  ;;  %v1942_v33 = vld [vmem:[#allocation3 + $0x150] sm:$0xff]  ;;  %v1943_v34 = vld [vmem:[#allocation3 + $0x158] sm:$0xff] }
 0x334   :  { %1954 = vrot.lane.b32.xlu0 %v4460_v56, %s4007_s5  ;;  %2118 = vrot.lane.b32.xlu1 %v4460_v56, %s4008_s24  ;;  %v4555_v31 = vsel %vm396_vm0, %v2224_v16, %v2226_v14 }
 0x335   :  { %1630 = vmatpush.msra.mxu2 %v1601_v38  ;;  %1653 = vmatpush.msra.mxu3 %v1602_v42  ;;  %v1940_v38 = vld [vmem:[#allocation3 + $0x140] sm:$0xff]  ;;  %v1941_v42 = vld [vmem:[#allocation3 + $0x148] sm:$0xff] }
 0x337   :  { %1631 = vmatpush.msra.mxu2 %v1599_v43  ;;  %1654 = vmatpush.msra.mxu3 %v1600_v53  ;;  %v4565_v53 = vpop.f32.mrf.mxu1 }
 0x338   :  { %v1772_v1 = vpop.permute.xlu0 %1771 }
 0x339   :  { %3799 = vmatmul.msk.f32.vlgmr.msrb.gmra.mxu2 %vm1173_vm7, %v1454_v46  ;;  %3801 = vmatmul.msk.f32.vlgmr.msrb.gmra.mxu3 %vm1173_vm7, %v1454_v46  ;;  %v4544_v46 = vpop.f32.mrf.mxu0 }
 0x33a   :  { %3811 = vmatmul.msk.f32.vlgmr.msra.gmra.mxu0 %vm1173_vm7, %v1691_v30  ;;  %3813 = vmatmul.msk.f32.vlgmr.msra.gmra.mxu1 %vm1173_vm7, %v1691_v30  ;;  %v1939_v30 = vld [vmem:[#allocation3 + $0x138] sm:$0xff] }
 0x33b   :  { %1632 = vmatpush.msra.mxu2 %v1597_v47  ;;  %1655 = vmatpush.msra.mxu3 %v1598_v44  ;;  %v1938_v44 = vld [vmem:[#allocation3 + $0x130] sm:$0xff] }
 0x33d   :  { %1633 = vmatpush.msra.mxu2 %v1595_v41  ;;  %1656 = vmatpush.msra.mxu3 %v1596_v49  ;;  %v1936_v41 = vld [vmem:[#allocation3 + $0x120] sm:$0xff]  ;;  %v1937_v49 = vld [vmem:[#allocation3 + $0x128] sm:$0xff] }
 0x33f   :  { %1634 = vmatpush.msra.mxu2 %v1593_v50  ;;  %1657 = vmatpush.msra.mxu3 %v1594_v39  ;;  %v1934_v50 = vld [vmem:[#allocation3 + $0x110] sm:$0xff]  ;;  %v1935_v39 = vld [vmem:[#allocation3 + $0x118] sm:$0xff] }
 0x341   :  { %1783 = vmatpush.msrb.mxu2 %v1767_v57  ;;  %1806 = vmatpush.msrb.mxu3 %v1768_v40  ;;  %v4563_v43 = vpop.f32.mrf.mxu0  ;;  %v1932_v57 = vld [vmem:[#allocation3 + $0x100] sm:$0xff]  ;;  %v1933_v40 = vld [vmem:[#allocation3 + $0x108] sm:$0xff] }
 0x342   :  { %3800 = vmatmul.msk.f32.gmra.mxu2 %vm1173_vm7, %v1456_v22  ;;  %3802 = vmatmul.msk.f32.gmra.mxu3 %vm1173_vm7, %v1456_v22  ;;  %v1947_v22 = vld [vmem:[#allocation3 + $0x178] sm:$0xff] }
 0x343   :  { %3812 = vmatmul.msk.f32.gmra.mxu0 %vm1173_vm7, %v1693_v55  ;;  %3814 = vmatmul.msk.f32.gmra.mxu1 %vm1173_vm7, %v1693_v55 }
 0x344   :  { %1784 = vmatpush.msrb.mxu2 %v1765_v58  ;;  %1807 = vmatpush.msrb.mxu3 %v1766_v48 }
 0x346   :  { %1785 = vmatpush.msrb.mxu2 %v1763_v21  ;;  %1808 = vmatpush.msrb.mxu3 %v1764_v0  ;;  %v1930_v21 = vld [vmem:[#allocation3 + $0xf0] sm:$0xff]  ;;  %v1931_v0 = vld [vmem:[#allocation3 + $0xf8] sm:$0xff] }
 0x348   :  { %1786 = vmatpush.msrb.mxu2 %v1761_v2  ;;  %1809 = vmatpush.msrb.mxu3 %v1762_v52  ;;  %v4579_v2 = vpop.f32.mrf.mxu1  ;;  %v1928_v52 = vld [vmem:[#allocation3 + $0xe0] sm:$0xff] }
 0x349   :  { %v4577_v55 = vpop.f32.mrf.mxu0 }
 0x34a   :  { %3807 = vmatmul.msk.f32.vlgmr.msra.gmra.mxu2 %vm1173_vm7, %v4403_v59  ;;  %3809 = vmatmul.msk.f32.vlgmr.msra.gmra.mxu3 %vm1173_vm7, %v4403_v59  ;;  %v1749_v59 = vld [vmem:[#allocation5 + $0x500] sm:$0xff] }
 0x34b   :  { %1787 = vmatpush.msrb.mxu2 %v1759_v8  ;;  %1810 = vmatpush.msrb.mxu3 %v1760_v35  ;;  %v1929_v8 = vld [vmem:[#allocation3 + $0xe8] sm:$0xff]  ;;  %v1926_v35 = vld [vmem:[#allocation3 + $0xd0] sm:$0xff] }
 0x34d   :  { %1788 = vmatpush.msrb.mxu2 %v1757_v5  ;;  %1811 = vmatpush.msrb.mxu3 %v1758_v61  ;;  %v1927_v5 = vld [vmem:[#allocation3 + $0xd8] sm:$0xff]  ;;  %v1924_v61 = vld [vmem:[#allocation3 + $0xc0] sm:$0xff] }
 0x34f   :  { %1789 = vmatpush.msrb.mxu2 %v1755_v63  ;;  %1812 = vmatpush.msrb.mxu3 %v1756_v11  ;;  %v1925_v11 = vld [vmem:[#allocation3 + $0xc8] sm:$0xff] }
 0x351   :  { %1790 = vmatpush.msrb.mxu2 %v1753_v36  ;;  %1813 = vmatpush.msrb.mxu3 %v1754_v12 }
 0x352   :  { %3808 = vmatmul.msk.f32.gmra.mxu2 %vm1173_vm7, %v4409_v54  ;;  %3810 = vmatmul.msk.f32.gmra.mxu3 %vm1173_vm7, %v4409_v54  ;;  %v4492_v54 = vld [vmem:[%s4921_s0 + $0x28] sm:$0xff] }
 0x353   :  { %1791 = vmatpush.msrb.mxu2 %v1751_v13  ;;  %1814 = vmatpush.msrb.mxu3 %v1752_v15  ;;  %v2223_v10 = vrot.slane %v4492_v54, 1 }
 0x354   :  { %1952 = vrot.lane.b32.xlu2 %v4492_v54, %s4007_s5  ;;  %2116 = vrot.lane.b32.xlu0 %v4492_v54, %s4008_s24 }
 0x355   :  { %1792 = vmatpush.msrb.mxu2 %v1749_v59  ;;  %1815 = vmatpush.msrb.mxu3 %v1750_v51  ;;  %v4512_v17 = vsel %vm396_vm0, %v2223_v10, %v2224_v16  ;;  %v2114_v51 = vld [vmem:[#allocation3 + $0x230] sm:$0xff] }
 0x356   :  { %2330 = vrot.lane.b32.xlu1 %v4512_v17, %s4007_s5 }
 0x357   :  { %1972 = vmatpush.msra.mxu2 %v1946_v19  ;;  %2001 = vmatpush.msra.mxu3 %v1947_v22  ;;  %v2112_v19 = vld [vmem:[#allocation3 + $0x220] sm:$0xff]  ;;  %v2113_v22 = vld [vmem:[#allocation3 + $0x228] sm:$0xff] }
 0x359   :  { %1973 = vmatpush.msra.mxu2 %v1944_v29  ;;  %2002 = vmatpush.msra.mxu3 %v1945_v32 }
 0x35a   :  { %3815 = vmatmul.msk.f32.vlgmr.msrb.gmra.mxu2 %vm1173_vm7, %v4449_v23  ;;  %3817 = vmatmul.msk.f32.vlgmr.msrb.gmra.mxu3 %vm1173_vm7, %v4449_v23 }
 0x35b   :  { %1974 = vmatpush.msra.mxu2 %v1942_v33  ;;  %2003 = vmatpush.msra.mxu3 %v1943_v34  ;;  %v2111_v33 = vld [vmem:[#allocation3 + $0x218] sm:$0xff] }
 0x35c   :  { %1958 = vrot.lane.b32.xlu2 %v4501_v9, %s4007_s5  ;;  %2122 = vrot.lane.b32.xlu0 %v4501_v9, %s4008_s24 }
 0x35d   :  { %1975 = vmatpush.msra.mxu2 %v1940_v38  ;;  %2004 = vmatpush.msra.mxu3 %v1941_v42 }
 0x35e   :  { %2336 = vrot.lane.b32.xlu1 %v4542_v45, %s4007_s5 }
 0x35f   :  { %1976 = vmatpush.msra.mxu2 %v1938_v44  ;;  %2005 = vmatpush.msra.mxu3 %v1939_v30  ;;  %v2109_v44 = vld [vmem:[#allocation3 + $0x208] sm:$0xff]  ;;  %v1957_v30 = vpop.permute.xlu1 %1956 }
 0x361   :  { %1977 = vmatpush.msra.mxu2 %v1936_v41  ;;  %2006 = vmatpush.msra.mxu3 %v1937_v49  ;;  %v2106_v49 = vld [vmem:[#allocation3 + $0x1f0] sm:$0xff] }
 0x362   :  { %3816 = vmatmul.msk.f32.gmra.mxu2 %vm1173_vm7, %v1772_v1  ;;  %3818 = vmatmul.msk.f32.gmra.mxu3 %vm1173_vm7, %v1772_v1  ;;  %v2115_v1 = vld [vmem:[#allocation3 + $0x238] sm:$0xff] }
 0x363   :  { %1978 = vmatpush.msra.mxu2 %v1934_v50  ;;  %2007 = vmatpush.msra.mxu3 %v1935_v39  ;;  %v2107_v50 = vld [vmem:[#allocation3 + $0x1f8] sm:$0xff] }
 0x364   :  { %2120 = vrot.lane.b32.xlu2 %v4465_v60, %s4008_s24  ;;  %2334 = vrot.lane.b32.xlu0 %v4527_v37, %s4007_s5 }
 0x365   :  { %1979 = vmatpush.msra.mxu2 %v1932_v57  ;;  %2008 = vmatpush.msra.mxu3 %v1933_v40 }
 0x366   :  { %2440 = vrot.lane.b32.xlu1 %v4527_v37, %s4008_s24 }
 0x367   :  { %1980 = vmatpush.msra.mxu2 %v1930_v21  ;;  %2009 = vmatpush.msra.mxu3 %v1931_v0  ;;  %v2102_v0 = vld [vmem:[#allocation3 + $0x1d0] sm:$0xff] }
 0x369   :  { %1981 = vmatpush.msra.mxu2 %v1928_v52  ;;  %2010 = vmatpush.msra.mxu3 %v1929_v8  ;;  %v2103_v52 = vld [vmem:[#allocation3 + $0x1d8] sm:$0xff] }
 0x36b   :  { %1982 = vmatpush.msra.mxu2 %v1926_v35  ;;  %2011 = vmatpush.msra.mxu3 %v1927_v5 }
 0x36c   :  { %2332 = vrot.lane.b32.xlu2 %v4555_v31, %s4007_s5  ;;  %2438 = vrot.lane.b32.xlu0 %v4555_v31, %s4008_s24 }
 0x36d   :  { %1983 = vmatpush.msra.mxu2 %v1924_v61  ;;  %2012 = vmatpush.msra.mxu3 %v1925_v11 }
 0x36f   :  { %2136 = vmatpush.msrb.mxu2 %v2114_v51  ;;  %2165 = vmatpush.msrb.mxu3 %v2115_v1  ;;  %v2099_v51 = vld [vmem:[#allocation3 + $0x1b8] sm:$0xff] }
 0x371   :  { %2137 = vmatpush.msrb.mxu2 %v2112_v19  ;;  %2166 = vmatpush.msrb.mxu3 %v2113_v22  ;;  %v2547_v19 = vrot.slane %v4501_v9, 2 }
 0x373   :  { %2167 = vmatpush.msrb.mxu3 %v2111_v33 }
 0x374   :  { %2436 = vrot.lane.b32.xlu2 %v4512_v17, %s4008_s24 }
 0x375   :  { %2168 = vmatpush.msrb.mxu3 %v2109_v44  ;;  %v2092_v44 = vld [vmem:[#allocation3 + $0x180] sm:$0xff] }
 0x377   :  { %2169 = vmatpush.msrb.mxu3 %v2107_v50 }
 0x37c   :  { %2442 = vrot.lane.b32.xlu2 %v4542_v45, %s4008_s24 }
 0x383   :  { %v4516_v3 = vpop.f32.mrf.mxu2  ;;  %v4518_v28 = vpop.f32.mrf.mxu3 }
 0x384   :  { %v1246_v10 = vadd.f32 %v4520_v26, %v4516_v3  ;;  %v1269_v4 = vadd.f32 %v4522_v27, %v4518_v28  ;;  %v2542_v26 = vrot.slane %v4492_v54, 2  ;;  %v2543_v28 = vrot.slane %v4460_v56, 2  ;;  %v2110_v27 = vld [vmem:[#allocation3 + $0x210] sm:$0xff] }
 0x385   :  { %2138 = vmatpush.msrb.mxu2 %v2110_v27  ;;  %v2095_v27 = vld [vmem:[#allocation3 + $0x198] sm:$0xff] }
 0x38e   :  { %v1557_v13 = vpop.f32.mrf.mxu0  ;;  %v4589_v15 = vpop.f32.mrf.mxu1 }
 0x3a4   :  { %v4531_v20 = vpop.f32.mrf.mxu2  ;;  %v4533_v6 = vpop.f32.mrf.mxu3 }
 0x3a5   :  { %v1249_v34 = vadd.f32 %v4544_v46, %v4531_v20  ;;  %v1272_v38 = vadd.f32 %v4546_v25, %v4533_v6 }
 0x3a6   :  { %v1955_v59 = vpop.permute.xlu0 %1954 }
 0x3ac   :  { %v4550_v62 = vpop.f32.mrf.mxu2  ;;  %v4552_v18 = vpop.f32.mrf.mxu3 }
 0x3ad   :  { %v1349_v29 = vadd.f32 %v4550_v62, %v1246_v10  ;;  %v1350_v3 = vadd.f32 %v4552_v18, %v1269_v4  ;;  %v4612_v62 = vsel %vm719_vm2, %v2542_v26, %v2543_v28  ;;  %v2108_v18 = vld [vmem:[#allocation3 + $0x200] sm:$0xff]  ;;  %v1827_v10 = vld [vmem:[%s4927_s6] sm:$0x3] }
 0x3ae   :  { %v1953_v63 = vpop.permute.xlu2 %1952  ;;  %2755 = vrot.lane.b32.xlu0 %v4612_v62, %s4008_s24  ;;  %2649 = vrot.lane.b32.xlu1 %v4612_v62, %s4007_s5  ;;  %v2097_v4 = vld [vmem:[#allocation3 + $0x1a8] sm:$0xff] }
 0x3af   :  { %3826 = vmatmul.msk.f32.vlgmr.msra.gmra.mxu2 %vm130_vm1, %v1953_v63  ;;  %3830 = vmatmul.msk.f32.vlgmr.msra.gmra.mxu3 %vm130_vm1, %v1953_v63  ;;  %v4597_v7 = vpop.f32.mrf.mxu0  ;;  %v4602_v32 = vpop.f32.mrf.mxu1  ;;  %v1428_v42 = vadd.f32 %v4563_v43, %v1349_v29  ;;  %v1429_v46 = vadd.f32 %v4565_v53, %v1350_v3  ;;  %v2100_v63 = vld [vmem:[#allocation3 + $0x1c0] sm:$0xff]  ;;  %v1829_v3 = vperm.slane %v1827_v10, 0 }
 0x3b0   :  { %2139 = vmatpush.msrb.mxu2 %v2108_v18 }
 0x3b2   :  { %2140 = vmatpush.msrb.mxu2 %v2106_v49 }
 0x3b4   :  { %v4567_v23 = vpop.f32.mrf.mxu2  ;;  %v4569_v47 = vpop.f32.mrf.mxu3 }
 0x3b5   :  { %v1351_v20 = vadd.f32 %v4567_v23, %v1249_v34  ;;  %v1352_v6 = vadd.f32 %v4569_v47, %v1272_v38  ;;  %v2104_v23 = vld [vmem:[#allocation3 + $0x1e0] sm:$0xff]  ;;  %v2105_v47 = vld [vmem:[#allocation3 + $0x1e8] sm:$0xff]  ;;  %v1830_v38 = vperm.slane %v1827_v10, 1 }
 0x3b6   :  { %2141 = vmatpush.msrb.mxu2 %v2104_v23  ;;  %2170 = vmatpush.msrb.mxu3 %v2105_v47  ;;  %v1959_v61 = vpop.permute.xlu2 %1958  ;;  %v2549_v47 = vrot.slane %v4538_v24, 2  ;;  %v2323_v10 = vld [vmem:[#allocation3 + $0x388] sm:$0xff] }
 0x3b7   :  { %3827 = vmatmul.msk.f32.gmra.mxu2 %vm130_vm1, %v1955_v59  ;;  %3831 = vmatmul.msk.f32.gmra.mxu3 %vm130_vm1, %v1955_v59  ;;  %v1715_v57 = vpop.f32.mrf.mxu0  ;;  %v1430_v53 = vadd.f32 %v4577_v55, %v1351_v20  ;;  %v1431_v40 = vadd.f32 %v4579_v2, %v1352_v6  ;;  %v2101_v55 = vld [vmem:[#allocation3 + $0x1c8] sm:$0xff]  ;;  %v2545_v2 = vrot.slane %v4465_v60, 2 }
 0x3b8   :  { %2142 = vmatpush.msrb.mxu2 %v2102_v0  ;;  %2171 = vmatpush.msrb.mxu3 %v2103_v52 }
 0x3b9   :  { %v4649_v26 = vsel %vm719_vm2, %v2545_v2, %v2547_v19 }
 0x3ba   :  { %2143 = vmatpush.msrb.mxu2 %v2100_v63  ;;  %2172 = vmatpush.msrb.mxu3 %v2101_v55  ;;  %v1923_v63 = vld [vmem:[#allocation3 + $0xb8] sm:$0xff]  ;;  %v1843_v55 = vld [vmem:[%s4928_s7] sm:$0xff] }
 0x3bb   :  { %2759 = vrot.lane.b32.xlu1 %v4649_v26, %s4008_s24 }
 0x3bc   :  { %v4573_v58 = vpop.f32.mrf.mxu2  ;;  %v4575_v48 = vpop.f32.mrf.mxu3  ;;  %2173 = vmatpush.msrb.mxu3 %v2099_v51  ;;  %v1918_v51 = vld [vmem:[#allocation3 + $0x90] sm:$0xff] }
 0x3bd   :  { %v1507_v25 = vadd.f32 %v4573_v58, %v1428_v42  ;;  %v1508_v39 = vadd.f32 %v4575_v48, %v1429_v46  ;;  %v1738_v58 = vpop.f32.mrf.mxu1 }
 0x3be   :  { %2174 = vmatpush.msrb.mxu3 %v2097_v4  ;;  %v2121_v4 = vpop.permute.xlu2 %2120 }
 0x3bf   :  { %3828 = vmatmul.msk.f32.gmra.mxu2 %vm130_vm1, %v1957_v30  ;;  %3832 = vmatmul.msk.f32.gmra.mxu3 %vm130_vm1, %v1957_v30  ;;  %v1586_v21 = vadd.f32 %v1557_v13, %v1507_v25  ;;  %v1587_v35 = vadd.f32 %v4589_v15, %v1508_v39  ;;  %v2093_v30 = vld [vmem:[#allocation3 + $0x188] sm:$0xff] }
 0x3c0   :  { %v1718_v33 = vpop.f32.mrf.mxu0  ;;  %2175 = vmatpush.msrb.mxu3 %v2095_v27  ;;  %v2319_v27 = vld [vmem:[#allocation3 + $0x368] sm:$0xff] }
 0x3c2   :  { %2176 = vmatpush.msrb.mxu3 %v2093_v30  ;;  %v2314_v30 = vld [vmem:[#allocation3 + $0x340] sm:$0xff] }
 0x3c5   :  { %v4583_v36 = vpop.f32.mrf.mxu2  ;;  %v4585_v12 = vpop.f32.mrf.mxu3 }
 0x3c6   :  { %v1509_v48 = vadd.f32 %v4583_v36, %v1430_v53  ;;  %v1510_v8 = vadd.f32 %v4585_v12, %v1431_v40  ;;  %v4634_v36 = vsel %vm719_vm2, %v2543_v28, %v2545_v2  ;;  %v2098_v12 = vld [vmem:[#allocation3 + $0x1b0] sm:$0xff]  ;;  %v1741_v42 = vpop.f32.mrf.mxu1  ;;  %v2117_v18 = vpop.permute.xlu0 %2116  ;;  %v2329_v53 = vld [vmem:[#allocation3 + $0x3b8] sm:$0xff]  ;;  %v1868_v2 = vld [vmem:[%s4929_s8] sm:$0xff] }
 0x3c7   :  { %3829 = vmatmul.msk.f32.gmra.mxu2 %vm130_vm1, %v1959_v61  ;;  %3833 = vmatmul.msk.f32.gmra.mxu3 %vm130_vm1, %v1959_v61  ;;  %v2094_v28 = vld [vmem:[#allocation3 + $0x190] sm:$0xff] }
 0x3c8   :  { %v1588_v15 = vadd.f32 %v4597_v7, %v1509_v48  ;;  %v1589_v1 = vadd.f32 %v4602_v32, %v1510_v8  ;;  %2651 = vrot.lane.b32.xlu0 %v4634_v36, %s4007_s5  ;;  %2144 = vmatpush.msrb.mxu2 %v2098_v12  ;;  %v4659_v8 = vsel %vm719_vm2, %v2547_v19, %v2549_v47  ;;  %v1922_v61 = vld [vmem:[#allocation3 + $0xb0] sm:$0xff]  ;;  %v2325_v12 = vld [vmem:[#allocation3 + $0x398] sm:$0xff]  ;;  %v2310_v47 = vld [vmem:[#allocation3 + $0x320] sm:$0xff] }
 0x3c9   :  { %2757 = vrot.lane.b32.xlu2 %v4634_v36, %s4008_s24  ;;  %2379 = vmatpush.msra.mxu3 %v2329_v53  ;;  %v1914_v19 = vld [vmem:[#allocation3 + $0x70] sm:$0xff]  ;;  %v1900_v53 = vld [vmem:[#allocation3] sm:$0xff] }
 0x3ca   :  { %2655 = vrot.lane.b32.xlu1 %v4659_v8, %s4007_s5 }
 0x3cd   :  { %v1636_v16 = vpop.f32.mrf.mxu2  ;;  %v4593_v14 = vpop.f32.mrf.mxu3 }
 0x3ce   :  { %v1665_v5 = vadd.f32 %v1636_v16, %v1586_v21  ;;  %v1666_v11 = vadd.f32 %v4593_v14, %v1587_v35  ;;  %v2096_v14 = vld [vmem:[#allocation3 + $0x1a0] sm:$0xff]  ;;  %v2327_v21 = vld [vmem:[#allocation3 + $0x3a8] sm:$0xff]  ;;  %v2119_v35 = vpop.permute.xlu1 %2118 }
 0x3cf   :  { %2145 = vmatpush.msrb.mxu2 %v2096_v14  ;;  %3846 = vmatmul.msk.f32.vlgmr.msrb.gmra.mxu3 %vm130_vm1, %v2117_v18  ;;  %v1917_v14 = vld [vmem:[#allocation3 + $0x88] sm:$0xff] }
 0x3d0   :  { %v1744_v16 = vadd.f32 %v1715_v57, %v1665_v5  ;;  %v1745_v29 = vadd.f32 %v1738_v58, %v1666_v11  ;;  %v2328_v57 = vld [vmem:[#allocation3 + $0x3b0] sm:$0xff]  ;;  %v2326_v58 = vld [vmem:[#allocation3 + $0x3a0] sm:$0xff]  ;;  %2761 = vrot.lane.b32.xlu0 %v4659_v8, %s4008_s24  ;;  %2380 = vmatpush.msra.mxu3 %v2327_v21  ;;  %v2221_v21 = vld [vmem:[#allocation3 + $0x2f8] sm:$0xff] }
 0x3d1   :  { %2146 = vmatpush.msrb.mxu2 %v2094_v28  ;;  %2653 = vrot.lane.b32.xlu2 %v4649_v26, %s4007_s5  ;;  %v1920_v11 = vld [vmem:[#allocation3 + $0xa0] sm:$0xff] }
 0x3d2   :  { %2381 = vmatpush.msra.mxu3 %v2325_v12  ;;  %v2318_v28 = vld [vmem:[#allocation3 + $0x360] sm:$0xff]  ;;  %v2541_v12 = vld [vmem:[#allocation3 + $0x538] sm:$0xff] }
 0x3d3   :  { %2147 = vmatpush.msrb.mxu2 %v2092_v44  ;;  %v1909_v44 = vld [vmem:[#allocation3 + $0x48] sm:$0xff] }
 0x3d4   :  { %3842 = vmatmul.msk.f32.vlgmr.msrb.gmra.mxu2 %vm130_vm1, %v2117_v18  ;;  %2382 = vmatpush.msra.mxu3 %v2323_v10  ;;  %v1908_v18 = vld [vmem:[#allocation3 + $0x40] sm:$0xff]  ;;  %v2539_v10 = vld [vmem:[#allocation3 + $0x528] sm:$0xff] }
 0x3d5   :  { %v1639_v43 = vpop.f32.mrf.mxu2  ;;  %v1662_v41 = vpop.f32.mrf.mxu3  ;;  %2350 = vmatpush.msra.mxu2 %v2328_v57  ;;  %v2311_v57 = vld [vmem:[#allocation3 + $0x328] sm:$0xff] }
 0x3d6   :  { %v1667_v7 = vadd.f32 %v1639_v43, %v1588_v15  ;;  %v1668_v22 = vadd.f32 %v1662_v41, %v1589_v1  ;;  %v1919_v15 = vld [vmem:[#allocation3 + $0x98] sm:$0xff]  ;;  %v2322_v1 = vld [vmem:[#allocation3 + $0x380] sm:$0xff] }
 0x3d7   :  { %2351 = vmatpush.msra.mxu2 %v2326_v58  ;;  %3847 = vmatmul.msk.f32.gmra.mxu3 %vm130_vm1, %v2119_v35  ;;  %v2220_v58 = vld [vmem:[#allocation3 + $0x2f0] sm:$0xff] }
 0x3d8   :  { %v1746_v20 = vadd.f32 %v1718_v33, %v1667_v7  ;;  %v1747_v6 = vadd.f32 %v1741_v42, %v1668_v22  ;;  %v1915_v7 = vld [vmem:[#allocation3 + $0x78] sm:$0xff]  ;;  %v2320_v22 = vld [vmem:[#allocation3 + $0x370] sm:$0xff] }
 0x3d9   :  { %v1910_v33 = vld [vmem:[#allocation3 + $0x50] sm:$0xff]  ;;  %v2317_v42 = vld [vmem:[#allocation3 + $0x358] sm:$0xff] }
 0x3dc   :  { %3843 = vmatmul.msk.f32.gmra.mxu2 %vm130_vm1, %v2119_v35  ;;  %v2306_v35 = vld [vmem:[#allocation3 + $0x300] sm:$0xff] }
 0x3dd   :  { %v1794_v13 = vpop.f32.mrf.mxu2  ;;  %v1817_v59 = vpop.f32.mrf.mxu3 }
 0x3de   :  { %v1823_v32 = vadd.f32 %v1794_v13, %v1744_v16  ;;  %v1824_v34 = vadd.f32 %v1817_v59, %v1745_v29  ;;  %v1921_v13 = vld [vmem:[#allocation3 + $0xa8] sm:$0xff]  ;;  %v2324_v59 = vld [vmem:[#allocation3 + $0x390] sm:$0xff]  ;;  %v1916_v16 = vld [vmem:[#allocation3 + $0x80] sm:$0xff] }
 0x3df   :  { %2352 = vmatpush.msra.mxu2 %v2324_v59  ;;  %v2321_v29 = vld [vmem:[#allocation3 + $0x378] sm:$0xff]  ;;  %3848 = vmatmul.msk.f32.gmra.mxu3 %vm130_vm1, %v2121_v4  ;;  %v2540_v59 = vld [vmem:[#allocation3 + $0x530] sm:$0xff] }
 0x3e0   :  { %v1833_v46 = vadd.f32 %v1829_v3, %v1823_v32  ;;  %v1834_v41 = vadd.f32 %v1830_v38, %v1824_v34  ;;  %v1912_v32 = vld [vmem:[#allocation3 + $0x60] sm:$0xff]  ;;  %v1911_v34 = vld [vmem:[#allocation3 + $0x58] sm:$0xff]  ;;  %2383 = vmatpush.msra.mxu3 %v2321_v29  ;;  %v2536_v29 = vld [vmem:[#allocation3 + $0x510] sm:$0xff] }
 0x3e1   :  { %2353 = vmatpush.msra.mxu2 %v2322_v1  ;;  %v2538_v1 = vld [vmem:[#allocation3 + $0x520] sm:$0xff] }
 0x3e2   :  { %v1837_v40 = vmax.f32 %v1833_v46, 0.0  ;;  %v1838_v0 = vmax.f32 %v1834_v41, 0.0  ;;  %2384 = vmatpush.msra.mxu3 %v2319_v27  ;;  %v1907_v46 = vld [vmem:[#allocation3 + $0x38] sm:$0xff]  ;;  %v1905_v41 = vld [vmem:[#allocation3 + $0x28] sm:$0xff]  ;;  %v2534_v27 = vld [vmem:[#allocation3 + $0x500] sm:$0xff] }
 0x3e3   :  { %2354 = vmatpush.msra.mxu2 %v2320_v22  ;;  %v2205_v22 = vld [vmem:[#allocation3 + $0x278] sm:$0xff] }
 0x3e4   :  { %v1841_v5 = vmax.f32 %v1837_v40, %v1838_v0  ;;  %3844 = vmatmul.msk.f32.gmra.mxu2 %vm130_vm1, %v2121_v4  ;;  %2385 = vmatpush.msra.mxu3 %v2317_v42  ;;  %v1901_v40 = vld [vmem:[#allocation3 + $0x8] sm:$0xff]  ;;  %v2308_v0 = vld [vmem:[#allocation3 + $0x310] sm:$0xff]  ;;  %v2333_v4 = vpop.permute.xlu2 %2332 }
 0x3e5   :  { %v1797_v25 = vpop.f32.mrf.mxu2  ;;  %v1820_v43 = vpop.f32.mrf.mxu3  ;;  %2355 = vmatpush.msra.mxu2 %v2318_v28  ;;  %v2203_v28 = vld [vmem:[#allocation3 + $0x268] sm:$0xff] }
 0x3e6   :  { %v1825_v49 = vadd.f32 %v1797_v25, %v1746_v20  ;;  %v1826_v50 = vadd.f32 %v1820_v43, %v1747_v6  ;;  %v2315_v20 = vld [vmem:[#allocation3 + $0x348] sm:$0xff]  ;;  %v1906_v6 = vld [vmem:[#allocation3 + $0x30] sm:$0xff]  ;;  %v2123_v25 = vpop.permute.xlu0 %2122  ;;  %v1904_v43 = vld [vmem:[#allocation3 + $0x20] sm:$0xff] }
 0x3e7   :  { %2386 = vmatpush.msra.mxu3 %v2315_v20  ;;  %v2532_v20 = vld [vmem:[#allocation3 + $0x4f0] sm:$0xff] }
 0x3e8   :  { %v1835_v39 = vadd.f32 %v1829_v3, %v1825_v49  ;;  %v1836_v23 = vadd.f32 %v1830_v38, %v1826_v50  ;;  %v1913_v3 = vld [vmem:[#allocation3 + $0x68] sm:$0xff]  ;;  %v2316_v38 = vld [vmem:[#allocation3 + $0x350] sm:$0xff]  ;;  %v2313_v50 = vld [vmem:[#allocation3 + $0x338] sm:$0xff]  ;;  %3849 = vmatmul.msk.f32.gmra.mxu3 %vm130_vm1, %v2123_v25 }
 0x3e9   :  { %2356 = vmatpush.msra.mxu2 %v2316_v38  ;;  %v2312_v49 = vld [vmem:[#allocation3 + $0x330] sm:$0xff]  ;;  %2387 = vmatpush.msra.mxu3 %v2313_v50  ;;  %v2201_v38 = vld [vmem:[#allocation3 + $0x258] sm:$0xff] }
 0x3ea   :  { %v1839_v52 = vmax.f32 %v1835_v39, 0.0  ;;  %v1840_v48 = vmax.f32 %v1836_v23, 0.0  ;;  %v1902_v39 = vld [vmem:[#allocation3 + $0x10] sm:$0xff]  ;;  %v1903_v23 = vld [vmem:[#allocation3 + $0x18] sm:$0xff] }
 0x3eb   :  { %2357 = vmatpush.msra.mxu2 %v2314_v30  ;;  %2388 = vmatpush.msra.mxu3 %v2311_v57  ;;  %v2435_v30 = vld [vmem:[#allocation3 + $0x478] sm:$0xff]  ;;  %v2429_v57 = vld [vmem:[#allocation3 + $0x448] sm:$0xff] }
 0x3ec   :  { %v1842_v24 = vmax.f32 %v1839_v52, %v1840_v48  ;;  %3845 = vmatmul.msk.f32.gmra.mxu2 %vm130_vm1, %v2123_v25  ;;  %v2309_v52 = vld [vmem:[#allocation3 + $0x318] sm:$0xff]  ;;  %v2218_v48 = vld [vmem:[#allocation3 + $0x2e0] sm:$0xff]  ;;  %v2433_v25 = vld [vmem:[#allocation3 + $0x468] sm:$0xff] }
 0x3ed   :  { %2358 = vmatpush.msra.mxu2 %v2312_v49  ;;  %2389 = vmatpush.msra.mxu3 %v2309_v52  ;;  %v2430_v49 = vld [vmem:[#allocation3 + $0x450] sm:$0xff]  ;;  %v2431_v50 = vld [vmem:[#allocation3 + $0x458] sm:$0xff] }
 0x3ee   :  { %1862 = vmatpush.msrb.mxu0 %v1842_v24  ;;  %1886 = vmatpush.msrb.mxu1 %v1842_v24  ;;  %v2219_v24 = vld [vmem:[#allocation3 + $0x2e8] sm:$0xff]  ;;  %v2335_v42 = vpop.permute.xlu0 %2334 }
 0x3ef   :  { %2359 = vmatpush.msra.mxu2 %v2310_v47  ;;  %v2428_v47 = vld [vmem:[#allocation3 + $0x440] sm:$0xff] }
 0x3f0   :  { %1863 = vmatpush.msrb.mxu0 %v1841_v5  ;;  %1887 = vmatpush.msrb.mxu1 %v1841_v5  ;;  %v2307_v5 = vld [vmem:[#allocation3 + $0x308] sm:$0xff] }
 0x3f1   :  { %3819 = vmatmul.msk.f32.vlgmr.msrb.gmra.mxu0 %vm1844_vm8, %v1843_v55  ;;  %3820 = vmatmul.msk.f32.vlgmr.msrb.gmra.mxu1 %vm1844_vm8, %v1868_v2  ;;  %v2331_v55 = vpop.permute.xlu1 %2330  ;;  %v2214_v2 = vld [vmem:[#allocation3 + $0x2c0] sm:$0xff] }
 0x3f2   :  { %2038 = vmatpush.msra.mxu0 %v1922_v61  ;;  %2067 = vmatpush.msra.mxu1 %v1923_v63  ;;  %v2216_v61 = vld [vmem:[#allocation3 + $0x2d0] sm:$0xff]  ;;  %v2217_v63 = vld [vmem:[#allocation3 + $0x2d8] sm:$0xff] }
 0x3f3   :  { %2360 = vmatpush.msra.mxu2 %v2308_v0  ;;  %2390 = vmatpush.msra.mxu3 %v2307_v5  ;;  %v2425_v0 = vld [vmem:[#allocation3 + $0x428] sm:$0xff]  ;;  %v2525_v5 = vld [vmem:[#allocation3 + $0x4b8] sm:$0xff] }
 0x3f4   :  { %2039 = vmatpush.msra.mxu0 %v1920_v11  ;;  %2068 = vmatpush.msra.mxu1 %v1921_v13  ;;  %v2215_v11 = vld [vmem:[#allocation3 + $0x2c8] sm:$0xff]  ;;  %v2213_v13 = vld [vmem:[#allocation3 + $0x2b8] sm:$0xff] }
 0x3f5   :  { %2361 = vmatpush.msra.mxu2 %v2306_v35  ;;  %3862 = vmatmul.msk.f32.vlgmr.msra.gmra.mxu3 %vm130_vm1, %v2331_v55  ;;  %v2524_v35 = vld [vmem:[#allocation3 + $0x4b0] sm:$0xff] }
 0x3f6   :  { %2040 = vmatpush.msra.mxu0 %v1918_v51  ;;  %2069 = vmatpush.msra.mxu1 %v1919_v15  ;;  %v2210_v51 = vld [vmem:[#allocation3 + $0x2a0] sm:$0xff]  ;;  %v2211_v15 = vld [vmem:[#allocation3 + $0x2a8] sm:$0xff] }
 0x3f7   :  { %3858 = vmatmul.msk.f32.vlgmr.msra.gmra.mxu2 %vm130_vm1, %v2331_v55  ;;  %2592 = vmatpush.msrb.mxu3 %v2541_v12  ;;  %v2523_v55 = vld [vmem:[#allocation3 + $0x4a8] sm:$0xff] }
 0x3f8   :  { %2041 = vmatpush.msra.mxu0 %v1916_v16  ;;  %2070 = vmatpush.msra.mxu1 %v1917_v14  ;;  %v2208_v16 = vld [vmem:[#allocation3 + $0x290] sm:$0xff]  ;;  %v2209_v14 = vld [vmem:[#allocation3 + $0x298] sm:$0xff]  ;;  %v2417_v12 = vld [vmem:[#allocation3 + $0x3e8] sm:$0xff] }
 0x3f9   :  { %2563 = vmatpush.msrb.mxu2 %v2540_v59  ;;  %2593 = vmatpush.msrb.mxu3 %v2539_v10  ;;  %v2337_v52 = vpop.permute.xlu1 %2336  ;;  %v2416_v59 = vld [vmem:[#allocation3 + $0x3e0] sm:$0xff]  ;;  %v2415_v10 = vld [vmem:[#allocation3 + $0x3d8] sm:$0xff] }
 0x3fa   :  { %2042 = vmatpush.msra.mxu0 %v1914_v19  ;;  %2071 = vmatpush.msra.mxu1 %v1915_v7  ;;  %v2206_v19 = vld [vmem:[#allocation3 + $0x280] sm:$0xff]  ;;  %v2207_v7 = vld [vmem:[#allocation3 + $0x288] sm:$0xff] }
 0x3fb   :  { %2564 = vmatpush.msrb.mxu2 %v2538_v1  ;;  %v2414_v1 = vld [vmem:[#allocation3 + $0x3d0] sm:$0xff] }
 0x3fc   :  { %2043 = vmatpush.msra.mxu0 %v1912_v32  ;;  %2072 = vmatpush.msra.mxu1 %v1913_v3  ;;  %v2537_v32 = vld [vmem:[#allocation3 + $0x518] sm:$0xff]  ;;  %v2202_v3 = vld [vmem:[#allocation3 + $0x260] sm:$0xff] }
 0x3fd   :  { %3863 = vmatmul.msk.f32.gmra.mxu3 %vm130_vm1, %v2333_v4  ;;  %2565 = vmatpush.msrb.mxu2 %v2536_v29  ;;  %v2646_v29 = vld [vmem:[#allocation3 + $0x5e8] sm:$0xff] }
 0x3fe   :  { %2044 = vmatpush.msra.mxu0 %v1910_v33  ;;  %2073 = vmatpush.msra.mxu1 %v1911_v34  ;;  %v2535_v33 = vld [vmem:[#allocation3 + $0x508] sm:$0xff]  ;;  %v2200_v34 = vld [vmem:[#allocation3 + $0x250] sm:$0xff] }
 0x3ff   :  { %3859 = vmatmul.msk.f32.gmra.mxu2 %vm130_vm1, %v2333_v4  ;;  %2594 = vmatpush.msrb.mxu3 %v2537_v32  ;;  %v2754_v4 = vld [vmem:[#allocation3 + $0x6b8] sm:$0xff]  ;;  %v2749_v32 = vld [vmem:[#allocation3 + $0x690] sm:$0xff] }
 0x400   :  { %2045 = vmatpush.msra.mxu0 %v1908_v18  ;;  %2074 = vmatpush.msra.mxu1 %v1909_v44  ;;  %v2198_v18 = vld [vmem:[#allocation3 + $0x240] sm:$0xff]  ;;  %v2199_v44 = vld [vmem:[#allocation3 + $0x248] sm:$0xff] }
 0x401   :  { %2566 = vmatpush.msrb.mxu2 %v2534_v27  ;;  %2595 = vmatpush.msrb.mxu3 %v2535_v33  ;;  %v2643_v27 = vld [vmem:[#allocation3 + $0x5d0] sm:$0xff]  ;;  %v2644_v33 = vld [vmem:[#allocation3 + $0x5d8] sm:$0xff] }
 0x402   :  { %2046 = vmatpush.msra.mxu0 %v1906_v6  ;;  %2075 = vmatpush.msra.mxu1 %v1907_v46  ;;  %v2533_v6 = vld [vmem:[#allocation3 + $0x4f8] sm:$0xff]  ;;  %v2432_v46 = vld [vmem:[#allocation3 + $0x460] sm:$0xff] }
 0x403   :  { %2567 = vmatpush.msrb.mxu2 %v2532_v20  ;;  %2596 = vmatpush.msrb.mxu3 %v2533_v6  ;;  %v2437_v20 = vpop.permute.xlu2 %2436  ;;  %v2742_v6 = vld [vmem:[#allocation3 + $0x658] sm:$0xff] }
 0x404   :  { %2047 = vmatpush.msra.mxu0 %v1904_v43  ;;  %2076 = vmatpush.msra.mxu1 %v1905_v41  ;;  %v2530_v43 = vld [vmem:[#allocation3 + $0x4e0] sm:$0xff]  ;;  %v2531_v41 = vld [vmem:[#allocation3 + $0x4e8] sm:$0xff] }
 0x405   :  { %3864 = vmatmul.msk.f32.gmra.mxu3 %vm130_vm1, %v2335_v42  ;;  %2568 = vmatpush.msrb.mxu2 %v2530_v43  ;;  %v2739_v43 = vld [vmem:[#allocation3 + $0x640] sm:$0xff] }
 0x406   :  { %2048 = vmatpush.msra.mxu0 %v1902_v39  ;;  %2077 = vmatpush.msra.mxu1 %v1903_v23  ;;  %v2528_v39 = vld [vmem:[#allocation3 + $0x4d0] sm:$0xff]  ;;  %v2529_v23 = vld [vmem:[#allocation3 + $0x4d8] sm:$0xff] }
 0x407   :  { %3860 = vmatmul.msk.f32.gmra.mxu2 %vm130_vm1, %v2335_v42  ;;  %2597 = vmatpush.msrb.mxu3 %v2531_v41  ;;  %v2641_v42 = vld [vmem:[#allocation3 + $0x5c0] sm:$0xff]  ;;  %v2740_v41 = vld [vmem:[#allocation3 + $0x648] sm:$0xff] }
 0x408   :  { %2049 = vmatpush.msra.mxu0 %v1900_v53  ;;  %2078 = vmatpush.msra.mxu1 %v1901_v40  ;;  %v2427_v53 = vld [vmem:[#allocation3 + $0x438] sm:$0xff]  ;;  %v2526_v40 = vld [vmem:[#allocation3 + $0x4c0] sm:$0xff] }
 0x409   :  { %3834 = vmatmul.msk.f32.vlgmr.msra.gmra.mxu0 %vm130_vm1, %v4492_v54  ;;  %3838 = vmatmul.msk.f32.vlgmr.msra.gmra.mxu1 %vm130_vm1, %v4492_v54  ;;  %v2212_v54 = vld [vmem:[#allocation3 + $0x2b0] sm:$0xff] }
 0x40a   :  { %2244 = vmatpush.msrb.mxu0 %v2220_v58  ;;  %2273 = vmatpush.msrb.mxu1 %v2221_v21  ;;  %v2527_v58 = vld [vmem:[#allocation3 + $0x4c8] sm:$0xff]  ;;  %v2424_v21 = vld [vmem:[#allocation3 + $0x420] sm:$0xff] }
 0x40b   :  { %2569 = vmatpush.msrb.mxu2 %v2528_v39  ;;  %2598 = vmatpush.msrb.mxu3 %v2529_v23 }
 0x40c   :  { %2245 = vmatpush.msrb.mxu0 %v2218_v48  ;;  %2274 = vmatpush.msrb.mxu1 %v2219_v24  ;;  %v2422_v48 = vld [vmem:[#allocation3 + $0x410] sm:$0xff]  ;;  %v2423_v24 = vld [vmem:[#allocation3 + $0x418] sm:$0xff] }
 0x40d   :  { %2570 = vmatpush.msrb.mxu2 %v2526_v40  ;;  %2599 = vmatpush.msrb.mxu3 %v2527_v58  ;;  %v2735_v40 = vld [vmem:[#allocation3 + $0x620] sm:$0xff]  ;;  %v2736_v58 = vld [vmem:[#allocation3 + $0x628] sm:$0xff] }
 0x40e   :  { %2246 = vmatpush.msrb.mxu0 %v2216_v61  ;;  %2275 = vmatpush.msrb.mxu1 %v2217_v63  ;;  %v2420_v61 = vld [vmem:[#allocation3 + $0x400] sm:$0xff]  ;;  %v2421_v63 = vld [vmem:[#allocation3 + $0x408] sm:$0xff] }
 0x40f   :  { %3861 = vmatmul.msk.f32.gmra.mxu2 %vm130_vm1, %v2337_v52  ;;  %3865 = vmatmul.msk.f32.gmra.mxu3 %vm130_vm1, %v2337_v52  ;;  %v2733_v52 = vld [vmem:[#allocation3 + $0x610] sm:$0xff] }
 0x410   :  { %2247 = vmatpush.msrb.mxu0 %v2214_v2  ;;  %2276 = vmatpush.msrb.mxu1 %v2215_v11  ;;  %v2418_v2 = vld [vmem:[#allocation3 + $0x3f0] sm:$0xff]  ;;  %v2419_v11 = vld [vmem:[#allocation3 + $0x3f8] sm:$0xff] }
 0x411   :  { %3835 = vmatmul.msk.f32.gmra.mxu0 %vm130_vm1, %v4460_v56  ;;  %3839 = vmatmul.msk.f32.gmra.mxu1 %vm130_vm1, %v4460_v56  ;;  %v2204_v56 = vld [vmem:[#allocation3 + $0x270] sm:$0xff] }
 0x412   :  { %2248 = vmatpush.msrb.mxu0 %v2212_v54  ;;  %2277 = vmatpush.msrb.mxu1 %v2213_v13  ;;  %v2520_v54 = vld [vmem:[#allocation3 + $0x490] sm:$0xff]  ;;  %v2521_v13 = vld [vmem:[#allocation3 + $0x498] sm:$0xff] }
 0x413   :  { %2571 = vmatpush.msrb.mxu2 %v2524_v35  ;;  %2600 = vmatpush.msrb.mxu3 %v2525_v5  ;;  %v2630_v35 = vld [vmem:[#allocation3 + $0x568] sm:$0xff] }
 0x414   :  { %2249 = vmatpush.msrb.mxu0 %v2210_v51  ;;  %2278 = vmatpush.msrb.mxu1 %v2211_v15  ;;  %v2518_v51 = vld [vmem:[#allocation3 + $0x480] sm:$0xff]  ;;  %v2519_v15 = vld [vmem:[#allocation3 + $0x488] sm:$0xff] }
 0x415   :  { %2601 = vmatpush.msrb.mxu3 %v2523_v55  ;;  %v2443_v55 = vpop.permute.xlu2 %2442 }
 0x416   :  { %2250 = vmatpush.msrb.mxu0 %v2208_v16  ;;  %2279 = vmatpush.msrb.mxu1 %v2209_v14  ;;  %v2413_v16 = vld [vmem:[#allocation3 + $0x3c8] sm:$0xff]  ;;  %v2753_v14 = vld [vmem:[#allocation3 + $0x6b0] sm:$0xff] }
 0x417   :  { %2602 = vmatpush.msrb.mxu3 %v2521_v13  ;;  %v2625_v13 = vld [vmem:[#allocation3 + $0x540] sm:$0xff] }
 0x418   :  { %2251 = vmatpush.msrb.mxu0 %v2206_v19  ;;  %2280 = vmatpush.msrb.mxu1 %v2207_v7  ;;  %v2647_v19 = vld [vmem:[#allocation3 + $0x5f0] sm:$0xff]  ;;  %v2648_v7 = vld [vmem:[#allocation3 + $0x5f8] sm:$0xff] }
 0x419   :  { %3836 = vmatmul.msk.f32.gmra.mxu0 %vm130_vm1, %v4465_v60  ;;  %3840 = vmatmul.msk.f32.gmra.mxu1 %vm130_vm1, %v4465_v60  ;;  %v2434_v60 = vld [vmem:[#allocation3 + $0x470] sm:$0xff] }
 0x41a   :  { %2252 = vmatpush.msrb.mxu0 %v2204_v56  ;;  %2281 = vmatpush.msrb.mxu1 %v2205_v22  ;;  %v2751_v56 = vld [vmem:[#allocation3 + $0x6a0] sm:$0xff]  ;;  %v2752_v22 = vld [vmem:[#allocation3 + $0x6a8] sm:$0xff] }
 0x41b   :  { %2603 = vmatpush.msrb.mxu3 %v2519_v15 }
 0x41c   :  { %2253 = vmatpush.msrb.mxu0 %v2202_v3  ;;  %2282 = vmatpush.msrb.mxu1 %v2203_v28  ;;  %v2750_v3 = vld [vmem:[#allocation3 + $0x698] sm:$0xff]  ;;  %v2748_v28 = vld [vmem:[#allocation3 + $0x688] sm:$0xff] }
 0x41d   :  { %3878 = vmatmul.msk.f32.vlgmr.msrb.gmra.mxu3 %vm130_vm1, %v4612_v62 }
 0x41e   :  { %2254 = vmatpush.msrb.mxu0 %v2200_v34  ;;  %2283 = vmatpush.msrb.mxu1 %v2201_v38  ;;  %v2745_v34 = vld [vmem:[#allocation3 + $0x670] sm:$0xff]  ;;  %v2746_v38 = vld [vmem:[#allocation3 + $0x678] sm:$0xff] }
 0x41f   :  { %2804 = vmatpush.msra.mxu3 %v2754_v4 }
 0x420   :  { %2255 = vmatpush.msrb.mxu0 %v2198_v18  ;;  %2284 = vmatpush.msrb.mxu1 %v2199_v44  ;;  %v2642_v18 = vld [vmem:[#allocation3 + $0x5c8] sm:$0xff] }
 0x421   :  { %3837 = vmatmul.msk.f32.gmra.mxu0 %vm130_vm1, %v4501_v9  ;;  %3841 = vmatmul.msk.f32.gmra.mxu1 %vm130_vm1, %v4501_v9  ;;  %v2426_v9 = vld [vmem:[#allocation3 + $0x430] sm:$0xff]  ;;  %v2744_v44 = vld [vmem:[#allocation3 + $0x668] sm:$0xff] }
 0x422   :  { %2456 = vmatpush.msra.mxu0 %v2434_v60  ;;  %2485 = vmatpush.msra.mxu1 %v2435_v30  ;;  %v2639_v60 = vld [vmem:[#allocation3 + $0x5b0] sm:$0xff]  ;;  %v2640_v30 = vld [vmem:[#allocation3 + $0x5b8] sm:$0xff] }
 0x423   :  { %2805 = vmatpush.msra.mxu3 %v2752_v22 }
 0x424   :  { %2457 = vmatpush.msra.mxu0 %v2432_v46  ;;  %2486 = vmatpush.msra.mxu1 %v2433_v25  ;;  %v2637_v46 = vld [vmem:[#allocation3 + $0x5a0] sm:$0xff]  ;;  %v2638_v25 = vld [vmem:[#allocation3 + $0x5a8] sm:$0xff] }
 0x425   :  { %3879 = vmatmul.msk.f32.gmra.mxu3 %vm130_vm1, %v4634_v36 }
 0x426   :  { %2458 = vmatpush.msra.mxu0 %v2430_v49  ;;  %2487 = vmatpush.msra.mxu1 %v2431_v50  ;;  %v2635_v49 = vld [vmem:[#allocation3 + $0x590] sm:$0xff]  ;;  %v2636_v50 = vld [vmem:[#allocation3 + $0x598] sm:$0xff] }
 0x427   :  { %2806 = vmatpush.msra.mxu3 %v2750_v3 }
 0x428   :  { %2459 = vmatpush.msra.mxu0 %v2428_v47  ;;  %2488 = vmatpush.msra.mxu1 %v2429_v57  ;;  %v2738_v47 = vld [vmem:[#allocation3 + $0x638] sm:$0xff]  ;;  %v2439_v57 = vpop.permute.xlu0 %2438 }
 0x429   :  { %3850 = vmatmul.msk.f32.vlgmr.msrb.gmra.mxu0 %vm130_vm1, %v4512_v17  ;;  %3854 = vmatmul.msk.f32.vlgmr.msrb.gmra.mxu1 %vm130_vm1, %v4512_v17  ;;  %v2522_v17 = vld [vmem:[#allocation3 + $0x4a0] sm:$0xff] }
 0x42a   :  { %2460 = vmatpush.msra.mxu0 %v2426_v9  ;;  %2489 = vmatpush.msra.mxu1 %v2427_v53  ;;  %v2633_v9 = vld [vmem:[#allocation3 + $0x580] sm:$0xff]  ;;  %v2634_v53 = vld [vmem:[#allocation3 + $0x588] sm:$0xff] }
 0x42b   :  { %2572 = vmatpush.msrb.mxu2 %v2522_v17  ;;  %2807 = vmatpush.msra.mxu3 %v2748_v28 }
 0x42c   :  { %2461 = vmatpush.msra.mxu0 %v2424_v21  ;;  %2490 = vmatpush.msra.mxu1 %v2425_v0  ;;  %v2631_v21 = vld [vmem:[#allocation3 + $0x570] sm:$0xff]  ;;  %v2632_v0 = vld [vmem:[#allocation3 + $0x578] sm:$0xff] }
 0x42d   :  { %2573 = vmatpush.msrb.mxu2 %v2520_v54  ;;  %2808 = vmatpush.msra.mxu3 %v2746_v38  ;;  %v2628_v54 = vld [vmem:[#allocation3 + $0x558] sm:$0xff] }
 0x42e   :  { %2462 = vmatpush.msra.mxu0 %v2422_v48  ;;  %2491 = vmatpush.msra.mxu1 %v2423_v24  ;;  %v2734_v48 = vld [vmem:[#allocation3 + $0x618] sm:$0xff]  ;;  %v2629_v24 = vld [vmem:[#allocation3 + $0x560] sm:$0xff] }
 0x42f   :  { %2574 = vmatpush.msrb.mxu2 %v2518_v51  ;;  %2809 = vmatpush.msra.mxu3 %v2744_v44 }
 0x430   :  { %2463 = vmatpush.msra.mxu0 %v2420_v61  ;;  %2492 = vmatpush.msra.mxu1 %v2421_v63  ;;  %v2441_v61 = vpop.permute.xlu1 %2440  ;;  %v2732_v63 = vld [vmem:[#allocation3 + $0x608] sm:$0xff] }
 0x431   :  { %3851 = vmatmul.msk.f32.gmra.mxu0 %vm130_vm1, %v4555_v31  ;;  %3855 = vmatmul.msk.f32.gmra.mxu1 %vm130_vm1, %v4555_v31  ;;  %v2412_v31 = vld [vmem:[#allocation3 + $0x3c0] sm:$0xff] }
 0x432   :  { %2464 = vmatpush.msra.mxu0 %v2418_v2  ;;  %2493 = vmatpush.msra.mxu1 %v2419_v11  ;;  %v4733_v39 = vpop.f32.mrf.mxu2  ;;  %v4735_v23 = vpop.f32.mrf.mxu3  ;;  %v2627_v11 = vld [vmem:[#allocation3 + $0x550] sm:$0xff] }
 0x433   :  { %3874 = vmatmul.msk.f32.vlgmr.msrb.gmra.mxu2 %vm130_vm1, %v4612_v62  ;;  %v2645_v62 = vld [vmem:[#allocation3 + $0x5e0] sm:$0xff]  ;;  %3880 = vmatmul.msk.f32.gmra.mxu3 %vm130_vm1, %v4649_v26  ;;  %v2756_v2 = vpop.permute.xlu0 %2755 }
 0x434   :  { %2465 = vmatpush.msra.mxu0 %v2416_v59  ;;  %2494 = vmatpush.msra.mxu1 %v2417_v12  ;;  %v2626_v59 = vld [vmem:[#allocation3 + $0x548] sm:$0xff] }
 0x435   :  { %2775 = vmatpush.msra.mxu2 %v2753_v14  ;;  %2810 = vmatpush.msra.mxu3 %v2742_v6 }
 0x436   :  { %2466 = vmatpush.msra.mxu0 %v2414_v1  ;;  %2495 = vmatpush.msra.mxu1 %v2415_v10  ;;  %v2758_v1 = vpop.permute.xlu2 %2757 }
 0x437   :  { %2776 = vmatpush.msra.mxu2 %v2751_v56  ;;  %2811 = vmatpush.msra.mxu3 %v2740_v41 }
 0x438   :  { %2467 = vmatpush.msra.mxu0 %v2412_v31  ;;  %2496 = vmatpush.msra.mxu1 %v2413_v16  ;;  %v2650_v15 = vpop.permute.xlu1 %2649 }
 0x439   :  { %3852 = vmatmul.msk.f32.gmra.mxu0 %vm130_vm1, %v4527_v37  ;;  %3856 = vmatmul.msk.f32.gmra.mxu1 %vm130_vm1, %v4527_v37  ;;  %v2747_v37 = vld [vmem:[#allocation3 + $0x680] sm:$0xff] }
 0x43a   :  { %2669 = vmatpush.msrb.mxu0 %v2647_v19  ;;  %2698 = vmatpush.msrb.mxu1 %v2648_v7  ;;  %v4743_v5 = vpop.f32.mrf.mxu2  ;;  %v4745_v17 = vpop.f32.mrf.mxu3 }
 0x43b   :  { %3875 = vmatmul.msk.f32.gmra.mxu2 %vm130_vm1, %v4634_v36  ;;  %v2743_v36 = vld [vmem:[#allocation3 + $0x660] sm:$0xff]  ;;  %2812 = vmatpush.msra.mxu3 %v2738_v47  ;;  %v2652_v16 = vpop.permute.xlu0 %2651 }
 0x43c   :  { %2670 = vmatpush.msrb.mxu0 %v2645_v62  ;;  %2699 = vmatpush.msrb.mxu1 %v2646_v29 }
 0x43d   :  { %2777 = vmatpush.msra.mxu2 %v2749_v32  ;;  %3881 = vmatmul.msk.f32.gmra.mxu3 %vm130_vm1, %v4659_v8 }
 0x43e   :  { %2671 = vmatpush.msrb.mxu0 %v2643_v27  ;;  %2700 = vmatpush.msrb.mxu1 %v2644_v33  ;;  %v2654_v3 = vpop.permute.xlu2 %2653 }
 0x43f   :  { %2778 = vmatpush.msra.mxu2 %v2747_v37  ;;  %2813 = vmatpush.msra.mxu3 %v2736_v58 }
 0x440   :  { %2672 = vmatpush.msrb.mxu0 %v2641_v42  ;;  %2701 = vmatpush.msrb.mxu1 %v2642_v18  ;;  %v2760_v14 = vpop.permute.xlu1 %2759 }
 0x441   :  { %3853 = vmatmul.msk.f32.gmra.mxu0 %vm130_vm1, %v4542_v45  ;;  %3857 = vmatmul.msk.f32.gmra.mxu1 %vm130_vm1, %v4542_v45  ;;  %v2741_v45 = vld [vmem:[#allocation3 + $0x650] sm:$0xff] }
 0x442   :  { %2779 = vmatpush.msra.mxu2 %v2745_v34  ;;  %2673 = vmatpush.msrb.mxu0 %v2639_v60  ;;  %v4751_v12 = vpop.f32.mrf.mxu2  ;;  %v4753_v51 = vpop.f32.mrf.mxu3 }
 0x443   :  { %3876 = vmatmul.msk.f32.gmra.mxu2 %vm130_vm1, %v4649_v26  ;;  %2702 = vmatpush.msrb.mxu1 %v2640_v30  ;;  %v2737_v26 = vld [vmem:[#allocation3 + $0x630] sm:$0xff]  ;;  %v2762_v7 = vpop.permute.xlu0 %2761 }
 0x444   :  { %2780 = vmatpush.msra.mxu2 %v2743_v36  ;;  %2674 = vmatpush.msrb.mxu0 %v2637_v46 }
 0x445   :  { %2703 = vmatpush.msrb.mxu1 %v2638_v25  ;;  %2814 = vmatpush.msra.mxu3 %v2734_v48 }
 0x446   :  { %2781 = vmatpush.msra.mxu2 %v2741_v45  ;;  %2675 = vmatpush.msrb.mxu0 %v2635_v49 }
 0x447   :  { %2704 = vmatpush.msrb.mxu1 %v2636_v50  ;;  %2815 = vmatpush.msra.mxu3 %v2732_v63 }
 0x448   :  { %2782 = vmatpush.msra.mxu2 %v2739_v43  ;;  %2676 = vmatpush.msrb.mxu0 %v2633_v9  ;;  %v2656_v37 = vpop.permute.xlu1 %2655 }
 0x449   :  { %3866 = vmatmul.msk.f32.vlgmr.msra.gmra.mxu0 %vm130_vm1, %v2437_v20  ;;  %3870 = vmatmul.msk.f32.vlgmr.msra.gmra.mxu1 %vm130_vm1, %v2437_v20 }
 0x44a   :  { %2783 = vmatpush.msra.mxu2 %v2737_v26  ;;  %2705 = vmatpush.msrb.mxu1 %v2634_v53  ;;  %v4759_v10 = vpop.f32.mrf.mxu2  ;;  %v4761_v31 = vpop.f32.mrf.mxu3 }
 0x44b   :  { %3877 = vmatmul.msk.f32.gmra.mxu2 %vm130_vm1, %v4659_v8  ;;  %2677 = vmatpush.msrb.mxu0 %v2631_v21  ;;  %v2731_v8 = vld [vmem:[#allocation3 + $0x600] sm:$0xff] }
 0x44c   :  { %2784 = vmatpush.msra.mxu2 %v2735_v40  ;;  %2706 = vmatpush.msrb.mxu1 %v2632_v0 }
 0x44d   :  { %2678 = vmatpush.msrb.mxu0 %v2629_v24  ;;  %3894 = vmatmul.msk.f32.vlgmr.msra.gmra.mxu3 %vm130_vm1, %v2756_v2 }
 0x44e   :  { %2785 = vmatpush.msra.mxu2 %v2733_v52  ;;  %2707 = vmatpush.msrb.mxu1 %v2630_v35 }
 0x44f   :  { %2679 = vmatpush.msrb.mxu0 %v2627_v11 }
 0x450   :  { %2786 = vmatpush.msra.mxu2 %v2731_v8  ;;  %2708 = vmatpush.msrb.mxu1 %v2628_v54 }
 0x451   :  { %3867 = vmatmul.msk.f32.gmra.mxu0 %vm130_vm1, %v2439_v57  ;;  %3871 = vmatmul.msk.f32.gmra.mxu1 %vm130_vm1, %v2439_v57 }
 0x452   :  { %2680 = vmatpush.msrb.mxu0 %v2625_v13  ;;  %2709 = vmatpush.msrb.mxu1 %v2626_v59  ;;  %v2178_v19 = vpop.f32.mrf.mxu3 }
 0x453   :  { %3890 = vmatmul.msk.f32.vlgmr.msra.gmra.mxu2 %vm130_vm1, %v2756_v2 }
 0x455   :  { %3895 = vmatmul.msk.f32.gmra.mxu3 %vm130_vm1, %v2758_v1 }
 0x457   :  { %v2149_v4 = vpop.f32.mrf.mxu2 }
 0x459   :  { %3868 = vmatmul.msk.f32.gmra.mxu0 %vm130_vm1, %v2441_v61  ;;  %3872 = vmatmul.msk.f32.gmra.mxu1 %vm130_vm1, %v2441_v61 }
 0x45a   :  { %v2181_v32 = vpop.f32.mrf.mxu3 }
 0x45b   :  { %3891 = vmatmul.msk.f32.gmra.mxu2 %vm130_vm1, %v2758_v1 }
 0x45d   :  { %3896 = vmatmul.msk.f32.gmra.mxu3 %vm130_vm1, %v2760_v14 }
 0x45f   :  { %v2152_v29 = vpop.f32.mrf.mxu2 }
 0x461   :  { %3869 = vmatmul.msk.f32.gmra.mxu0 %vm130_vm1, %v2443_v55  ;;  %3873 = vmatmul.msk.f32.gmra.mxu1 %vm130_vm1, %v2443_v55 }
 0x462   :  { %v2184_v27 = vpop.f32.mrf.mxu3 }
 0x463   :  { %3892 = vmatmul.msk.f32.gmra.mxu2 %vm130_vm1, %v2760_v14 }
 0x465   :  { %3897 = vmatmul.msk.f32.gmra.mxu3 %vm130_vm1, %v2762_v7 }
 0x467   :  { %v2155_v28 = vpop.f32.mrf.mxu2 }
 0x469   :  { %3882 = vmatmul.msk.f32.vlgmr.msrb.gmra.mxu0 %vm130_vm1, %v2650_v15  ;;  %3886 = vmatmul.msk.f32.vlgmr.msrb.gmra.mxu1 %vm130_vm1, %v2650_v15 }
 0x46b   :  { %3893 = vmatmul.msk.f32.gmra.mxu2 %vm130_vm1, %v2762_v7  ;;  %v4781_v42 = vpop.f32.mrf.mxu3 }
 0x46e   :  { %v1865_v56 = vpop.f32.mrf.mxu0  ;;  %v1889_v22 = vpop.f32.mrf.mxu1 }
 0x46f   :  { %v1892_v62 = vmax.f32 %v1865_v56, %v1889_v22  ;;  %v4779_v38 = vpop.f32.mrf.mxu2 }
 0x471   :  { %3883 = vmatmul.msk.f32.gmra.mxu0 %vm130_vm1, %v2652_v16  ;;  %3887 = vmatmul.msk.f32.gmra.mxu1 %vm130_vm1, %v2652_v16  ;;  %1893 = vst.msk [vmem:[%s4930_s9] sm:$0xff] %vm1173_vm7, %v1892_v62 }
 0x478   :  { %v2392_v60 = vpop.f32.mrf.mxu3 }
 0x479   :  { %3884 = vmatmul.msk.f32.gmra.mxu0 %vm130_vm1, %v2654_v3  ;;  %3888 = vmatmul.msk.f32.gmra.mxu1 %vm130_vm1, %v2654_v3 }
 0x47a   :  { %v2363_v44 = vpop.f32.mrf.mxu2 }
 0x480   :  { %v2395_v6 = vpop.f32.mrf.mxu3 }
 0x481   :  { %3885 = vmatmul.msk.f32.gmra.mxu0 %vm130_vm1, %v2656_v37  ;;  %3889 = vmatmul.msk.f32.gmra.mxu1 %vm130_vm1, %v2656_v37 }
 0x482   :  { %v2366_v45 = vpop.f32.mrf.mxu2 }
 0x486   :  { %v2051_v33 = vpop.f32.mrf.mxu0  ;;  %v2080_v34 = vpop.f32.mrf.mxu1 }
 0x487   :  { %v2052_v43 = vadd.f32 %v2051_v33, %v4733_v39  ;;  %v2081_v41 = vadd.f32 %v2080_v34, %v4735_v23 }
 0x488   :  { %v2398_v47 = vpop.f32.mrf.mxu3 }
 0x489   :  { %v2190_v49 = vadd.f32 %v2149_v4, %v2052_v43  ;;  %v2191_v50 = vadd.f32 %v2178_v19, %v2081_v41 }
 0x48a   :  { %v2369_v26 = vpop.f32.mrf.mxu2 }
 0x48e   :  { %v2054_v18 = vpop.f32.mrf.mxu0  ;;  %v2083_v36 = vpop.f32.mrf.mxu1 }
 0x48f   :  { %v2055_v58 = vadd.f32 %v2054_v18, %v4743_v5  ;;  %v2084_v21 = vadd.f32 %v2083_v36, %v4745_v17 }
 0x491   :  { %v2192_v48 = vadd.f32 %v2152_v29, %v2055_v58  ;;  %v2193_v24 = vadd.f32 %v2181_v32, %v2084_v21 }
 0x492   :  { %v4791_v8 = vpop.f32.mrf.mxu2  ;;  %v4793_v63 = vpop.f32.mrf.mxu3 }
 0x496   :  { %v2057_v30 = vpop.f32.mrf.mxu0  ;;  %v2086_v20 = vpop.f32.mrf.mxu1 }
 0x497   :  { %v2058_v55 = vadd.f32 %v2057_v30, %v4751_v12  ;;  %v2087_v2 = vadd.f32 %v2086_v20, %v4753_v51 }
 0x499   :  { %v2194_v54 = vadd.f32 %v2155_v28, %v2058_v55  ;;  %v2195_v17 = vadd.f32 %v2184_v27, %v2087_v2 }
 0x49e   :  { %v4783_v46 = vpop.f32.mrf.mxu0  ;;  %v4785_v25 = vpop.f32.mrf.mxu1 }
 0x4a0   :  { %v2605_v19 = vpop.f32.mrf.mxu3 }
 0x4a6   :  { %v2257_v57 = vpop.f32.mrf.mxu0  ;;  %v2286_v9 = vpop.f32.mrf.mxu1 }
 0x4a7   :  { %v2298_v53 = vadd.f32 %v2257_v57, %v2190_v49  ;;  %v2299_v40 = vadd.f32 %v2286_v9, %v2191_v50 }
 0x4a8   :  { %v2608_v62 = vpop.f32.mrf.mxu3 }
 0x4a9   :  { %v2404_v0 = vadd.f32 %v2363_v44, %v2298_v53  ;;  %v2405_v52 = vadd.f32 %v2392_v60, %v2299_v40 }
 0x4ae   :  { %v2260_v35 = vpop.f32.mrf.mxu0  ;;  %v2289_v39 = vpop.f32.mrf.mxu1 }
 0x4af   :  { %v2300_v61 = vadd.f32 %v2260_v35, %v2192_v48  ;;  %v2301_v23 = vadd.f32 %v2289_v39, %v2193_v24  ;;  %v2061_v24 = vadd.f32 %v4783_v46, %v4759_v10  ;;  %v2090_v35 = vadd.f32 %v4785_v25, %v4761_v31 }
 0x4b1   :  { %v2406_v11 = vadd.f32 %v2366_v45, %v2300_v61  ;;  %v2407_v5 = vadd.f32 %v2395_v6, %v2301_v23  ;;  %v2837_v45 = vld [vmem:[%s4923_s2] sm:$0x3] }
 0x4b2   :  { %v4806_v57 = vperm.slane %v2837_v45, 1 }
 0x4b6   :  { %v2263_v13 = vpop.f32.mrf.mxu0  ;;  %v2292_v59 = vpop.f32.mrf.mxu1 }
 0x4b7   :  { %v2302_v15 = vadd.f32 %v2263_v13, %v2194_v54  ;;  %v2303_v1 = vadd.f32 %v2292_v59, %v2195_v17  ;;  %v2576_v4 = vpop.f32.mrf.mxu2  ;;  %v2611_v51 = vpop.f32.mrf.mxu3  ;;  %v2196_v13 = vadd.f32 %v4779_v38, %v2061_v24  ;;  %v2197_v59 = vadd.f32 %v4781_v42, %v2090_v35 }
 0x4b9   :  { %v2408_v16 = vadd.f32 %v2369_v26, %v2302_v15  ;;  %v2409_v14 = vadd.f32 %v2398_v47, %v2303_v1  ;;  %v4804_v47 = vperm.slane %v2837_v45, 0 }
 0x4be   :  { %v2266_v7 = vpop.f32.mrf.mxu0  ;;  %v2295_v56 = vpop.f32.mrf.mxu1 }
 0x4bf   :  { %v2579_v22 = vpop.f32.mrf.mxu2  ;;  %v2304_v46 = vadd.f32 %v2266_v7, %v2196_v13  ;;  %v2955_v13 = vld [vmem:[#allocation5 + $0x68] sm:$0xff] }
 0x4c0   :  { %v4799_v27 = vpop.f32.mrf.mxu3 }
 0x4c1   :  { %v2410_v38 = vadd.f32 %v4791_v8, %v2304_v46  ;;  %v2949_v46 = vld [vmem:[#allocation5 + $0x38] sm:$0xff] }
 0x4c6   :  { %v2469_v29 = vpop.f32.mrf.mxu0  ;;  %v2498_v12 = vpop.f32.mrf.mxu1 }
 0x4c7   :  { %v2582_v32 = vpop.f32.mrf.mxu2  ;;  %v2510_v30 = vadd.f32 %v2469_v29, %v2404_v0  ;;  %v2511_v20 = vadd.f32 %v2498_v12, %v2405_v52 }
 0x4c9   :  { %v2617_v6 = vadd.f32 %v2576_v4, %v2510_v30  ;;  %v2618_v43 = vadd.f32 %v2605_v19, %v2511_v20  ;;  %v2305_v19 = vadd.f32 %v2295_v56, %v2197_v59  ;;  %v2952_v59 = vld [vmem:[#allocation5 + $0x50] sm:$0xff] }
 0x4ce   :  { %v2472_v3 = vpop.f32.mrf.mxu0  ;;  %v2501_v37 = vpop.f32.mrf.mxu1 }
 0x4cf   :  { %v4797_v28 = vpop.f32.mrf.mxu2  ;;  %v2512_v9 = vadd.f32 %v2472_v3, %v2406_v11  ;;  %v2513_v53 = vadd.f32 %v2501_v37, %v2407_v5 }
 0x4d0   :  { %v2817_v60 = vpop.f32.mrf.mxu3 }
 0x4d1   :  { %v2619_v39 = vadd.f32 %v2579_v22, %v2512_v9  ;;  %v2620_v61 = vadd.f32 %v2608_v62, %v2513_v53 }
 0x4d6   :  { %v2475_v33 = vpop.f32.mrf.mxu0  ;;  %v2504_v34 = vpop.f32.mrf.mxu1 }
 0x4d7   :  { %v2788_v44 = vpop.f32.mrf.mxu2  ;;  %v2514_v15 = vadd.f32 %v2475_v33, %v2408_v16  ;;  %v2515_v1 = vadd.f32 %v2504_v34, %v2409_v14  ;;  %v2411_v16 = vadd.f32 %v4793_v63, %v2305_v19  ;;  %v2946_v19 = vld [vmem:[#allocation5 + $0x20] sm:$0xff] }
 0x4d8   :  { %v2820_v0 = vpop.f32.mrf.mxu3 }
 0x4d9   :  { %v2621_v29 = vadd.f32 %v2582_v32, %v2514_v15  ;;  %v2622_v12 = vadd.f32 %v2611_v51, %v2515_v1  ;;  %v2953_v15 = vld [vmem:[#allocation5 + $0x58] sm:$0xff]  ;;  %v2950_v1 = vld [vmem:[#allocation5 + $0x40] sm:$0xff] }
 0x4de   :  { %v2478_v18 = vpop.f32.mrf.mxu0  ;;  %v2507_v36 = vpop.f32.mrf.mxu1 }
 0x4df   :  { %v2791_v21 = vpop.f32.mrf.mxu2  ;;  %v2516_v56 = vadd.f32 %v2478_v18, %v2410_v38  ;;  %v2517_v34 = vadd.f32 %v2507_v36, %v2411_v16  ;;  %v3185_v38 = vld [vmem:[#allocation5 + $0x268] sm:$0xff]  ;;  %v3183_v16 = vld [vmem:[#allocation5 + $0x258] sm:$0xff] }
 0x4e0   :  { %v2823_v62 = vpop.f32.mrf.mxu3 }
 0x4e1   :  { %v2623_v51 = vadd.f32 %v4797_v28, %v2516_v56  ;;  %v2624_v45 = vadd.f32 %v4799_v27, %v2517_v34  ;;  %v2863_v27 = vld [vmem:[%s4924_s3] sm:$0xff]  ;;  %v3179_v56 = vld [vmem:[#allocation5 + $0x238] sm:$0xff]  ;;  %v3176_v34 = vld [vmem:[#allocation5 + $0x220] sm:$0xff] }
 0x4e6   :  { %v2682_v41 = vpop.f32.mrf.mxu0  ;;  %v2711_v49 = vpop.f32.mrf.mxu1 }
 0x4e7   :  { %v2723_v50 = vadd.f32 %v2682_v41, %v2617_v6  ;;  %v2724_v26 = vadd.f32 %v2711_v49, %v2618_v43  ;;  %v2794_v22 = vpop.f32.mrf.mxu2 }
 0x4e8   :  { %v2826_v41 = vpop.f32.mrf.mxu3 }
 0x4e9   :  { %v2829_v40 = vadd.f32 %v2788_v44, %v2723_v50  ;;  %v2830_v58 = vadd.f32 %v2817_v60, %v2724_v26 }
 0x4eb   :  { %v2843_v52 = vadd.f32 %v4804_v47, %v2829_v40  ;;  %v2844_v48 = vadd.f32 %v4806_v57, %v2830_v58 }
 0x4ed   :  { %v2851_v23 = vmax.f32 %v2843_v52, 0.0  ;;  %v2852_v55 = vmax.f32 %v2844_v48, 0.0 }
 0x4ee   :  { %v2685_v2 = vpop.f32.mrf.mxu0  ;;  %v2714_v11 = vpop.f32.mrf.mxu1 }
 0x4ef   :  { %v2725_v5 = vadd.f32 %v2685_v2, %v2619_v39  ;;  %v2726_v54 = vadd.f32 %v2714_v11, %v2620_v61  ;;  %v2859_v17 = vmax.f32 %v2851_v23, %v2852_v55  ;;  %v2797_v43 = vpop.f32.mrf.mxu2  ;;  %v2960_v23 = vld [vmem:[#allocation5 + $0x90] sm:$0xff]  ;;  %v2961_v55 = vld [vmem:[#allocation5 + $0x98] sm:$0xff]  ;;  %v2958_v2 = vld [vmem:[#allocation5 + $0x80] sm:$0xff] }
 0x4f0   :  { %3048 = vmatpush.msrb.mxu2 %v2960_v23  ;;  %3071 = vmatpush.msrb.mxu3 %v2961_v55  ;;  %v2959_v11 = vld [vmem:[#allocation5 + $0x88] sm:$0xff]  ;;  %v2965_v23 = vld [vmem:[#allocation5 + $0xb8] sm:$0xff] }
 0x4f1   :  { %v2831_v4 = vadd.f32 %v2791_v21, %v2725_v5  ;;  %v2832_v10 = vadd.f32 %v2820_v0, %v2726_v54  ;;  %v2894_v0 = vld [vmem:[%s4925_s4] sm:$0xff]  ;;  %v2956_v5 = vld [vmem:[#allocation5 + $0x70] sm:$0xff]  ;;  %v2957_v54 = vld [vmem:[#allocation5 + $0x78] sm:$0xff] }
 0x4f2   :  { %3049 = vmatpush.msrb.mxu2 %v2958_v2  ;;  %3072 = vmatpush.msrb.mxu3 %v2959_v11  ;;  %v2962_v2 = vld [vmem:[#allocation5 + $0xa0] sm:$0xff]  ;;  %v2963_v11 = vld [vmem:[#allocation5 + $0xa8] sm:$0xff] }
 0x4f3   :  { %v2845_v31 = vadd.f32 %v4804_v47, %v2831_v4  ;;  %v2846_v25 = vadd.f32 %v4806_v57, %v2832_v10  ;;  %v2951_v4 = vld [vmem:[#allocation5 + $0x48] sm:$0xff]  ;;  %v2948_v10 = vld [vmem:[#allocation5 + $0x30] sm:$0xff] }
 0x4f4   :  { %3050 = vmatpush.msrb.mxu2 %v2956_v5  ;;  %3073 = vmatpush.msrb.mxu3 %v2957_v54  ;;  %v3106_v5 = vld [vmem:[#allocation5 + $0x1d0] sm:$0xff]  ;;  %v3107_v54 = vld [vmem:[#allocation5 + $0x1d8] sm:$0xff] }
 0x4f5   :  { %v2853_v3 = vmax.f32 %v2845_v31, 0.0  ;;  %v2854_v37 = vmax.f32 %v2846_v25, 0.0  ;;  %v2947_v31 = vld [vmem:[#allocation5 + $0x28] sm:$0xff]  ;;  %v2944_v25 = vld [vmem:[#allocation5 + $0x10] sm:$0xff] }
 0x4f6   :  { %v2688_v44 = vpop.f32.mrf.mxu0  ;;  %v2717_v42 = vpop.f32.mrf.mxu1  ;;  %3074 = vmatpush.msrb.mxu3 %v2955_v13  ;;  %v3105_v13 = vld [vmem:[#allocation5 + $0x1c8] sm:$0xff] }
 0x4f7   :  { %v2727_v14 = vadd.f32 %v2688_v44, %v2621_v29  ;;  %v2728_v33 = vadd.f32 %v2717_v42, %v2622_v12  ;;  %v2860_v7 = vmax.f32 %v2853_v3, %v2854_v37  ;;  %v2943_v29 = vld [vmem:[#allocation5 + $0x8] sm:$0xff]  ;;  %v3186_v12 = vld [vmem:[#allocation5 + $0x270] sm:$0xff]  ;;  %v3187_v3 = vld [vmem:[#allocation5 + $0x278] sm:$0xff] }
 0x4f8   :  { %3075 = vmatpush.msrb.mxu3 %v2953_v15  ;;  %v3184_v37 = vld [vmem:[#allocation5 + $0x260] sm:$0xff]  ;;  %v3182_v42 = vld [vmem:[#allocation5 + $0x250] sm:$0xff]  ;;  %v3103_v15 = vld [vmem:[#allocation5 + $0x1b8] sm:$0xff] }
 0x4f9   :  { %v2833_v60 = vadd.f32 %v2794_v22, %v2727_v14  ;;  %v2834_v30 = vadd.f32 %v2823_v62, %v2728_v33  ;;  %v2945_v22 = vld [vmem:[#allocation5 + $0x18] sm:$0xff]  ;;  %v2942_v62 = vld [vmem:[#allocation5] sm:$0xff]  ;;  %v3181_v33 = vld [vmem:[#allocation5 + $0x248] sm:$0xff] }
 0x4fa   :  { %3076 = vmatpush.msrb.mxu3 %v2951_v4  ;;  %v3180_v14 = vld [vmem:[#allocation5 + $0x240] sm:$0xff]  ;;  %v3101_v4 = vld [vmem:[#allocation5 + $0x1a8] sm:$0xff] }
 0x4fb   :  { %v2847_v20 = vadd.f32 %v4804_v47, %v2833_v60  ;;  %v2848_v32 = vadd.f32 %v4806_v57, %v2834_v30  ;;  %v3177_v60 = vld [vmem:[#allocation5 + $0x228] sm:$0xff] }
 0x4fc   :  { %3077 = vmatpush.msrb.mxu3 %v2949_v46  ;;  %v3099_v46 = vld [vmem:[#allocation5 + $0x198] sm:$0xff] }
 0x4fd   :  { %v2855_v8 = vmax.f32 %v2847_v20, 0.0  ;;  %v2856_v6 = vmax.f32 %v2848_v32, 0.0  ;;  %v3174_v20 = vld [vmem:[#allocation5 + $0x210] sm:$0xff]  ;;  %v3175_v32 = vld [vmem:[#allocation5 + $0x218] sm:$0xff] }
 0x4fe   :  { %v2691_v63 = vpop.f32.mrf.mxu0  ;;  %v2720_v49 = vpop.f32.mrf.mxu1  ;;  %3078 = vmatpush.msrb.mxu3 %v2947_v31  ;;  %v3097_v31 = vld [vmem:[#allocation5 + $0x188] sm:$0xff] }
 0x4ff   :  { %v2729_v50 = vadd.f32 %v2691_v63, %v2623_v51  ;;  %v2730_v26 = vadd.f32 %v2720_v49, %v2624_v45  ;;  %v2861_v18 = vmax.f32 %v2855_v8, %v2856_v6  ;;  %v3172_v51 = vld [vmem:[#allocation5 + $0x200] sm:$0xff]  ;;  %v3173_v45 = vld [vmem:[#allocation5 + $0x208] sm:$0xff]  ;;  %v3170_v8 = vld [vmem:[#allocation5 + $0x1f0] sm:$0xff] }
 0x500   :  { %3079 = vmatpush.msrb.mxu3 %v2945_v22  ;;  %v3171_v6 = vld [vmem:[#allocation5 + $0x1f8] sm:$0xff]  ;;  %v2980_v49 = vld [vmem:[#allocation5 + $0x130] sm:$0xff] }
 0x501   :  { %v2835_v36 = vadd.f32 %v2797_v43, %v2729_v50  ;;  %v2836_v9 = vadd.f32 %v2826_v41, %v2730_v26  ;;  %v3168_v43 = vld [vmem:[#allocation5 + $0x1e0] sm:$0xff]  ;;  %v3169_v41 = vld [vmem:[#allocation5 + $0x1e8] sm:$0xff]  ;;  %v2981_v50 = vld [vmem:[#allocation5 + $0x138] sm:$0xff] }
 0x502   :  { %3080 = vmatpush.msrb.mxu3 %v2943_v29  ;;  %v2978_v26 = vld [vmem:[#allocation5 + $0x120] sm:$0xff]  ;;  %v3095_v22 = vld [vmem:[#allocation5 + $0x178] sm:$0xff]  ;;  %v3093_v29 = vld [vmem:[#allocation5 + $0x168] sm:$0xff] }
 0x503   :  { %v2849_v53 = vadd.f32 %v4804_v47, %v2835_v36  ;;  %v2850_v40 = vadd.f32 %v4806_v57, %v2836_v9  ;;  %v2864_v47 = vld [vmem:[%s4924_s3 + $0x8] sm:$0xff]  ;;  %v2977_v9 = vld [vmem:[#allocation5 + $0x118] sm:$0xff] }
 0x504   :  { %v2895_v57 = vld [vmem:[%s4925_s4 + $0x8] sm:$0xff]  ;;  %3223 = vmatpush.msra.mxu3 %v3187_v3  ;;  %v3091_v3 = vld [vmem:[#allocation5 + $0x158] sm:$0xff] }
 0x505   :  { %v2857_v58 = vmax.f32 %v2849_v53, 0.0  ;;  %v2858_v21 = vmax.f32 %v2850_v40, 0.0  ;;  %v2976_v36 = vld [vmem:[#allocation5 + $0x110] sm:$0xff] }
 0x506   :  { %3224 = vmatpush.msra.mxu3 %v3185_v38  ;;  %v3089_v38 = vld [vmem:[#allocation5 + $0x148] sm:$0xff] }
 0x507   :  { %v2862_v28 = vmax.f32 %v2857_v58, %v2858_v21  ;;  %v2974_v58 = vld [vmem:[#allocation5 + $0x100] sm:$0xff]  ;;  %v2975_v21 = vld [vmem:[#allocation5 + $0x108] sm:$0xff] }
 0x508   :  { %3225 = vmatpush.msra.mxu3 %v3183_v16  ;;  %v3338_v16 = vld [vmem:[#allocation5 + $0x3a0] sm:$0xff] }
 0x509   :  { %2883 = vmatpush.msra.mxu0 %v2862_v28  ;;  %2914 = vmatpush.msra.mxu1 %v2862_v28  ;;  %v2972_v28 = vld [vmem:[#allocation5 + $0xf0] sm:$0xff] }
 0x50a   :  { %3226 = vmatpush.msra.mxu3 %v3181_v33  ;;  %v3336_v33 = vld [vmem:[#allocation5 + $0x390] sm:$0xff] }
 0x50b   :  { %2884 = vmatpush.msra.mxu0 %v2861_v18  ;;  %2915 = vmatpush.msra.mxu1 %v2861_v18  ;;  %v2979_v18 = vld [vmem:[#allocation5 + $0x128] sm:$0xff] }
 0x50c   :  { %3227 = vmatpush.msra.mxu3 %v3179_v56  ;;  %v3334_v56 = vld [vmem:[#allocation5 + $0x380] sm:$0xff] }
 0x50d   :  { %2885 = vmatpush.msra.mxu0 %v2860_v7  ;;  %2916 = vmatpush.msra.mxu1 %v2860_v7  ;;  %v3178_v7 = vld [vmem:[#allocation5 + $0x230] sm:$0xff] }
 0x50e   :  { %3228 = vmatpush.msra.mxu3 %v3177_v60  ;;  %v3332_v60 = vld [vmem:[#allocation5 + $0x370] sm:$0xff] }
 0x50f   :  { %2886 = vmatpush.msra.mxu0 %v2859_v17  ;;  %2917 = vmatpush.msra.mxu1 %v2859_v17  ;;  %v2954_v17 = vld [vmem:[#allocation5 + $0x60] sm:$0xff] }
 0x510   :  { %3898 = vmatmul.msk.f32.vlgmr.msra.gmra.mxu0 %vm1045_vm3, %v2863_v27  ;;  %3900 = vmatmul.msk.f32.vlgmr.msra.gmra.mxu1 %vm1045_vm3, %v2894_v0  ;;  %v2973_v27 = vld [vmem:[#allocation5 + $0xf8] sm:$0xff]  ;;  %v2970_v0 = vld [vmem:[#allocation5 + $0xe0] sm:$0xff] }
 0x511   :  { %3051 = vmatpush.msrb.mxu2 %v2954_v17  ;;  %3229 = vmatpush.msra.mxu3 %v3175_v32  ;;  %v3104_v17 = vld [vmem:[#allocation5 + $0x1c0] sm:$0xff]  ;;  %v3331_v32 = vld [vmem:[#allocation5 + $0x368] sm:$0xff] }
 0x512   :  { %2998 = vmatpush.msrb.mxu0 %v2980_v49  ;;  %3021 = vmatpush.msrb.mxu1 %v2981_v50  ;;  %v3326_v49 = vld [vmem:[#allocation5 + $0x340] sm:$0xff]  ;;  %v3327_v50 = vld [vmem:[#allocation5 + $0x348] sm:$0xff] }
 0x513   :  { %3052 = vmatpush.msrb.mxu2 %v2952_v59  ;;  %3230 = vmatpush.msra.mxu3 %v3173_v45  ;;  %v3102_v59 = vld [vmem:[#allocation5 + $0x1b0] sm:$0xff]  ;;  %v3329_v45 = vld [vmem:[#allocation5 + $0x358] sm:$0xff] }
 0x514   :  { %2999 = vmatpush.msrb.mxu0 %v2978_v26  ;;  %3022 = vmatpush.msrb.mxu1 %v2979_v18  ;;  %v3324_v26 = vld [vmem:[#allocation5 + $0x330] sm:$0xff]  ;;  %v3325_v18 = vld [vmem:[#allocation5 + $0x338] sm:$0xff] }
 0x515   :  { %3053 = vmatpush.msrb.mxu2 %v2950_v1  ;;  %3231 = vmatpush.msra.mxu3 %v3171_v6  ;;  %v3100_v1 = vld [vmem:[#allocation5 + $0x1a0] sm:$0xff]  ;;  %v3263_v6 = vld [vmem:[#allocation5 + $0x318] sm:$0xff] }
 0x516   :  { %3000 = vmatpush.msrb.mxu0 %v2976_v36  ;;  %3023 = vmatpush.msrb.mxu1 %v2977_v9  ;;  %v3258_v36 = vld [vmem:[#allocation5 + $0x2f0] sm:$0xff]  ;;  %v3259_v9 = vld [vmem:[#allocation5 + $0x2f8] sm:$0xff] }
 0x517   :  { %3054 = vmatpush.msrb.mxu2 %v2948_v10  ;;  %3232 = vmatpush.msra.mxu3 %v3169_v41  ;;  %v3098_v10 = vld [vmem:[#allocation5 + $0x190] sm:$0xff]  ;;  %v3260_v41 = vld [vmem:[#allocation5 + $0x300] sm:$0xff] }
 0x518   :  { %3899 = vmatmul.msk.f32.gmra.mxu0 %vm1045_vm3, %v2864_v47  ;;  %3901 = vmatmul.msk.f32.gmra.mxu1 %vm1045_vm3, %v2895_v57  ;;  %v2971_v47 = vld [vmem:[#allocation5 + $0xe8] sm:$0xff] }
 0x519   :  { %3055 = vmatpush.msrb.mxu2 %v2946_v19  ;;  %3001 = vmatpush.msrb.mxu0 %v2974_v58  ;;  %v3096_v19 = vld [vmem:[#allocation5 + $0x180] sm:$0xff] }
 0x51a   :  { %3024 = vmatpush.msrb.mxu1 %v2975_v21  ;;  %v3256_v58 = vld [vmem:[#allocation5 + $0x2e0] sm:$0xff]  ;;  %v3257_v21 = vld [vmem:[#allocation5 + $0x2e8] sm:$0xff] }
 0x51b   :  { %3056 = vmatpush.msrb.mxu2 %v2944_v25  ;;  %3002 = vmatpush.msrb.mxu0 %v2972_v28  ;;  %v3094_v25 = vld [vmem:[#allocation5 + $0x170] sm:$0xff] }
 0x51c   :  { %3025 = vmatpush.msrb.mxu1 %v2973_v27  ;;  %v3496_v28 = vld [vmem:[#allocation5 + $0x4f0] sm:$0xff]  ;;  %v3497_v27 = vld [vmem:[#allocation5 + $0x4f8] sm:$0xff] }
 0x51d   :  { %3057 = vmatpush.msrb.mxu2 %v2942_v62  ;;  %3003 = vmatpush.msrb.mxu0 %v2970_v0  ;;  %v3092_v62 = vld [vmem:[#allocation5 + $0x160] sm:$0xff]  ;;  %v3254_v0 = vld [vmem:[#allocation5 + $0x2d0] sm:$0xff] }
 0x51e   :  { %3026 = vmatpush.msrb.mxu1 %v2971_v47  ;;  %v3255_v47 = vld [vmem:[#allocation5 + $0x2d8] sm:$0xff] }
 0x51f   :  { %3200 = vmatpush.msra.mxu2 %v3186_v12  ;;  %v3090_v12 = vld [vmem:[#allocation5 + $0x150] sm:$0xff] }
 0x521   :  { %3201 = vmatpush.msra.mxu2 %v3184_v37  ;;  %v3088_v37 = vld [vmem:[#allocation5 + $0x140] sm:$0xff] }
 0x523   :  { %3202 = vmatpush.msra.mxu2 %v3182_v42  ;;  %v3341_v42 = vld [vmem:[#allocation5 + $0x3b8] sm:$0xff] }
 0x525   :  { %3203 = vmatpush.msra.mxu2 %v3180_v14  ;;  %v3339_v14 = vld [vmem:[#allocation5 + $0x3a8] sm:$0xff] }
 0x527   :  { %3204 = vmatpush.msra.mxu2 %v3178_v7  ;;  %v3337_v7 = vld [vmem:[#allocation5 + $0x398] sm:$0xff] }
 0x529   :  { %3205 = vmatpush.msra.mxu2 %v3176_v34  ;;  %v3335_v34 = vld [vmem:[#allocation5 + $0x388] sm:$0xff] }
 0x52b   :  { %3206 = vmatpush.msra.mxu2 %v3174_v20  ;;  %v3330_v20 = vld [vmem:[#allocation5 + $0x360] sm:$0xff] }
 0x52d   :  { %3207 = vmatpush.msra.mxu2 %v3172_v51  ;;  %v3328_v51 = vld [vmem:[#allocation5 + $0x350] sm:$0xff] }
 0x52f   :  { %3208 = vmatpush.msra.mxu2 %v3170_v8  ;;  %v3262_v8 = vld [vmem:[#allocation5 + $0x310] sm:$0xff] }
 0x531   :  { %3209 = vmatpush.msra.mxu2 %v3168_v43 }
 0x58d   :  { %v2888_v52 = vpop.f32.mrf.mxu0  ;;  %v2919_v48 = vpop.f32.mrf.mxu1 }
 0x58e   :  { %v2925_v24 = vmax.f32 %v2888_v52, %v2919_v48  ;;  %v2968_v48 = vld [vmem:[#allocation5 + $0xd0] sm:$0xff] }
 0x58f   :  { %3004 = vmatpush.msrb.mxu0 %v2968_v48  ;;  %v3494_v48 = vld [vmem:[#allocation5 + $0x4e0] sm:$0xff] }
 0x590   :  { %2932 = vrot.lane.b32.xlu2 %v2925_v24, %s4010_s20  ;;  %v2969_v24 = vld [vmem:[#allocation5 + $0xd8] sm:$0xff] }
 0x591   :  { %3027 = vmatpush.msrb.mxu1 %v2969_v24  ;;  %v3495_v24 = vld [vmem:[#allocation5 + $0x4e8] sm:$0xff] }
 0x595   :  { %v2891_v35 = vpop.f32.mrf.mxu0  ;;  %v2922_v39 = vpop.f32.mrf.mxu1 }
 0x596   :  { %v2926_v61 = vmax.f32 %v2891_v35, %v2922_v39  ;;  %v2966_v35 = vld [vmem:[#allocation5 + $0xc0] sm:$0xff]  ;;  %v2967_v39 = vld [vmem:[#allocation5 + $0xc8] sm:$0xff] }
 0x597   :  { %3005 = vmatpush.msrb.mxu0 %v2966_v35  ;;  %3028 = vmatpush.msrb.mxu1 %v2967_v39  ;;  %v3252_v35 = vld [vmem:[#allocation5 + $0x2c0] sm:$0xff]  ;;  %v3253_v39 = vld [vmem:[#allocation5 + $0x2c8] sm:$0xff] }
 0x598   :  { %2934 = vrot.lane.b32.xlu0 %v2926_v61, %s4010_s20  ;;  %v2964_v61 = vld [vmem:[#allocation5 + $0xb0] sm:$0xff] }
 0x599   :  { %3006 = vmatpush.msrb.mxu0 %v2964_v61  ;;  %3029 = vmatpush.msrb.mxu1 %v2965_v23  ;;  %v3492_v61 = vld [vmem:[#allocation5 + $0x4d0] sm:$0xff]  ;;  %v3493_v23 = vld [vmem:[#allocation5 + $0x4d8] sm:$0xff] }
 0x59b   :  { %3007 = vmatpush.msrb.mxu0 %v2962_v2  ;;  %3030 = vmatpush.msrb.mxu1 %v2963_v11  ;;  %v3250_v2 = vld [vmem:[#allocation5 + $0x2b0] sm:$0xff]  ;;  %v3251_v11 = vld [vmem:[#allocation5 + $0x2b8] sm:$0xff] }
 0x59d   :  { %3122 = vmatpush.msra.mxu0 %v3106_v5  ;;  %3145 = vmatpush.msra.mxu1 %v3107_v54  ;;  %v3490_v5 = vld [vmem:[#allocation5 + $0x4c0] sm:$0xff]  ;;  %v3491_v54 = vld [vmem:[#allocation5 + $0x4c8] sm:$0xff] }
 0x59f   :  { %3123 = vmatpush.msra.mxu0 %v3104_v17  ;;  %3146 = vmatpush.msra.mxu1 %v3105_v13  ;;  %v3248_v17 = vld [vmem:[#allocation5 + $0x2a0] sm:$0xff]  ;;  %v3249_v13 = vld [vmem:[#allocation5 + $0x2a8] sm:$0xff] }
 0x5a1   :  { %3124 = vmatpush.msra.mxu0 %v3102_v59  ;;  %3147 = vmatpush.msra.mxu1 %v3103_v15  ;;  %v3246_v59 = vld [vmem:[#allocation5 + $0x290] sm:$0xff]  ;;  %v3247_v15 = vld [vmem:[#allocation5 + $0x298] sm:$0xff] }
 0x5a3   :  { %3125 = vmatpush.msra.mxu0 %v3100_v1  ;;  %3148 = vmatpush.msra.mxu1 %v3101_v4  ;;  %v3488_v4 = vld [vmem:[#allocation5 + $0x4b0] sm:$0xff] }
 0x5a5   :  { %3126 = vmatpush.msra.mxu0 %v3098_v10  ;;  %3149 = vmatpush.msra.mxu1 %v3099_v46  ;;  %v3489_v10 = vld [vmem:[#allocation5 + $0x4b8] sm:$0xff]  ;;  %v3244_v46 = vld [vmem:[#allocation5 + $0x280] sm:$0xff] }
 0x5a7   :  { %3127 = vmatpush.msra.mxu0 %v3096_v19  ;;  %3150 = vmatpush.msra.mxu1 %v3097_v31  ;;  %v3245_v19 = vld [vmem:[#allocation5 + $0x288] sm:$0xff]  ;;  %v3420_v31 = vld [vmem:[#allocation5 + $0x450] sm:$0xff] }
 0x5a9   :  { %3128 = vmatpush.msra.mxu0 %v3094_v25  ;;  %3151 = vmatpush.msra.mxu1 %v3095_v22  ;;  %v3421_v25 = vld [vmem:[#allocation5 + $0x458] sm:$0xff]  ;;  %v3486_v22 = vld [vmem:[#allocation5 + $0x4a0] sm:$0xff] }
 0x5ab   :  { %3129 = vmatpush.msra.mxu0 %v3092_v62  ;;  %3152 = vmatpush.msra.mxu1 %v3093_v29  ;;  %v3487_v62 = vld [vmem:[#allocation5 + $0x4a8] sm:$0xff]  ;;  %v3418_v29 = vld [vmem:[#allocation5 + $0x440] sm:$0xff] }
 0x5ad   :  { %3130 = vmatpush.msra.mxu0 %v3090_v12  ;;  %3153 = vmatpush.msra.mxu1 %v3091_v3  ;;  %v3419_v12 = vld [vmem:[#allocation5 + $0x448] sm:$0xff]  ;;  %v3484_v3 = vld [vmem:[#allocation5 + $0x490] sm:$0xff] }
 0x5af   :  { %3131 = vmatpush.msra.mxu0 %v3088_v37  ;;  %3154 = vmatpush.msra.mxu1 %v3089_v38  ;;  %v3485_v37 = vld [vmem:[#allocation5 + $0x498] sm:$0xff]  ;;  %v3416_v38 = vld [vmem:[#allocation5 + $0x430] sm:$0xff] }
 0x5ea   :  { %v2933_v44 = vpop.permute.xlu2 %2932 }
 0x5eb   :  { %2938 = vst.msk [vmem:[#allocation2 + $0x1] sm:$0xff] %vm1121_vm6, %v2933_v44  ;;  %v3340_v44 = vld [vmem:[#allocation5 + $0x3b0] sm:$0xff] }
 0x5f2   :  { %v2940_v30 = vld [vmem:[#allocation2] sm:$0xff] }
 0x5f3   :  { %2984 = vrot.lane.b32.xlu1 %v2940_v30, %s4011_s1  ;;  %3906 = vmatmul.msk.f32.vlgmr.msrb.gmra.mxu2 %vm1173_vm7, %v2940_v30  ;;  %v3166_v52 = vld [vmem:[#allocation2 + $0x1] sm:$0xff] }
 0x5f4   :  { %3908 = vmatmul.msk.f32.vlgmr.msrb.gmra.mxu3 %vm1173_vm7, %v2940_v30  ;;  %3108 = vrot.lane.b32.xlu0 %v2940_v30, %s4012_s21  ;;  %v3333_v30 = vld [vmem:[#allocation5 + $0x378] sm:$0xff] }
 0x5f5   :  { %3356 = vmatpush.msrb.mxu2 %v3340_v44  ;;  %3379 = vmatpush.msrb.mxu3 %v3341_v42  ;;  %v3417_v44 = vld [vmem:[#allocation5 + $0x438] sm:$0xff]  ;;  %v3482_v42 = vld [vmem:[#allocation5 + $0x480] sm:$0xff] }
 0x5f7   :  { %3357 = vmatpush.msrb.mxu2 %v3338_v16  ;;  %3380 = vmatpush.msrb.mxu3 %v3339_v14  ;;  %v3483_v16 = vld [vmem:[#allocation5 + $0x488] sm:$0xff]  ;;  %v3414_v14 = vld [vmem:[#allocation5 + $0x420] sm:$0xff] }
 0x5f9   :  { %3358 = vmatpush.msrb.mxu2 %v3336_v33  ;;  %3381 = vmatpush.msrb.mxu3 %v3337_v7  ;;  %v3415_v33 = vld [vmem:[#allocation5 + $0x428] sm:$0xff]  ;;  %v3480_v7 = vld [vmem:[#allocation5 + $0x470] sm:$0xff] }
 0x5fb   :  { %3359 = vmatpush.msrb.mxu2 %v3334_v56  ;;  %3382 = vmatpush.msrb.mxu3 %v3335_v34  ;;  %v3481_v56 = vld [vmem:[#allocation5 + $0x478] sm:$0xff]  ;;  %v3412_v34 = vld [vmem:[#allocation5 + $0x410] sm:$0xff] }
 0x5fd   :  { %3360 = vmatpush.msrb.mxu2 %v3332_v60  ;;  %3383 = vmatpush.msrb.mxu3 %v3333_v30  ;;  %v3413_v60 = vld [vmem:[#allocation5 + $0x418] sm:$0xff]  ;;  %v3478_v30 = vld [vmem:[#allocation5 + $0x460] sm:$0xff] }
 0x5ff   :  { %3361 = vmatpush.msrb.mxu2 %v3330_v20  ;;  %3384 = vmatpush.msrb.mxu3 %v3331_v32  ;;  %v3479_v20 = vld [vmem:[#allocation5 + $0x468] sm:$0xff]  ;;  %v3410_v32 = vld [vmem:[#allocation5 + $0x400] sm:$0xff] }
 0x601   :  { %3362 = vmatpush.msrb.mxu2 %v3328_v51  ;;  %3385 = vmatpush.msrb.mxu3 %v3329_v45  ;;  %v3411_v51 = vld [vmem:[#allocation5 + $0x408] sm:$0xff]  ;;  %v3408_v45 = vld [vmem:[#allocation5 + $0x3f0] sm:$0xff] }
 0x603   :  { %3363 = vmatpush.msrb.mxu2 %v3326_v49  ;;  %3386 = vmatpush.msrb.mxu3 %v3327_v50  ;;  %v3405_v49 = vld [vmem:[#allocation5 + $0x3d8] sm:$0xff]  ;;  %v3402_v50 = vld [vmem:[#allocation5 + $0x3c0] sm:$0xff] }
 0x605   :  { %3364 = vmatpush.msrb.mxu2 %v3324_v26  ;;  %3387 = vmatpush.msrb.mxu3 %v3325_v18  ;;  %v3403_v26 = vld [vmem:[#allocation5 + $0x3c8] sm:$0xff] }
 0x60a   :  { %v2935_v63 = vpop.permute.xlu0 %2934 }
 0x60b   :  { %2939 = vst.msk [vmem:[#allocation2 + $0x9] sm:$0xff] %vm1121_vm6, %v2935_v63  ;;  %v3261_v63 = vld [vmem:[#allocation5 + $0x308] sm:$0xff] }
 0x612   :  { %v3167_v53 = vld [vmem:[#allocation2 + $0x9] sm:$0xff] }
 0x613   :  { %v2941_v40 = vld [vmem:[#allocation2 + $0x8] sm:$0xff]  ;;  %3266 = vrot.lane.b32.xlu0 %v3167_v53, %s4011_s1 }
 0x614   :  { %3110 = vrot.lane.b32.xlu1 %v2941_v40, %s4012_s21  ;;  %2986 = vrot.lane.b32.xlu2 %v2941_v40, %s4011_s1  ;;  %v4855_v57 = vld [vmem:[#allocation2 + $0x2] sm:$0xff]  ;;  %v4863_v55 = vld [vmem:[#allocation2 + $0xa] sm:$0xff] }
 0x615   :  { %3907 = vmatmul.msk.f32.gmra.mxu2 %vm1173_vm7, %v2941_v40  ;;  %3909 = vmatmul.msk.f32.gmra.mxu3 %vm1173_vm7, %v2941_v40  ;;  %v3323_v40 = vld [vmem:[#allocation5 + $0x328] sm:$0xff] }
 0x616   :  { %3388 = vmatpush.msrb.mxu3 %v3323_v40  ;;  %v3572_v40 = vld [vmem:[#allocation5 + $0x580] sm:$0xff] }
 0x61b   :  { %3498 = vrot.lane.b32.xlu0 %v4855_v57, %s4011_s1 }
 0x61c   :  { %3342 = vrot.lane.b32.xlu1 %v3166_v52, %s4012_s21  ;;  %3264 = vrot.lane.b32.xlu2 %v3166_v52, %s4011_s1 }
 0x61d   :  { %3914 = vmatmul.msk.f32.vlgmr.msra.gmra.mxu2 %vm1173_vm7, %v3166_v52  ;;  %3916 = vmatmul.msk.f32.vlgmr.msra.gmra.mxu3 %vm1173_vm7, %v3166_v52 }
 0x61e   :  { %3535 = vmatpush.msra.mxu3 %v3497_v27 }
 0x620   :  { %3536 = vmatpush.msra.mxu3 %v3495_v24  ;;  %v3567_v24 = vld [vmem:[#allocation5 + $0x558] sm:$0xff] }
 0x622   :  { %3537 = vmatpush.msra.mxu3 %v3493_v23  ;;  %v3563_v23 = vld [vmem:[#allocation5 + $0x538] sm:$0xff] }
 0x623   :  { %3578 = vrot.lane.b32.xlu0 %v4863_v55, %s4012_s21 }
 0x624   :  { %3500 = vrot.lane.b32.xlu1 %v4863_v55, %s4011_s1  ;;  %3344 = vrot.lane.b32.xlu2 %v3167_v53, %s4012_s21 }
 0x625   :  { %3915 = vmatmul.msk.f32.gmra.mxu2 %vm1173_vm7, %v3167_v53  ;;  %3917 = vmatmul.msk.f32.gmra.mxu3 %vm1173_vm7, %v3167_v53  ;;  %v3322_v53 = vld [vmem:[#allocation5 + $0x320] sm:$0xff] }
 0x626   :  { %3365 = vmatpush.msrb.mxu2 %v3322_v53  ;;  %3538 = vmatpush.msra.mxu3 %v3491_v54  ;;  %v3575_v53 = vld [vmem:[#allocation5 + $0x598] sm:$0xff]  ;;  %v3558_v54 = vld [vmem:[#allocation5 + $0x510] sm:$0xff] }
 0x628   :  { %3512 = vmatpush.msra.mxu2 %v3496_v28  ;;  %3539 = vmatpush.msra.mxu3 %v3489_v10  ;;  %v3571_v28 = vld [vmem:[#allocation5 + $0x578] sm:$0xff] }
 0x62a   :  { %3513 = vmatpush.msra.mxu2 %v3494_v48  ;;  %3540 = vmatpush.msra.mxu3 %v3487_v62  ;;  %v3566_v48 = vld [vmem:[#allocation5 + $0x550] sm:$0xff] }
 0x62c   :  { %3576 = vrot.lane.b32.xlu2 %v4855_v57, %s4012_s21  ;;  %3514 = vmatpush.msra.mxu2 %v3492_v61  ;;  %v3562_v61 = vld [vmem:[#allocation5 + $0x530] sm:$0xff] }
 0x62d   :  { %3541 = vmatpush.msra.mxu3 %v3485_v37 }
 0x62e   :  { %3515 = vmatpush.msra.mxu2 %v3490_v5  ;;  %v3561_v5 = vld [vmem:[#allocation5 + $0x528] sm:$0xff] }
 0x62f   :  { %3542 = vmatpush.msra.mxu3 %v3483_v16 }
 0x630   :  { %3516 = vmatpush.msra.mxu2 %v3488_v4 }
 0x631   :  { %3543 = vmatpush.msra.mxu3 %v3481_v56 }
 0x632   :  { %3517 = vmatpush.msra.mxu2 %v3486_v22 }
 0x633   :  { %3544 = vmatpush.msra.mxu3 %v3479_v20 }
 0x634   :  { %3518 = vmatpush.msra.mxu2 %v3484_v3 }
 0x636   :  { %3519 = vmatpush.msra.mxu2 %v3482_v42 }
 0x638   :  { %3520 = vmatpush.msra.mxu2 %v3480_v7 }
 0x63a   :  { %3521 = vmatpush.msra.mxu2 %v3478_v30 }
 0x665   :  { %v2985_v43 = vpop.permute.xlu1 %2984 }
 0x666   :  { %3902 = vmatmul.msk.f32.vlgmr.msrb.gmra.mxu0 %vm1173_vm7, %v2985_v43  ;;  %3904 = vmatmul.msk.f32.vlgmr.msrb.gmra.mxu1 %vm1173_vm7, %v2985_v43  ;;  %v3109_v1 = vpop.permute.xlu0 %3108  ;;  %v3406_v43 = vld [vmem:[#allocation5 + $0x3e0] sm:$0xff] }
 0x667   :  { %3278 = vmatpush.msrb.mxu0 %v3262_v8  ;;  %3301 = vmatpush.msrb.mxu1 %v3263_v6  ;;  %v3409_v8 = vld [vmem:[#allocation5 + $0x3f8] sm:$0xff] }
 0x669   :  { %3279 = vmatpush.msrb.mxu0 %v3260_v41  ;;  %3302 = vmatpush.msrb.mxu1 %v3261_v63  ;;  %v3407_v41 = vld [vmem:[#allocation5 + $0x3e8] sm:$0xff]  ;;  %v3404_v63 = vld [vmem:[#allocation5 + $0x3d0] sm:$0xff] }
 0x66b   :  { %3280 = vmatpush.msrb.mxu0 %v3258_v36  ;;  %3303 = vmatpush.msrb.mxu1 %v3259_v9  ;;  %v3574_v9 = vld [vmem:[#allocation5 + $0x590] sm:$0xff] }
 0x66d   :  { %3281 = vmatpush.msrb.mxu0 %v3256_v58  ;;  %3304 = vmatpush.msrb.mxu1 %v3257_v21  ;;  %v3573_v58 = vld [vmem:[#allocation5 + $0x588] sm:$0xff]  ;;  %v3570_v21 = vld [vmem:[#allocation5 + $0x570] sm:$0xff] }
 0x66e   :  { %v2987_v52 = vpop.permute.xlu2 %2986 }
 0x66f   :  { %3903 = vmatmul.msk.f32.gmra.mxu0 %vm1173_vm7, %v2987_v52  ;;  %3905 = vmatmul.msk.f32.gmra.mxu1 %vm1173_vm7, %v2987_v52 }
 0x670   :  { %3282 = vmatpush.msrb.mxu0 %v3254_v0  ;;  %3305 = vmatpush.msrb.mxu1 %v3255_v47  ;;  %v3568_v0 = vld [vmem:[#allocation5 + $0x560] sm:$0xff]  ;;  %v3569_v47 = vld [vmem:[#allocation5 + $0x568] sm:$0xff] }
 0x672   :  { %3283 = vmatpush.msrb.mxu0 %v3252_v35  ;;  %3306 = vmatpush.msrb.mxu1 %v3253_v39  ;;  %v3564_v35 = vld [vmem:[#allocation5 + $0x540] sm:$0xff]  ;;  %v3565_v39 = vld [vmem:[#allocation5 + $0x548] sm:$0xff] }
 0x674   :  { %3284 = vmatpush.msrb.mxu0 %v3250_v2  ;;  %3307 = vmatpush.msrb.mxu1 %v3251_v11  ;;  %v3560_v11 = vld [vmem:[#allocation5 + $0x520] sm:$0xff] }
 0x676   :  { %3285 = vmatpush.msrb.mxu0 %v3248_v17  ;;  %3308 = vmatpush.msrb.mxu1 %v3249_v13  ;;  %v3265_v18 = vpop.permute.xlu2 %3264  ;;  %v3559_v17 = vld [vmem:[#allocation5 + $0x518] sm:$0xff]  ;;  %v3556_v13 = vld [vmem:[#allocation5 + $0x500] sm:$0xff] }
 0x677   :  { %3910 = vmatmul.msk.f32.vlgmr.msra.gmra.mxu0 %vm1173_vm7, %v3109_v1  ;;  %3912 = vmatmul.msk.f32.vlgmr.msra.gmra.mxu1 %vm1173_vm7, %v3109_v1 }
 0x678   :  { %3286 = vmatpush.msrb.mxu0 %v3246_v59  ;;  %3309 = vmatpush.msrb.mxu1 %v3247_v15  ;;  %v3557_v59 = vld [vmem:[#allocation5 + $0x508] sm:$0xff] }
 0x67a   :  { %3287 = vmatpush.msrb.mxu0 %v3244_v46  ;;  %3310 = vmatpush.msrb.mxu1 %v3245_v19  ;;  %v3059_v46 = vpop.f32.mrf.mxu2 }
 0x67c   :  { %3434 = vmatpush.msra.mxu0 %v3420_v31  ;;  %3457 = vmatpush.msra.mxu1 %v3421_v25 }
 0x67e   :  { %3435 = vmatpush.msra.mxu0 %v3418_v29  ;;  %3458 = vmatpush.msra.mxu1 %v3419_v12  ;;  %v3345_v52 = vpop.permute.xlu2 %3344 }
 0x680   :  { %3436 = vmatpush.msra.mxu0 %v3416_v38  ;;  %3459 = vmatpush.msra.mxu1 %v3417_v44 }
 0x682   :  { %3437 = vmatpush.msra.mxu0 %v3414_v14  ;;  %3460 = vmatpush.msra.mxu1 %v3415_v33 }
 0x684   :  { %3438 = vmatpush.msra.mxu0 %v3412_v34  ;;  %3461 = vmatpush.msra.mxu1 %v3413_v60 }
 0x685   :  { %v3267_v27 = vpop.permute.xlu0 %3266 }
 0x686   :  { %v3111_v6 = vpop.permute.xlu1 %3110  ;;  %3439 = vmatpush.msra.mxu0 %v3410_v32  ;;  %3462 = vmatpush.msra.mxu1 %v3411_v51 }
 0x687   :  { %3911 = vmatmul.msk.f32.gmra.mxu0 %vm1173_vm7, %v3111_v6  ;;  %3913 = vmatmul.msk.f32.gmra.mxu1 %vm1173_vm7, %v3111_v6 }
 0x688   :  { %3440 = vmatpush.msra.mxu0 %v3408_v45  ;;  %3463 = vmatpush.msra.mxu1 %v3409_v8 }
 0x68a   :  { %3441 = vmatpush.msra.mxu0 %v3406_v43  ;;  %3464 = vmatpush.msra.mxu1 %v3407_v41 }
 0x68c   :  { %3442 = vmatpush.msra.mxu0 %v3404_v63  ;;  %3465 = vmatpush.msra.mxu1 %v3405_v49 }
 0x68d   :  { %v3499_v2 = vpop.permute.xlu0 %3498 }
 0x68e   :  { %v3343_v36 = vpop.permute.xlu1 %3342  ;;  %3443 = vmatpush.msra.mxu0 %v3402_v50  ;;  %3466 = vmatpush.msra.mxu1 %v3403_v26 }
 0x68f   :  { %3918 = vmatmul.msk.f32.vlgmr.msrb.gmra.mxu0 %vm1173_vm7, %v3265_v18  ;;  %3920 = vmatmul.msk.f32.vlgmr.msrb.gmra.mxu1 %vm1173_vm7, %v3265_v18 }
 0x690   :  { %3922 = vmatmul.msk.f32.vlgmr.msrb.gmra.mxu2 %vm1173_vm7, %v3343_v36  ;;  %3924 = vmatmul.msk.f32.vlgmr.msrb.gmra.mxu3 %vm1173_vm7, %v3343_v36 }
 0x691   :  { %3590 = vmatpush.msrb.mxu0 %v3574_v9  ;;  %3613 = vmatpush.msrb.mxu1 %v3575_v53 }
 0x693   :  { %3591 = vmatpush.msrb.mxu0 %v3572_v40  ;;  %3614 = vmatpush.msrb.mxu1 %v3573_v58 }
 0x695   :  { %3592 = vmatpush.msrb.mxu0 %v3570_v21  ;;  %3615 = vmatpush.msrb.mxu1 %v3571_v28  ;;  %v3579_v1 = vpop.permute.xlu0 %3578 }
 0x696   :  { %v3501_v15 = vpop.permute.xlu1 %3500 }
 0x697   :  { %3919 = vmatmul.msk.f32.gmra.mxu0 %vm1173_vm7, %v3267_v27  ;;  %3921 = vmatmul.msk.f32.gmra.mxu1 %vm1173_vm7, %v3267_v27 }
 0x698   :  { %3923 = vmatmul.msk.f32.gmra.mxu2 %vm1173_vm7, %v3345_v52  ;;  %3925 = vmatmul.msk.f32.gmra.mxu3 %vm1173_vm7, %v3345_v52  ;;  %v3062_v25 = vpop.f32.mrf.mxu2 }
 0x699   :  { %3593 = vmatpush.msrb.mxu0 %v3568_v0  ;;  %3616 = vmatpush.msrb.mxu1 %v3569_v47 }
 0x69b   :  { %3594 = vmatpush.msrb.mxu0 %v3566_v48  ;;  %3617 = vmatpush.msrb.mxu1 %v3567_v24 }
 0x69d   :  { %3595 = vmatpush.msrb.mxu0 %v3564_v35  ;;  %3618 = vmatpush.msrb.mxu1 %v3565_v39 }
 0x69f   :  { %3926 = vmatmul.msk.f32.vlgmr.msra.gmra.mxu0 %vm1173_vm7, %v4855_v57  ;;  %3928 = vmatmul.msk.f32.vlgmr.msra.gmra.mxu1 %vm1173_vm7, %v4855_v57  ;;  %v3577_v57 = vpop.permute.xlu2 %3576 }
 0x6a0   :  { %3930 = vmatmul.msk.f32.vlgmr.msra.gmra.mxu2 %vm1173_vm7, %v3499_v2  ;;  %3932 = vmatmul.msk.f32.vlgmr.msra.gmra.mxu3 %vm1173_vm7, %v3499_v2  ;;  %v3211_v12 = vpop.f32.mrf.mxu2 }
 0x6a1   :  { %3596 = vmatpush.msrb.mxu0 %v3562_v61  ;;  %3619 = vmatpush.msrb.mxu1 %v3563_v23  ;;  %v3634_v61 = vld [vmem:[%s4927_s6] sm:$0x3] }
 0x6a3   :  { %3597 = vmatpush.msrb.mxu0 %v3560_v11  ;;  %3620 = vmatpush.msrb.mxu1 %v3561_v5 }
 0x6a5   :  { %3598 = vmatpush.msrb.mxu0 %v3558_v54  ;;  %3621 = vmatpush.msrb.mxu1 %v3559_v17 }
 0x6a7   :  { %3927 = vmatmul.msk.f32.gmra.mxu0 %vm1173_vm7, %v4863_v55  ;;  %3929 = vmatmul.msk.f32.gmra.mxu1 %vm1173_vm7, %v4863_v55  ;;  %v3082_v55 = vpop.f32.mrf.mxu3 }
 0x6a8   :  { %3931 = vmatmul.msk.f32.gmra.mxu2 %vm1173_vm7, %v3501_v15  ;;  %3933 = vmatmul.msk.f32.gmra.mxu3 %vm1173_vm7, %v3501_v15  ;;  %v3214_v44 = vpop.f32.mrf.mxu2 }
 0x6a9   :  { %3599 = vmatpush.msrb.mxu0 %v3556_v13  ;;  %3622 = vmatpush.msrb.mxu1 %v3557_v59  ;;  %v3636_v13 = vperm.slane %v3634_v61, 0  ;;  %v3637_v59 = vperm.slane %v3634_v61, 1 }
 0x6af   :  { %3934 = vmatmul.msk.f32.vlgmr.msrb.gmra.mxu0 %vm1173_vm7, %v3577_v57  ;;  %3936 = vmatmul.msk.f32.vlgmr.msrb.gmra.mxu1 %vm1173_vm7, %v3577_v57  ;;  %v3085_v22 = vpop.f32.mrf.mxu3 }
 0x6b7   :  { %3935 = vmatmul.msk.f32.gmra.mxu0 %vm1173_vm7, %v3579_v1  ;;  %3937 = vmatmul.msk.f32.gmra.mxu1 %vm1173_vm7, %v3579_v1  ;;  %v3234_v3 = vpop.f32.mrf.mxu3 }
 0x6bf   :  { %v3237_v42 = vpop.f32.mrf.mxu3 }
 0x6e3   :  { %v3009_v4 = vpop.f32.mrf.mxu0  ;;  %v3032_v10 = vpop.f32.mrf.mxu1 }
 0x6e4   :  { %v3060_v51 = vadd.f32 %v3059_v46, %v3009_v4  ;;  %v3083_v45 = vadd.f32 %v3082_v55, %v3032_v10 }
 0x6ec   :  { %v3012_v19 = vpop.f32.mrf.mxu0  ;;  %v3035_v31 = vpop.f32.mrf.mxu1 }
 0x6ed   :  { %v3063_v63 = vadd.f32 %v3062_v25, %v3012_v19  ;;  %v3086_v49 = vadd.f32 %v3085_v22, %v3035_v31 }
 0x6f4   :  { %v3133_v62 = vpop.f32.mrf.mxu0  ;;  %v3156_v29 = vpop.f32.mrf.mxu1 }
 0x6f5   :  { %v3162_v8 = vadd.f32 %v3133_v62, %v3060_v51  ;;  %v3163_v6 = vadd.f32 %v3156_v29, %v3083_v45 }
 0x6f7   :  { %v3240_v9 = vadd.f32 %v3211_v12, %v3162_v8  ;;  %v3241_v53 = vadd.f32 %v3234_v3, %v3163_v6 }
 0x704   :  { %v3136_v37 = vpop.f32.mrf.mxu0  ;;  %v3159_v38 = vpop.f32.mrf.mxu1 }
 0x705   :  { %v3164_v18 = vadd.f32 %v3136_v37, %v3063_v63  ;;  %v3165_v36 = vadd.f32 %v3159_v38, %v3086_v49 }
 0x707   :  { %v3242_v27 = vadd.f32 %v3214_v44, %v3164_v18  ;;  %v3243_v0 = vadd.f32 %v3237_v42, %v3165_v36 }
 0x70c   :  { %v3289_v16 = vpop.f32.mrf.mxu0  ;;  %v3312_v14 = vpop.f32.mrf.mxu1 }
 0x70d   :  { %v3318_v40 = vadd.f32 %v3289_v16, %v3240_v9  ;;  %v3319_v58 = vadd.f32 %v3312_v14, %v3241_v53  ;;  %v3650_v14 = vld [vmem:[%s4928_s7] sm:$0xff] }
 0x713   :  { %v3367_v33 = vpop.f32.mrf.mxu2  ;;  %v3390_v7 = vpop.f32.mrf.mxu3 }
 0x714   :  { %v3292_v56 = vpop.f32.mrf.mxu0  ;;  %v3315_v34 = vpop.f32.mrf.mxu1  ;;  %v3396_v21 = vadd.f32 %v3367_v33, %v3318_v40  ;;  %v3397_v28 = vadd.f32 %v3390_v7, %v3319_v58  ;;  %v3674_v33 = vld [vmem:[%s4929_s8] sm:$0xff] }
 0x715   :  { %v3320_v48 = vadd.f32 %v3292_v56, %v3242_v27  ;;  %v3321_v24 = vadd.f32 %v3315_v34, %v3243_v0 }
 0x71b   :  { %v3370_v60 = vpop.f32.mrf.mxu2  ;;  %v3393_v30 = vpop.f32.mrf.mxu3 }
 0x71c   :  { %v3445_v20 = vpop.f32.mrf.mxu0  ;;  %v3468_v32 = vpop.f32.mrf.mxu1  ;;  %v3398_v23 = vadd.f32 %v3370_v60, %v3320_v48  ;;  %v3399_v2 = vadd.f32 %v3393_v30, %v3321_v24 }
 0x71d   :  { %v3474_v35 = vadd.f32 %v3445_v20, %v3396_v21  ;;  %v3475_v39 = vadd.f32 %v3468_v32, %v3397_v28 }
 0x723   :  { %v3523_v50 = vpop.f32.mrf.mxu2  ;;  %v3546_v26 = vpop.f32.mrf.mxu3 }
 0x724   :  { %v3448_v43 = vpop.f32.mrf.mxu0  ;;  %v3471_v41 = vpop.f32.mrf.mxu1  ;;  %v3552_v11 = vadd.f32 %v3523_v50, %v3474_v35  ;;  %v3553_v5 = vadd.f32 %v3546_v26, %v3475_v39 }
 0x725   :  { %v3476_v15 = vadd.f32 %v3448_v43, %v3398_v23  ;;  %v3477_v57 = vadd.f32 %v3471_v41, %v3399_v2 }
 0x72b   :  { %v3526_v54 = vpop.f32.mrf.mxu2  ;;  %v3549_v17 = vpop.f32.mrf.mxu3 }
 0x72c   :  { %v3601_v47 = vpop.f32.mrf.mxu0  ;;  %v3624_v52 = vpop.f32.mrf.mxu1  ;;  %v3554_v10 = vadd.f32 %v3526_v54, %v3476_v15  ;;  %v3555_v46 = vadd.f32 %v3549_v17, %v3477_v57 }
 0x72d   :  { %v3630_v1 = vadd.f32 %v3601_v47, %v3552_v11  ;;  %v3631_v4 = vadd.f32 %v3624_v52, %v3553_v5 }
 0x72f   :  { %v3640_v31 = vadd.f32 %v3636_v13, %v3630_v1  ;;  %v3641_v25 = vadd.f32 %v3637_v59, %v3631_v4 }
 0x731   :  { %v3644_v3 = vmax.f32 %v3640_v31, 0.0  ;;  %v3645_v37 = vmax.f32 %v3641_v25, 0.0 }
 0x733   :  { %v3648_v16 = vmax.f32 %v3644_v3, %v3645_v37 }
 0x734   :  { %v3604_v55 = vpop.f32.mrf.mxu0  ;;  %v3627_v19 = vpop.f32.mrf.mxu1 }
 0x735   :  { %v3632_v22 = vadd.f32 %v3604_v55, %v3554_v10  ;;  %v3633_v62 = vadd.f32 %v3627_v19, %v3555_v46 }
 0x737   :  { %v3642_v29 = vadd.f32 %v3636_v13, %v3632_v22  ;;  %v3643_v12 = vadd.f32 %v3637_v59, %v3633_v62 }
 0x739   :  { %v3646_v38 = vmax.f32 %v3642_v29, 0.0  ;;  %v3647_v44 = vmax.f32 %v3643_v12, 0.0 }
 0x73b   :  { %v3649_v42 = vmax.f32 %v3646_v38, %v3647_v44 }
 0x73d   :  { %3668 = vmatpush.msrb.mxu2 %v3649_v42  ;;  %3692 = vmatpush.msrb.mxu3 %v3649_v42 }
 0x73f   :  { %3669 = vmatpush.msrb.mxu2 %v3648_v16  ;;  %3693 = vmatpush.msrb.mxu3 %v3648_v16 }
 0x740   :  { %3938 = vmatmul.msk.f32.vlgmr.msrb.gmra.mxu2 %vm1844_vm8, %v3650_v14  ;;  %3939 = vmatmul.msk.f32.vlgmr.msrb.gmra.mxu3 %vm1844_vm8, %v3674_v33 }
 0x7c3   :  { %v3671_v7 = vpop.f32.mrf.mxu2  ;;  %v3695_v56 = vpop.f32.mrf.mxu3 }
 0x7c4   :  { %v3698_v34 = vmax.f32 %v3671_v7, %v3695_v56 }
 0x7c6   :  { %3940 = vst.msk [vmem:[%s4930_s9 + $0x8] sm:$0xff] %vm1173_vm7, %v3698_v34 }
 0x7c7   :  { %3705 = vsyncpa [#allocation4], 1 }
 0x7c8   :  { %3706 = vsyncpa [#allocation6], 1 }

</bundles_post_ra>
